<compile_context>
chip_gen: v5e
topology: v5e:2x2
jax: 0.10.0
libtpu: 0.0.40
codegen_flags: <defaults>
</compile_context>

<pallas_src>
import functools

import jax
import jax.numpy as jnp
from jax.experimental import pallas as pl
from jax.experimental.pallas import tpu as pltpu


def _round_up(x: int, m: int) -> int:
    return ((x + m - 1) // m) * m


def _vmem_capacity_bytes() -> int:
    """Physical per-TensorCore VMEM; conservative fallback if the query fails."""
    try:
        return int(pltpu.get_tpu_info().vmem_capacity_bytes)
    except Exception:
        return 64 * 1024 * 1024  # safe on every generation


def _ffn_kernel(x_ref, w1_ref, b1_ref, g_ref, beta_ref, w2_ref, b2_ref,
                out_ref, *, use_layernorm: bool, eps: float, compute_dtype):
    # In-kernel cast to the MXU compute dtype (free on the VPU, under the MXU).
    xb = x_ref[...].astype(compute_dtype)

    # fc1 (bf16 MXU operands, f32 accumulation) + bias + ReLU (fairseq default act)
    h = jnp.dot(xb, w1_ref[...], preferred_element_type=jnp.float32)
    h = jnp.maximum(h + b1_ref[...], 0.0)

    # TODO(synk): activation_dropout_module / dropout_module are identity here
    # (eval mode / p=0) — stochastic dropout is not reproduced.

    if use_layernorm:
        # Fused stats: one pass for sum and sum-of-squares.
        inv_f = 1.0 / h.shape[-1]
        s = jnp.sum(h, axis=-1, keepdims=True)
        ss = jnp.sum(h * h, axis=-1, keepdims=True)
        mean = s * inv_f
        # Clamp: E[h^2] - mean^2 can cancel slightly negative for post-ReLU h.
        var = jnp.maximum(ss * inv_f - mean * mean, 0.0)
        h = (h - mean) * jax.lax.rsqrt(var + eps)
        h = h * g_ref[...] + beta_ref[...]

    # fc2 (cast normalized activations back to the MXU compute dtype)
    y = jnp.dot(h.astype(compute_dtype), w2_ref[...],
                preferred_element_type=jnp.float32)
    y = y + b2_ref[...]

    # Single store: fc_result == dropout(fc_result) since dropout is identity;
    # the wrapper returns the same array twice (no duplicate HBM writeback).
    out_ref[...] = y.astype(out_ref.dtype)


def _invariant_spec(shape, buffering):
    """BlockSpec for a grid-invariant operand (constant block index)."""
    if buffering is None:
        return pl.BlockSpec(shape, lambda i: (0, 0))
    return pl.BlockSpec(shape, lambda i: (0, 0), pipeline_mode=buffering)


def feedforward_block(x, params, *, use_layernorm=True, eps=1e-5, tm=None,
                      compute_dtype=jnp.bfloat16, vmem_limit_bytes=None):
    """x: (T, B, C). Returns (out, fc_result), both (T, B, C) in x.dtype."""
    T, B, C = x.shape
    w1, b1, gamma, beta, w2, b2 = params
    E, F = w1.shape
    assert C == E and w2.shape == (F, E)

    # Generation-aware VMEM budget: leave ~25% headroom over the scoped limit.
    vmem_cap = _vmem_capacity_bytes()
    if vmem_limit_bytes is None:
        vmem_limit_bytes = min((vmem_cap * 3) // 4, 112 * 1024 * 1024)

    n = T * B
    if tm is None:
        # Bigger tiles where VMEM is plentiful (v5e/v6e: 128 MiB), smaller on v7x.
        tm = 512 if vmem_cap >= (96 << 20) else 256
        # Bound the tm x F f32 intermediate to ~4 MiB so it doesn't spill-thrash;
        # never below a 128-row MXU tile.
        max_tm_for_h = max(128, (((4 << 20) // (4 * F)) // 128) * 128)
        tm = min(tm, max_tm_for_h)
    # Clamp the tile to the (sublane-rounded) token count, then pad tokens so
    # the grid is exact — no restriction on T*B.
    tm = min(tm, _round_up(n, 8))
    n_pad = _round_up(n, tm)

    x2d = x.reshape(n, C)
    if n_pad != n:
        x2d = jnp.pad(x2d, ((0, n_pad - n), (0, 0)))
    # NOTE: x is NOT cast here; the kernel casts on the VPU (saves one HBM pass).

    # bf16 MXU weight operands; biases / LayerNorm params stay f32.
    w1c = w1.astype(compute_dtype)
    w2c = w2.astype(compute_dtype)
    b1f = b1.reshape(1, F).astype(jnp.float32)
    gf = gamma.reshape(1, F).astype(jnp.float32)
    btf = beta.reshape(1, F).astype(jnp.float32)
    b2f = b2.reshape(1, E).astype(jnp.float32)

    kernel = functools.partial(_ffn_kernel, use_layernorm=use_layernorm,
                               eps=eps, compute_dtype=compute_dtype)

    # TODO(synk): for v7x-scale ffn dims where bf16(W1)+bf16(W2) exceed ~1/3 of
    # per-TC VMEM, switch to an F-chunked inner pipeline (pltpu.emit_pipeline over
    # W1 column blocks / W2 row blocks with two-pass LayerNorm stats). The fully
    # resident-weight path below assumes the weights fit.

    def _call(weight_buffering):
        return pl.pallas_call(
            kernel,
            out_shape=jax.ShapeDtypeStruct((n_pad, E), x.dtype),
            grid_spec=pltpu.PrefetchScalarGridSpec(
                num_scalar_prefetch=0,
                grid=(n_pad // tm,),
                in_specs=[
                    pl.BlockSpec((tm, E), lambda i: (i, 0)),      # x tile
                    _invariant_spec((E, F), weight_buffering),    # W1 (in, out)
                    _invariant_spec((1, F), weight_buffering),    # b1
                    _invariant_spec((1, F), weight_buffering),    # ln gamma
                    _invariant_spec((1, F), weight_buffering),    # ln beta
                    _invariant_spec((F, E), weight_buffering),    # W2 (in, out)
                    _invariant_spec((1, E), weight_buffering),    # b2
                ],
                out_specs=pl.BlockSpec((tm, E), lambda i: (i, 0)),
            ),
            compiler_params=pltpu.CompilerParams(
                dimension_semantics=("parallel",),
                vmem_limit_bytes=vmem_limit_bytes),
        )(x2d, w1c, b1f, gf, btf, w2c, b2f)

    try:
        # Grid-invariant operands single-buffered: halves resident-weight VMEM.
        out2d = _call(pl.Buffered(1))
    except Exception:
        # Fallback: default (double-buffered) pipelining if Buffered(1) is rejected.
        out2d = _call(None)

    out = out2d[:n].reshape(T, B, C)
    # dropout is identity -> post-dropout output and fc_result are identical.
    return out, out


def init_params(key, embed_dim, ffn_embed_dim, dtype=jnp.float32):
    """Deterministic synthetic init matching nn.Linear shapes (pre-transposed)."""
    k1, k2, k3, k4 = jax.random.split(key, 4)
    s1 = 1.0 / jnp.sqrt(embed_dim)
    s2 = 1.0 / jnp.sqrt(ffn_embed_dim)
    w1 = jax.random.uniform(k1, (embed_dim, ffn_embed_dim), dtype, -s1, s1)
    b1 = jax.random.uniform(k2, (ffn_embed_dim,), dtype, -s1, s1)
    w2 = jax.random.uniform(k3, (ffn_embed_dim, embed_dim), dtype, -s2, s2)
    b2 = jax.random.uniform(k4, (embed_dim,), dtype, -s2, s2)
    gamma = jnp.ones((ffn_embed_dim,), dtype)
    beta = jnp.zeros((ffn_embed_dim,), dtype)
    return (w1, b1, gamma, beta, w2, b2)


def _reference(x, params, use_layernorm=True, eps=1e-5):
    """Pure-f32 reference of the module forward."""
    w1, b1, gamma, beta, w2, b2 = params
    h = jnp.maximum(x @ w1 + b1, 0.0)
    if use_layernorm:
        mean = jnp.mean(h, axis=-1, keepdims=True)
        var = jnp.mean(jnp.square(h - mean), axis=-1, keepdims=True)
        h = (h - mean) * jax.lax.rsqrt(var + eps) * gamma + beta
    y = h @ w2 + b2
    return y, y


if __name__ == "__main__":
    # Small but lane-dense shapes: seq=8, batch=4, embed_dim=256, ffn_embed_dim=512.
    T, B, C, F = 8, 4, 256, 512
    key = jax.random.PRNGKey(0)
    kx, kp = jax.random.split(key)
    x = jax.random.normal(kx, (T, B, C), jnp.float32)
    params = init_params(kp, C, F)

    # LayerNorm branch.
    out, fc_result = feedforward_block(x, params, use_layernorm=True)
    out = jax.block_until_ready(out)
    fc_result = jax.block_until_ready(fc_result)

    ref_out, ref_fc = _reference(x, params, use_layernorm=True)
    assert out.shape == (T, B, C) and fc_result.shape == (T, B, C)
    # bf16 MXU operands (f32 accumulate) -> compare at bf16-level tolerance.
    assert jnp.allclose(out, ref_out, atol=3e-2, rtol=3e-2)
    assert jnp.allclose(fc_result, ref_fc, atol=3e-2, rtol=3e-2)

    # No-LayerNorm branch (ffn_layernorm is None in the module).
    out2, fc2 = feedforward_block(x, params, use_layernorm=False)
    out2 = jax.block_until_ready(out2)
    ref2, _ = _reference(x, params, use_layernorm=False)
    assert jnp.allclose(out2, ref2, atol=3e-2, rtol=3e-2)

    print("KERNEL_OK")
</pallas_src>

<mosaic_0001>
module attributes {stable_mosaic.version = 11 : i64} {
  func.func @_ffn_kernel(%arg0: i32, %arg1: memref<32x256xf32, #tpu.memory_space<vmem>>, %arg2: memref<256x512xbf16, #tpu.memory_space<vmem>>, %arg3: memref<1x512xf32, #tpu.memory_space<vmem>>, %arg4: memref<1x512xf32, #tpu.memory_space<vmem>>, %arg5: memref<1x512xf32, #tpu.memory_space<vmem>>, %arg6: memref<512x256xbf16, #tpu.memory_space<vmem>>, %arg7: memref<1x256xf32, #tpu.memory_space<vmem>>, %arg8: memref<32x256xf32, #tpu.memory_space<vmem>>) attributes {dimension_semantics = [#tpu.dimension_semantics<parallel>], iteration_bounds = array<i64: 1>, scalar_prefetch = 0 : i64, scratch_operands = 0 : i64, tpu.core_type = #tpu.core_type<tc>, window_params = [{transform_indices = @transform_0, window_bounds = array<i64: 32, 256>}, {pipeline_mode = #tpu.pipeline_mode<synchronous>, transform_indices = @transform_1, window_bounds = array<i64: 256, 512>}, {pipeline_mode = #tpu.pipeline_mode<synchronous>, transform_indices = @transform_2, window_bounds = array<i64: 1, 512>}, {pipeline_mode = #tpu.pipeline_mode<synchronous>, transform_indices = @transform_3, window_bounds = array<i64: 1, 512>}, {pipeline_mode = #tpu.pipeline_mode<synchronous>, transform_indices = @transform_4, window_bounds = array<i64: 1, 512>}, {pipeline_mode = #tpu.pipeline_mode<synchronous>, transform_indices = @transform_5, window_bounds = array<i64: 512, 256>}, {pipeline_mode = #tpu.pipeline_mode<synchronous>, transform_indices = @transform_6, window_bounds = array<i64: 1, 256>}, {transform_indices = @transform_7, window_bounds = array<i64: 32, 256>}]} {
    %c0 = arith.constant 0 : index
    %c0_0 = arith.constant 0 : index
    %0 = vector.load %arg1[%c0, %c0_0] : memref<32x256xf32, #tpu.memory_space<vmem>>, vector<32x256xf32>
    %1 = arith.truncf %0 : vector<32x256xf32> to vector<32x256xbf16>
    %c0_1 = arith.constant 0 : index
    %c0_2 = arith.constant 0 : index
    %2 = vector.load %arg2[%c0_1, %c0_2] : memref<256x512xbf16, #tpu.memory_space<vmem>>, vector<256x512xbf16>
    %cst = arith.constant dense<0.000000e+00> : vector<32x512xf32>
    %3 = tpu.matmul %1, %2, %cst {dimension_numbers = #tpu.dot_dimension_numbers<[1], [0], [0], [1], [0, 0, 1, 1], [], []>} : vector<32x256xbf16>, vector<256x512xbf16>, vector<32x512xf32> -> vector<32x512xf32>
    %c0_3 = arith.constant 0 : index
    %c0_4 = arith.constant 0 : index
    %4 = vector.load %arg3[%c0_3, %c0_4] : memref<1x512xf32, #tpu.memory_space<vmem>>, vector<1x512xf32>
    %5 = vector.broadcast %4 : vector<1x512xf32> to vector<32x512xf32>
    %6 = arith.addf %3, %5 : vector<32x512xf32>
    %cst_5 = arith.constant 0.000000e+00 : f32
    %7 = vector.broadcast %cst_5 : f32 to vector<32x512xf32>
    %8 = arith.maximumf %6, %7 : vector<32x512xf32>
    %cst_6 = arith.constant dense<0.000000e+00> : vector<32xf32>
    %9 = vector.multi_reduction <add>, %8, %cst_6 [1] : vector<32x512xf32> to vector<32xf32>
    %10 = vector.shape_cast %9 : vector<32xf32> to vector<32x1xf32>
    %11 = arith.mulf %8, %8 : vector<32x512xf32>
    %cst_7 = arith.constant dense<0.000000e+00> : vector<32xf32>
    %12 = vector.multi_reduction <add>, %11, %cst_7 [1] : vector<32x512xf32> to vector<32xf32>
    %13 = vector.shape_cast %12 : vector<32xf32> to vector<32x1xf32>
    %cst_8 = arith.constant 0.001953125 : f32
    %14 = vector.broadcast %cst_8 : f32 to vector<32x1xf32>
    %15 = arith.mulf %10, %14 : vector<32x1xf32>
    %cst_9 = arith.constant 0.001953125 : f32
    %16 = vector.broadcast %cst_9 : f32 to vector<32x1xf32>
    %17 = arith.mulf %13, %16 : vector<32x1xf32>
    %18 = arith.mulf %15, %15 : vector<32x1xf32>
    %19 = arith.subf %17, %18 : vector<32x1xf32>
    %cst_10 = arith.constant 0.000000e+00 : f32
    %20 = vector.broadcast %cst_10 : f32 to vector<32x1xf32>
    %21 = arith.maximumf %19, %20 : vector<32x1xf32>
    %22 = vector.broadcast %15 : vector<32x1xf32> to vector<32x512xf32>
    %23 = arith.subf %8, %22 : vector<32x512xf32>
    %cst_11 = arith.constant 9.99999974E-6 : f32
    %24 = vector.broadcast %cst_11 : f32 to vector<32x1xf32>
    %25 = arith.addf %21, %24 : vector<32x1xf32>
    %26 = math.rsqrt %25 : vector<32x1xf32>
    %27 = vector.broadcast %26 : vector<32x1xf32> to vector<32x512xf32>
    %28 = arith.mulf %23, %27 : vector<32x512xf32>
    %c0_12 = arith.constant 0 : index
    %c0_13 = arith.constant 0 : index
    %29 = vector.load %arg4[%c0_12, %c0_13] : memref<1x512xf32, #tpu.memory_space<vmem>>, vector<1x512xf32>
    %30 = vector.broadcast %29 : vector<1x512xf32> to vector<32x512xf32>
    %31 = arith.mulf %28, %30 : vector<32x512xf32>
    %c0_14 = arith.constant 0 : index
    %c0_15 = arith.constant 0 : index
    %32 = vector.load %arg5[%c0_14, %c0_15] : memref<1x512xf32, #tpu.memory_space<vmem>>, vector<1x512xf32>
    %33 = vector.broadcast %32 : vector<1x512xf32> to vector<32x512xf32>
    %34 = arith.addf %31, %33 : vector<32x512xf32>
    %35 = arith.truncf %34 : vector<32x512xf32> to vector<32x512xbf16>
    %c0_16 = arith.constant 0 : index
    %c0_17 = arith.constant 0 : index
    %36 = vector.load %arg6[%c0_16, %c0_17] : memref<512x256xbf16, #tpu.memory_space<vmem>>, vector<512x256xbf16>
    %cst_18 = arith.constant dense<0.000000e+00> : vector<32x256xf32>
    %37 = tpu.matmul %35, %36, %cst_18 {dimension_numbers = #tpu.dot_dimension_numbers<[1], [0], [0], [1], [0, 0, 1, 1], [], []>} : vector<32x512xbf16>, vector<512x256xbf16>, vector<32x256xf32> -> vector<32x256xf32>
    %c0_19 = arith.constant 0 : index
    %c0_20 = arith.constant 0 : index
    %38 = vector.load %arg7[%c0_19, %c0_20] : memref<1x256xf32, #tpu.memory_space<vmem>>, vector<1x256xf32>
    %39 = vector.broadcast %38 : vector<1x256xf32> to vector<32x256xf32>
    %40 = arith.addf %37, %39 : vector<32x256xf32>
    %c0_21 = arith.constant 0 : index
    %c0_22 = arith.constant 0 : index
    %41 = vector.load %arg8[%c0_21, %c0_22] : memref<32x256xf32, #tpu.memory_space<vmem>>, vector<32x256xf32>
    tpu.vector_store %arg8[%c0_21, %c0_22], %40 {strides = array<i32>} : memref<32x256xf32, #tpu.memory_space<vmem>>, vector<32x256xf32>,
    return
  }
  func.func @transform_0(%arg0: i32) -> (i32, i32) {
    %c0_i32 = arith.constant 0 : i32
    %c0_i32_0 = arith.constant 0 : i32
    return %arg0, %c0_i32 : i32, i32
  }
  func.func @transform_1(%arg0: i32) -> (i32, i32) {
    %c0_i32 = arith.constant 0 : i32
    %c0_i32_0 = arith.constant 0 : i32
    %c0_i32_1 = arith.constant 0 : i32
    return %c0_i32, %c0_i32_0 : i32, i32
  }
  func.func @transform_2(%arg0: i32) -> (i32, i32) {
    %c0_i32 = arith.constant 0 : i32
    %c0_i32_0 = arith.constant 0 : i32
    %c0_i32_1 = arith.constant 0 : i32
    return %c0_i32, %c0_i32_0 : i32, i32
  }
  func.func @transform_3(%arg0: i32) -> (i32, i32) {
    %c0_i32 = arith.constant 0 : i32
    %c0_i32_0 = arith.constant 0 : i32
    %c0_i32_1 = arith.constant 0 : i32
    return %c0_i32, %c0_i32_0 : i32, i32
  }
  func.func @transform_4(%arg0: i32) -> (i32, i32) {
    %c0_i32 = arith.constant 0 : i32
    %c0_i32_0 = arith.constant 0 : i32
    %c0_i32_1 = arith.constant 0 : i32
    return %c0_i32, %c0_i32_0 : i32, i32
  }
  func.func @transform_5(%arg0: i32) -> (i32, i32) {
    %c0_i32 = arith.constant 0 : i32
    %c0_i32_0 = arith.constant 0 : i32
    %c0_i32_1 = arith.constant 0 : i32
    return %c0_i32, %c0_i32_0 : i32, i32
  }
  func.func @transform_6(%arg0: i32) -> (i32, i32) {
    %c0_i32 = arith.constant 0 : i32
    %c0_i32_0 = arith.constant 0 : i32
    %c0_i32_1 = arith.constant 0 : i32
    return %c0_i32, %c0_i32_0 : i32, i32
  }
  func.func @transform_7(%arg0: i32) -> (i32, i32) {
    %c0_i32 = arith.constant 0 : i32
    %c0_i32_0 = arith.constant 0 : i32
    return %arg0, %c0_i32 : i32, i32
  }
}

module attributes {stable_mosaic.version = 11 : i64} {
  func.func @_ffn_kernel(%arg0: i32, %arg1: memref<32x256xf32, #tpu.memory_space<vmem>>, %arg2: memref<256x512xbf16, #tpu.memory_space<vmem>>, %arg3: memref<1x512xf32, #tpu.memory_space<vmem>>, %arg4: memref<1x512xf32, #tpu.memory_space<vmem>>, %arg5: memref<1x512xf32, #tpu.memory_space<vmem>>, %arg6: memref<512x256xbf16, #tpu.memory_space<vmem>>, %arg7: memref<1x256xf32, #tpu.memory_space<vmem>>, %arg8: memref<32x256xf32, #tpu.memory_space<vmem>>) attributes {dimension_semantics = [#tpu.dimension_semantics<parallel>], iteration_bounds = array<i64: 1>, scalar_prefetch = 0 : i64, scratch_operands = 0 : i64, tpu.core_type = #tpu.core_type<tc>, window_params = [{transform_indices = @transform_0, window_bounds = array<i64: 32, 256>}, {pipeline_mode = #tpu.pipeline_mode<synchronous>, transform_indices = @transform_1, window_bounds = array<i64: 256, 512>}, {pipeline_mode = #tpu.pipeline_mode<synchronous>, transform_indices = @transform_2, window_bounds = array<i64: 1, 512>}, {pipeline_mode = #tpu.pipeline_mode<synchronous>, transform_indices = @transform_3, window_bounds = array<i64: 1, 512>}, {pipeline_mode = #tpu.pipeline_mode<synchronous>, transform_indices = @transform_4, window_bounds = array<i64: 1, 512>}, {pipeline_mode = #tpu.pipeline_mode<synchronous>, transform_indices = @transform_5, window_bounds = array<i64: 512, 256>}, {pipeline_mode = #tpu.pipeline_mode<synchronous>, transform_indices = @transform_6, window_bounds = array<i64: 1, 256>}, {transform_indices = @transform_7, window_bounds = array<i64: 32, 256>}]} {
    %c0 = arith.constant 0 : index
    %c0_0 = arith.constant 0 : index
    %0 = vector.load %arg1[%c0, %c0_0] : memref<32x256xf32, #tpu.memory_space<vmem>>, vector<32x256xf32>
    %1 = arith.truncf %0 : vector<32x256xf32> to vector<32x256xbf16>
    %c0_1 = arith.constant 0 : index
    %c0_2 = arith.constant 0 : index
    %2 = vector.load %arg2[%c0_1, %c0_2] : memref<256x512xbf16, #tpu.memory_space<vmem>>, vector<256x512xbf16>
    %cst = arith.constant dense<0.000000e+00> : vector<32x512xf32>
    %3 = tpu.matmul %1, %2, %cst {dimension_numbers = #tpu.dot_dimension_numbers<[1], [0], [0], [1], [0, 0, 1, 1], [], []>} : vector<32x256xbf16>, vector<256x512xbf16>, vector<32x512xf32> -> vector<32x512xf32>
    %c0_3 = arith.constant 0 : index
    %c0_4 = arith.constant 0 : index
    %4 = vector.load %arg3[%c0_3, %c0_4] : memref<1x512xf32, #tpu.memory_space<vmem>>, vector<1x512xf32>
    %5 = vector.broadcast %4 : vector<1x512xf32> to vector<32x512xf32>
    %6 = arith.addf %3, %5 : vector<32x512xf32>
    %cst_5 = arith.constant 0.000000e+00 : f32
    %7 = vector.broadcast %cst_5 : f32 to vector<32x512xf32>
    %8 = arith.maximumf %6, %7 : vector<32x512xf32>
    %cst_6 = arith.constant dense<0.000000e+00> : vector<32xf32>
    %9 = vector.multi_reduction <add>, %8, %cst_6 [1] : vector<32x512xf32> to vector<32xf32>
    %10 = vector.shape_cast %9 : vector<32xf32> to vector<32x1xf32>
    %11 = arith.mulf %8, %8 : vector<32x512xf32>
    %cst_7 = arith.constant dense<0.000000e+00> : vector<32xf32>
    %12 = vector.multi_reduction <add>, %11, %cst_7 [1] : vector<32x512xf32> to vector<32xf32>
    %13 = vector.shape_cast %12 : vector<32xf32> to vector<32x1xf32>
    %cst_8 = arith.constant 0.001953125 : f32
    %14 = vector.broadcast %cst_8 : f32 to vector<32x1xf32>
    %15 = arith.mulf %10, %14 : vector<32x1xf32>
    %cst_9 = arith.constant 0.001953125 : f32
    %16 = vector.broadcast %cst_9 : f32 to vector<32x1xf32>
    %17 = arith.mulf %13, %16 : vector<32x1xf32>
    %18 = arith.mulf %15, %15 : vector<32x1xf32>
    %19 = arith.subf %17, %18 : vector<32x1xf32>
    %cst_10 = arith.constant 0.000000e+00 : f32
    %20 = vector.broadcast %cst_10 : f32 to vector<32x1xf32>
    %21 = arith.maximumf %19, %20 : vector<32x1xf32>
    %22 = vector.broadcast %15 : vector<32x1xf32> to vector<32x512xf32>
    %23 = arith.subf %8, %22 : vector<32x512xf32>
    %cst_11 = arith.constant 9.99999974E-6 : f32
    %24 = vector.broadcast %cst_11 : f32 to vector<32x1xf32>
    %25 = arith.addf %21, %24 : vector<32x1xf32>
    %26 = math.rsqrt %25 : vector<32x1xf32>
    %27 = vector.broadcast %26 : vector<32x1xf32> to vector<32x512xf32>
    %28 = arith.mulf %23, %27 : vector<32x512xf32>
    %c0_12 = arith.constant 0 : index
    %c0_13 = arith.constant 0 : index
    %29 = vector.load %arg4[%c0_12, %c0_13] : memref<1x512xf32, #tpu.memory_space<vmem>>, vector<1x512xf32>
    %30 = vector.broadcast %29 : vector<1x512xf32> to vector<32x512xf32>
    %31 = arith.mulf %28, %30 : vector<32x512xf32>
    %c0_14 = arith.constant 0 : index
    %c0_15 = arith.constant 0 : index
    %32 = vector.load %arg5[%c0_14, %c0_15] : memref<1x512xf32, #tpu.memory_space<vmem>>, vector<1x512xf32>
    %33 = vector.broadcast %32 : vector<1x512xf32> to vector<32x512xf32>
    %34 = arith.addf %31, %33 : vector<32x512xf32>
    %35 = arith.truncf %34 : vector<32x512xf32> to vector<32x512xbf16>
    %c0_16 = arith.constant 0 : index
    %c0_17 = arith.constant 0 : index
    %36 = vector.load %arg6[%c0_16, %c0_17] : memref<512x256xbf16, #tpu.memory_space<vmem>>, vector<512x256xbf16>
    %cst_18 = arith.constant dense<0.000000e+00> : vector<32x256xf32>
    %37 = tpu.matmul %35, %36, %cst_18 {dimension_numbers = #tpu.dot_dimension_numbers<[1], [0], [0], [1], [0, 0, 1, 1], [], []>} : vector<32x512xbf16>, vector<512x256xbf16>, vector<32x256xf32> -> vector<32x256xf32>
    %c0_19 = arith.constant 0 : index
    %c0_20 = arith.constant 0 : index
    %38 = vector.load %arg7[%c0_19, %c0_20] : memref<1x256xf32, #tpu.memory_space<vmem>>, vector<1x256xf32>
    %39 = vector.broadcast %38 : vector<1x256xf32> to vector<32x256xf32>
    %40 = arith.addf %37, %39 : vector<32x256xf32>
    %c0_21 = arith.constant 0 : index
    %c0_22 = arith.constant 0 : index
    %41 = vector.load %arg8[%c0_21, %c0_22] : memref<32x256xf32, #tpu.memory_space<vmem>>, vector<32x256xf32>
    tpu.vector_store %arg8[%c0_21, %c0_22], %40 {strides = array<i32>} : memref<32x256xf32, #tpu.memory_space<vmem>>, vector<32x256xf32>,
    return
  }
  func.func @transform_0(%arg0: i32) -> (i32, i32) {
    %c0_i32 = arith.constant 0 : i32
    %c0_i32_0 = arith.constant 0 : i32
    return %arg0, %c0_i32 : i32, i32
  }
  func.func @transform_1(%arg0: i32) -> (i32, i32) {
    %c0_i32 = arith.constant 0 : i32
    %c0_i32_0 = arith.constant 0 : i32
    %c0_i32_1 = arith.constant 0 : i32
    return %c0_i32, %c0_i32_0 : i32, i32
  }
  func.func @transform_2(%arg0: i32) -> (i32, i32) {
    %c0_i32 = arith.constant 0 : i32
    %c0_i32_0 = arith.constant 0 : i32
    %c0_i32_1 = arith.constant 0 : i32
    return %c0_i32, %c0_i32_0 : i32, i32
  }
  func.func @transform_3(%arg0: i32) -> (i32, i32) {
    %c0_i32 = arith.constant 0 : i32
    %c0_i32_0 = arith.constant 0 : i32
    %c0_i32_1 = arith.constant 0 : i32
    return %c0_i32, %c0_i32_0 : i32, i32
  }
  func.func @transform_4(%arg0: i32) -> (i32, i32) {
    %c0_i32 = arith.constant 0 : i32
    %c0_i32_0 = arith.constant 0 : i32
    %c0_i32_1 = arith.constant 0 : i32
    return %c0_i32, %c0_i32_0 : i32, i32
  }
  func.func @transform_5(%arg0: i32) -> (i32, i32) {
    %c0_i32 = arith.constant 0 : i32
    %c0_i32_0 = arith.constant 0 : i32
    %c0_i32_1 = arith.constant 0 : i32
    return %c0_i32, %c0_i32_0 : i32, i32
  }
  func.func @transform_6(%arg0: i32) -> (i32, i32) {
    %c0_i32 = arith.constant 0 : i32
    %c0_i32_0 = arith.constant 0 : i32
    %c0_i32_1 = arith.constant 0 : i32
    return %c0_i32, %c0_i32_0 : i32, i32
  }
  func.func @transform_7(%arg0: i32) -> (i32, i32) {
    %c0_i32 = arith.constant 0 : i32
    %c0_i32_0 = arith.constant 0 : i32
    return %arg0, %c0_i32 : i32, i32
  }
}

</mosaic_0001>

<bundles_post_ra>
// kernel: tpu_custom_call.1
= control target key start
LH: loop header
LB: loop body
LE: loop exit
PB: predicated region body
PF: predicated region fallthrough
CT: control target
= control target key end

     0   :  { %12 = vsyncpa [#allocation3], 0  ;;  %s2711_s0 = inlined_call_operand.hbm [shape: f32[32,256], index: 0, kind: input, shape index: {}]   ;;  %s2712_s1 = inlined_call_operand.hbm [shape: bf16[256,512], index: 1, kind: input, shape index: {}]   ;;  %s2713_s2 = inlined_call_operand.hbm [shape: f32[1,512], index: 2, kind: input, shape index: {}]   ;;  %s2714_s3 = inlined_call_operand.hbm [shape: f32[1,512], index: 3, kind: input, shape index: {}]   ;;  %s2715_s4 = inlined_call_operand.hbm [shape: f32[1,512], index: 4, kind: input, shape index: {}]   ;;  %s2716_s5 = inlined_call_operand.hbm [shape: bf16[512,256], index: 5, kind: input, shape index: {}]   ;;  %s2717_s6 = inlined_call_operand.vmem [shape: f32[1,256], index: 6, kind: input, shape index: {}]   ;;  %s2718_s7 = inlined_call_operand.hbm [shape: f32[32,256], index: 7, kind: output, shape index: {}]  }
   0x1   :  { %13 = vsyncpa [#allocation6], 0 }
   0x2   :  { %14 = vsyncpa [#allocation9], 0 }
   0x3   :  { %15 = vsyncpa [#allocation12], 0 }
   0x4   :  { %16 = vsyncpa [#allocation4], 0  ;;  %s34_s26 = sshll.u32 %s2712_s1, 4  ;;  %s2310_s27 = smov [#allocation5]   ;;  %s35_s26 = int_to_ptr.hbm [resolvable:$true] %s34_s26 }
   0x5   :  { %s36_s28 = sshll.u32 %s2310_s27, 4  ;;  %s59_s8 = sshll.u32 %s2714_s3, 4  ;;  %s37_s28 = int_to_ptr.vmem [resolvable:$true] %s36_s28  ;;  %s60_s8 = int_to_ptr.hbm [resolvable:$true] %s59_s8 }
   0x6   :  { %s2311_s9 = smov 256   ;;  %s2312_s10 = smov 16  }
   0x7   :  { %42 = dma.hbm_to_vmem [thread:$0]  %s35_s26, 8192, %s37_s28, [#allocation6], %s2311_s9, %s2311_s9, %s2312_s10  }
   0x8   :  { %s2313_s11 = smov [#allocation8]   ;;  %s21_s1 = sshll.u32 %s2711_s0, 4  ;;  %s22_s1 = int_to_ptr.hbm [resolvable:$true] %s21_s1 }
   0x9   :  { %s61_s12 = sshll.u32 %s2313_s11, 4  ;;  %s48_s3 = sshll.u32 %s2713_s2, 4  ;;  %s62_s12 = int_to_ptr.vmem [resolvable:$true] %s61_s12  ;;  %s49_s3 = int_to_ptr.hbm [resolvable:$true] %s48_s3 }
   0xa   :  { %64 = dma.hbm_to_vmem [thread:$0]  %s60_s8, 64, %s62_s12, [#allocation9]  }
   0xb   :  { %s2314_s17 = smov [#allocation2]   ;;  %s2315_s19 = smov [#allocation7]  }
   0xc   :  { %s23_s18 = sshll.u32 %s2314_s17, 4  ;;  %s50_s20 = sshll.u32 %s2315_s19, 4  ;;  %s24_s18 = int_to_ptr.vmem [resolvable:$true] %s23_s18  ;;  %s51_s20 = int_to_ptr.vmem [resolvable:$true] %s50_s20 }
   0xd   :  { %29 = dma.hbm_to_vmem [thread:$0]  %s22_s1, 1024, %s24_s18, [#allocation3], %s2311_s9, %s2311_s9, %s2312_s10  }
   0xe   :  { %s70_s0 = sshll.u32 %s2715_s4, 4  ;;  %s80_s2 = sshll.u32 %s2716_s5, 4  ;;  %s71_s0 = int_to_ptr.hbm [resolvable:$true] %s70_s0  ;;  %s81_s2 = int_to_ptr.hbm [resolvable:$true] %s80_s2 }
   0xf   :  { %53 = dma.hbm_to_vmem [thread:$0]  %s49_s3, 64, %s51_s20, [#allocation6]  }
  0x10   :  { %s2316_s25 = smov [#allocation10]   ;;  %s2317_s27 = smov [#allocation11]  }
  0x11   :  { %s72_s26 = sshll.u32 %s2316_s25, 4  ;;  %s82_s28 = sshll.u32 %s2317_s27, 4  ;;  %s73_s26 = int_to_ptr.vmem [resolvable:$true] %s72_s26  ;;  %s83_s28 = int_to_ptr.vmem [resolvable:$true] %s82_s28 }
  0x12   :  { %75 = dma.hbm_to_vmem [thread:$0]  %s71_s0, 64, %s73_s26, [#allocation9]  }
  0x13   :  { %s2318_s29 = smov 128   ;;  %s2319_s30 = smov 8  }
  0x14   :  { %88 = dma.hbm_to_vmem [thread:$0]  %s81_s2, 8192, %s83_s28, [#allocation12], %s2318_s29, %s2318_s29, %s2319_s30  }
  0x15   :  { %2300 = dma.done.wait [#allocation3], 1024  }
  0x16   :  { %2301 = vsyncadd [#allocation3], 4294966272 }
  0x17   :  { %2302 = dma.done.wait [#allocation6], 8256  }
  0x18   :  { %2303 = vsyncadd [#allocation6], 4294959040 }
  0x19   :  { %2304 = dma.done.wait [#allocation9], 128  }
  0x1a   :  { %2305 = vsyncadd [#allocation9], 4294967168 }
  0x1b   :  { %2306 = dma.done.wait [#allocation12], 8192  }
  0x1c   :  { %2307 = vsyncadd [#allocation12], 4294959104  ;;  %v1587_v0 = vld [vmem:[#allocation5 + $0xe0] sm:$0xf]  ;;  %v2015_v1 = vld [vmem:[#allocation5 + $0xec] sm:$0xf0] }
  0x1d   :  { %v1715_v2 = vld [vmem:[#allocation5 + $0x1e0] sm:$0xf]  ;;  %v1588_v3 = vor.u32 %v2015_v1, %v1587_v0  ;;  %v2047_v4 = vld [vmem:[#allocation5 + $0x1ec] sm:$0xf0]  ;;  %v2013_v5 = vld [vmem:[#allocation5 + $0xe4] sm:$0xf] }
  0x1e   :  { %v1589_v6 = vld [vmem:[#allocation5 + $0xf0] sm:$0xf0]  ;;  %v1716_v7 = vor.u32 %v2047_v4, %v1715_v2  ;;  %v2045_v9 = vld [vmem:[#allocation5 + $0x1e4] sm:$0xf]  ;;  %v1571_v11 = vld [vmem:[#allocation5 + $0xc0] sm:$0xf] }
  0x1f   :  { %v1592_v8 = vor.u32 %v2013_v5, %v1589_v6  ;;  %v1717_v10 = vld [vmem:[#allocation5 + $0x1f0] sm:$0xf0]  ;;  %521 = vmatpush.bf16.msra.mxu0 %v1588_v3  ;;  %v2011_v13 = vld [vmem:[#allocation5 + $0xcc] sm:$0xf0]  ;;  %v1699_v14 = vld [vmem:[#allocation5 + $0x1c0] sm:$0xf] }
  0x20   :  { %v1720_v12 = vor.u32 %v2045_v9, %v1717_v10  ;;  %v2043_v15 = vld [vmem:[#allocation5 + $0x1cc] sm:$0xf0]  ;;  %540 = vmatpush.bf16.msra.mxu1 %v1716_v7  ;;  %v1572_v16 = vor.u32 %v2011_v13, %v1571_v11  ;;  %v2009_v18 = vld [vmem:[#allocation5 + $0xc4] sm:$0xf]  ;;  %v1573_v19 = vld [vmem:[#allocation5 + $0xd0] sm:$0xf0] }
  0x21   :  { %559 = vmatpush.bf16.msra.mxu2 %v1592_v8  ;;  %v1700_v17 = vor.u32 %v2043_v15, %v1699_v14  ;;  %v2041_v20 = vld [vmem:[#allocation5 + $0x1c4] sm:$0xf]  ;;  %v1576_v21 = vor.u32 %v2009_v18, %v1573_v19  ;;  %v1701_v22 = vld [vmem:[#allocation5 + $0x1d0] sm:$0xf0]  ;;  %v1555_v23 = vld [vmem:[#allocation5 + $0xa0] sm:$0xf] }
  0x22   :  { %578 = vmatpush.bf16.msra.mxu3 %v1720_v12  ;;  %v2007_v24 = vld [vmem:[#allocation5 + $0xac] sm:$0xf0]  ;;  %v1704_v25 = vor.u32 %v2041_v20, %v1701_v22  ;;  %v1683_v26 = vld [vmem:[#allocation5 + $0x1a0] sm:$0xf]  ;;  %v2005_v28 = vld [vmem:[#allocation5 + $0xa4] sm:$0xf] }
  0x23   :  { %v2039_v27 = vld [vmem:[#allocation5 + $0x1ac] sm:$0xf0]  ;;  %522 = vmatpush.bf16.msra.mxu0 %v1572_v16  ;;  %v1556_v29 = vor.u32 %v2007_v24, %v1555_v23  ;;  %v1557_v30 = vld [vmem:[#allocation5 + $0xb0] sm:$0xf0]  ;;  %v2037_v31 = vld [vmem:[#allocation5 + $0x1a4] sm:$0xf] }
  0x24   :  { %v1685_v32 = vld [vmem:[#allocation5 + $0x1b0] sm:$0xf0]  ;;  %541 = vmatpush.bf16.msra.mxu1 %v1700_v17  ;;  %v1684_v33 = vor.u32 %v2039_v27, %v1683_v26  ;;  %v1560_v34 = vor.u32 %v2005_v28, %v1557_v30  ;;  %v1539_v35 = vld [vmem:[#allocation5 + $0x80] sm:$0xf]  ;;  %v2003_v36 = vld [vmem:[#allocation5 + $0x8c] sm:$0xf0] }
  0x25   :  { %560 = vmatpush.bf16.msra.mxu2 %v1576_v21  ;;  %v1667_v37 = vld [vmem:[#allocation5 + $0x180] sm:$0xf]  ;;  %v1688_v38 = vor.u32 %v2037_v31, %v1685_v32  ;;  %v2035_v39 = vld [vmem:[#allocation5 + $0x18c] sm:$0xf0]  ;;  %v2001_v40 = vld [vmem:[#allocation5 + $0x84] sm:$0xf]  ;;  %v1540_v44 = vor.u32 %v2003_v36, %v1539_v35 }
  0x26   :  { %579 = vmatpush.bf16.msra.mxu3 %v1704_v25  ;;  %v1541_v41 = vld [vmem:[#allocation5 + $0x90] sm:$0xf0]  ;;  %v2033_v42 = vld [vmem:[#allocation5 + $0x184] sm:$0xf]  ;;  %v1668_v45 = vor.u32 %v2035_v39, %v1667_v37  ;;  %v1523_v47 = vld [vmem:[#allocation5 + $0x60] sm:$0xf] }
  0x27   :  { %v1669_v43 = vld [vmem:[#allocation5 + $0x190] sm:$0xf0]  ;;  %523 = vmatpush.bf16.msra.mxu0 %v1556_v29  ;;  %v1544_v46 = vor.u32 %v2001_v40, %v1541_v41  ;;  %v1999_v48 = vld [vmem:[#allocation5 + $0x6c] sm:$0xf0]  ;;  %v1651_v49 = vld [vmem:[#allocation5 + $0x160] sm:$0xf] }
  0x28   :  { %542 = vmatpush.bf16.msra.mxu1 %v1684_v33  ;;  %v1672_v50 = vor.u32 %v2033_v42, %v1669_v43  ;;  %v2031_v51 = vld [vmem:[#allocation5 + $0x16c] sm:$0xf0]  ;;  %v1997_v52 = vld [vmem:[#allocation5 + $0x64] sm:$0xf]  ;;  %v1525_v53 = vld [vmem:[#allocation5 + $0x70] sm:$0xf0]  ;;  %v1524_v56 = vor.u32 %v1999_v48, %v1523_v47 }
  0x29   :  { %561 = vmatpush.bf16.msra.mxu2 %v1560_v34  ;;  %v2029_v54 = vld [vmem:[#allocation5 + $0x164] sm:$0xf]  ;;  %v1653_v55 = vld [vmem:[#allocation5 + $0x170] sm:$0xf0]  ;;  %v1652_v57 = vor.u32 %v2031_v51, %v1651_v49  ;;  %v1528_v58 = vor.u32 %v1997_v52, %v1525_v53  ;;  %v1507_v59 = vld [vmem:[#allocation5 + $0x40] sm:$0xf] }
  0x2a   :  { %580 = vmatpush.bf16.msra.mxu3 %v1688_v38  ;;  %v1995_v60 = vld [vmem:[#allocation5 + $0x4c] sm:$0xf0]  ;;  %v1635_v61 = vld [vmem:[#allocation5 + $0x140] sm:$0xf]  ;;  %v1656_v62 = vor.u32 %v2029_v54, %v1653_v55  ;;  %v1993_v0 = vld [vmem:[#allocation5 + $0x44] sm:$0xf] }
  0x2b   :  { %524 = vmatpush.bf16.msra.mxu0 %v1540_v44  ;;  %v2027_v63 = vld [vmem:[#allocation5 + $0x14c] sm:$0xf0]  ;;  %v1509_v1 = vld [vmem:[#allocation5 + $0x50] sm:$0xf0]  ;;  %v2025_v2 = vld [vmem:[#allocation5 + $0x144] sm:$0xf]  ;;  %v1508_v4 = vor.u32 %v1995_v60, %v1507_v59 }
  0x2c   :  { %543 = vmatpush.bf16.msra.mxu1 %v1668_v45  ;;  %v1637_v3 = vld [vmem:[#allocation5 + $0x150] sm:$0xf0]  ;;  %v1636_v5 = vor.u32 %v2027_v63, %v1635_v61  ;;  %v1512_v6 = vor.u32 %v1993_v0, %v1509_v1  ;;  %v1491_v7 = vld [vmem:[#allocation5 + $0x20] sm:$0xf]  ;;  %v1991_v8 = vld [vmem:[#allocation5 + $0x2c] sm:$0xf0] }
  0x2d   :  { %562 = vmatpush.bf16.msra.mxu2 %v1544_v46  ;;  %v1619_v9 = vld [vmem:[#allocation5 + $0x120] sm:$0xf]  ;;  %v1640_v10 = vor.u32 %v2025_v2, %v1637_v3  ;;  %v2023_v11 = vld [vmem:[#allocation5 + $0x12c] sm:$0xf0]  ;;  %v1989_v12 = vld [vmem:[#allocation5 + $0x24] sm:$0xf]  ;;  %v1492_v16 = vor.u32 %v1991_v8, %v1491_v7 }
  0x2e   :  { %581 = vmatpush.bf16.msra.mxu3 %v1672_v50  ;;  %v1493_v13 = vld [vmem:[#allocation5 + $0x30] sm:$0xf0]  ;;  %v2021_v14 = vld [vmem:[#allocation5 + $0x124] sm:$0xf]  ;;  %v1475_v17 = vld [vmem:[#allocation5] sm:$0xf]  ;;  %v1620_v19 = vor.u32 %v2023_v11, %v1619_v9 }
  0x2f   :  { %525 = vmatpush.bf16.msra.mxu0 %v1524_v56  ;;  %v1621_v15 = vld [vmem:[#allocation5 + $0x130] sm:$0xf0]  ;;  %v1987_v18 = vld [vmem:[#allocation5 + $0xc] sm:$0xf0]  ;;  %v1496_v20 = vor.u32 %v1989_v12, %v1493_v13  ;;  %v1603_v21 = vld [vmem:[#allocation5 + $0x100] sm:$0xf] }
  0x30   :  { %544 = vmatpush.bf16.msra.mxu1 %v1652_v57  ;;  %v2019_v22 = vld [vmem:[#allocation5 + $0x10c] sm:$0xf0]  ;;  %v1985_v23 = vld [vmem:[#allocation5 + $0x4] sm:$0xf]  ;;  %v1624_v24 = vor.u32 %v2021_v14, %v1621_v15  ;;  %v1477_v25 = vld [vmem:[#allocation5 + $0x10] sm:$0xf0]  ;;  %v1476_v31 = vor.u32 %v1987_v18, %v1475_v17 }
  0x31   :  { %563 = vmatpush.bf16.msra.mxu2 %v1528_v58  ;;  %v2017_v26 = vld [vmem:[#allocation5 + $0x104] sm:$0xf]  ;;  %v1605_v27 = vld [vmem:[#allocation5 + $0x110] sm:$0xf0]  ;;  %v2014_v29 = vld [vmem:[#allocation5 + $0xec] sm:$0xf]  ;;  %v1604_v35 = vor.u32 %v2019_v22, %v1603_v21  ;;  %v1480_v36 = vor.u32 %v1985_v23, %v1477_v25 }
  0x32   :  { %582 = vmatpush.bf16.msra.mxu3 %v1656_v62  ;;  %v115_v28 = vld [vmem:[#allocation2] sm:$0xff]  ;;  %v1597_v30 = vld [vmem:[#allocation5 + $0xf8] sm:$0xf0]  ;;  %v117_v32 = vld [vmem:[#allocation2 + $0x10] sm:$0xff]  ;;  %v1608_v39 = vor.u32 %v2017_v26, %v1605_v27  ;;  %s1457_s13 = sshll.u32 %s2718_s7, 4  ;;  %s1458_s13 = int_to_ptr.hbm [resolvable:$true] %s1457_s13 }
  0x33   :  { %526 = vmatpush.bf16.msra.mxu0 %v1508_v4  ;;  %v1723_v33 = vld [vmem:[#allocation5 + $0x1e8] sm:$0xf]  ;;  %v2048_v34 = vld [vmem:[#allocation5 + $0x1f4] sm:$0xf0]  ;;  %v1600_v40 = vor.u32 %v2014_v29, %v1597_v30  ;;  %v2046_v43 = vld [vmem:[#allocation5 + $0x1ec] sm:$0xf]  ;;  %v2385_v44 = vpack.c.bf16 %v117_v32, %v115_v28 }
  0x34   :  { %545 = vmatpush.bf16.msra.mxu1 %v1636_v5  ;;  %v116_v37 = vld [vmem:[#allocation2 + $0x8] sm:$0xff]  ;;  %v118_v38 = vld [vmem:[#allocation2 + $0x18] sm:$0xff]  ;;  %v1724_v45 = vor.u32 %v2048_v34, %v1723_v33  ;;  %v121_v23 = vld [vmem:[#allocation2 + $0x30] sm:$0xff] }
  0x35   :  { %564 = vmatpush.bf16.msra.mxu2 %v1512_v6  ;;  %v1595_v41 = vld [vmem:[#allocation5 + $0xe8] sm:$0xf]  ;;  %v2016_v42 = vld [vmem:[#allocation5 + $0xf4] sm:$0xf0]  ;;  %v1725_v46 = vld [vmem:[#allocation5 + $0x1f8] sm:$0xf0]  ;;  %v2387_v49 = vpack.c.bf16 %v118_v38, %v116_v37 }
  0x36   :  { %583 = vmatpush.bf16.msra.mxu3 %v1640_v10  ;;  %v2010_v47 = vld [vmem:[#allocation5 + $0xcc] sm:$0xf]  ;;  %v1581_v48 = vld [vmem:[#allocation5 + $0xd8] sm:$0xf0]  ;;  %v1707_v50 = vld [vmem:[#allocation5 + $0x1c8] sm:$0xf]  ;;  %v1596_v52 = vor.u32 %v2016_v42, %v1595_v41  ;;  %v1728_v53 = vor.u32 %v2046_v43, %v1725_v46 }
  0x37   :  { %527 = vmatpush.bf16.msra.mxu0 %v1492_v16  ;;  %v2044_v51 = vld [vmem:[#allocation5 + $0x1d4] sm:$0xf0]  ;;  %v1584_v54 = vor.u32 %v2010_v47, %v1581_v48  ;;  %v1579_v55 = vld [vmem:[#allocation5 + $0xc8] sm:$0xf]  ;;  %v2042_v57 = vld [vmem:[#allocation5 + $0x1cc] sm:$0xf] }
  0x38   :  { %546 = vmatpush.bf16.msra.mxu1 %v1620_v19  ;;  %v2012_v56 = vld [vmem:[#allocation5 + $0xd4] sm:$0xf0]  ;;  %v1708_v58 = vor.u32 %v2044_v51, %v1707_v50  ;;  %v1709_v59 = vld [vmem:[#allocation5 + $0x1d8] sm:$0xf0]  ;;  %v2006_v60 = vld [vmem:[#allocation5 + $0xac] sm:$0xf] }
  0x39   :  { %565 = vmatpush.bf16.msra.mxu2 %v1496_v20  ;;  %v1565_v61 = vld [vmem:[#allocation5 + $0xb8] sm:$0xf0]  ;;  %v1691_v62 = vld [vmem:[#allocation5 + $0x1a8] sm:$0xf]  ;;  %v2040_v63 = vld [vmem:[#allocation5 + $0x1b4] sm:$0xf0]  ;;  %v1580_v0 = vor.u32 %v2012_v56, %v1579_v55  ;;  %v1712_v1 = vor.u32 %v2042_v57, %v1709_v59 }
  0x3a   :  { %584 = vmatpush.bf16.msra.mxu3 %v1624_v24  ;;  %v1568_v2 = vor.u32 %v2006_v60, %v1565_v61  ;;  %v1563_v3 = vld [vmem:[#allocation5 + $0xa8] sm:$0xf]  ;;  %v2008_v4 = vld [vmem:[#allocation5 + $0xb4] sm:$0xf0]  ;;  %v2038_v5 = vld [vmem:[#allocation5 + $0x1ac] sm:$0xf]  ;;  %v1692_v6 = vor.u32 %v2040_v63, %v1691_v62 }
  0x3b   :  { %528 = vmatpush.bf16.msra.mxu0 %v1476_v31  ;;  %v1693_v7 = vld [vmem:[#allocation5 + $0x1b8] sm:$0xf0]  ;;  %v2002_v8 = vld [vmem:[#allocation5 + $0x8c] sm:$0xf]  ;;  %v1675_v10 = vld [vmem:[#allocation5 + $0x188] sm:$0xf]  ;;  %v1564_v12 = vor.u32 %v2008_v4, %v1563_v3 }
  0x3c   :  { %547 = vmatpush.bf16.msra.mxu1 %v1604_v35  ;;  %v1549_v9 = vld [vmem:[#allocation5 + $0x98] sm:$0xf0]  ;;  %v2036_v11 = vld [vmem:[#allocation5 + $0x194] sm:$0xf0]  ;;  %v1547_v13 = vld [vmem:[#allocation5 + $0x88] sm:$0xf]  ;;  %v1696_v14 = vor.u32 %v2038_v5, %v1693_v7 }
  0x3d   :  { %566 = vmatpush.bf16.msra.mxu2 %v1480_v36  ;;  %v1552_v15 = vor.u32 %v2002_v8, %v1549_v9  ;;  %v2004_v16 = vld [vmem:[#allocation5 + $0x94] sm:$0xf0]  ;;  %v2034_v17 = vld [vmem:[#allocation5 + $0x18c] sm:$0xf]  ;;  %v1677_v18 = vld [vmem:[#allocation5 + $0x198] sm:$0xf0]  ;;  %v1676_v19 = vor.u32 %v2036_v11, %v1675_v10 }
  0x3e   :  { %585 = vmatpush.bf16.msra.mxu3 %v1608_v39  ;;  %529 = vmatmul.bf16.vlgmr.msra.gmra.mxu0 %v2385_v44  ;;  %v119_v20 = vld [vmem:[#allocation2 + $0x20] sm:$0xff]  ;;  %v1998_v21 = vld [vmem:[#allocation5 + $0x6c] sm:$0xf]  ;;  %v1533_v22 = vld [vmem:[#allocation5 + $0x78] sm:$0xf0]  ;;  %v1548_v26 = vor.u32 %v2004_v16, %v1547_v13  ;;  %v1680_v29 = vor.u32 %v2034_v17, %v1677_v18 }
  0x3f   :  { %548 = vmatmul.bf16.vlgmr.msra.gmra.mxu1 %v2387_v49  ;;  %597 = vmatpush.bf16.msrb.mxu0 %v1596_v52  ;;  %v1659_v24 = vld [vmem:[#allocation5 + $0x168] sm:$0xf]  ;;  %v2032_v25 = vld [vmem:[#allocation5 + $0x174] sm:$0xf0]  ;;  %v1536_v30 = vor.u32 %v1998_v21, %v1533_v22  ;;  %v2030_v33 = vld [vmem:[#allocation5 + $0x16c] sm:$0xf]  ;;  %v2393_v34 = vpack.c.bf16 %v121_v23, %v119_v20 }
  0x40   :  { %616 = vmatpush.bf16.msrb.mxu1 %v1724_v45  ;;  %567 = vmatmul.bf16.vlgmr.msra.gmra.mxu2 %v2385_v44  ;;  %v120_v27 = vld [vmem:[#allocation2 + $0x28] sm:$0xff]  ;;  %v122_v28 = vld [vmem:[#allocation2 + $0x38] sm:$0xff]  ;;  %v1660_v35 = vor.u32 %v2032_v25, %v1659_v24 }
  0x41   :  { %635 = vmatpush.bf16.msrb.mxu2 %v1600_v40  ;;  %586 = vmatmul.bf16.vlgmr.msra.gmra.mxu3 %v2387_v49  ;;  %v1531_v31 = vld [vmem:[#allocation5 + $0x68] sm:$0xf]  ;;  %v2000_v32 = vld [vmem:[#allocation5 + $0x74] sm:$0xf0]  ;;  %v1661_v36 = vld [vmem:[#allocation5 + $0x178] sm:$0xf0]  ;;  %v2395_v39 = vpack.c.bf16 %v122_v28, %v120_v27 }
  0x42   :  { %654 = vmatpush.bf16.msrb.mxu3 %v1728_v53  ;;  %v1994_v37 = vld [vmem:[#allocation5 + $0x4c] sm:$0xf]  ;;  %v1517_v38 = vld [vmem:[#allocation5 + $0x58] sm:$0xf0]  ;;  %v1643_v40 = vld [vmem:[#allocation5 + $0x148] sm:$0xf]  ;;  %v1532_v42 = vor.u32 %v2000_v32, %v1531_v31  ;;  %v1664_v43 = vor.u32 %v2030_v33, %v1661_v36 }
  0x43   :  { %598 = vmatpush.bf16.msrb.mxu0 %v1580_v0  ;;  %v2028_v41 = vld [vmem:[#allocation5 + $0x154] sm:$0xf0]  ;;  %v1520_v45 = vor.u32 %v1994_v37, %v1517_v38  ;;  %v1515_v46 = vld [vmem:[#allocation5 + $0x48] sm:$0xf]  ;;  %v2026_v48 = vld [vmem:[#allocation5 + $0x14c] sm:$0xf] }
  0x44   :  { %617 = vmatpush.bf16.msrb.mxu1 %v1708_v58  ;;  %v1996_v47 = vld [vmem:[#allocation5 + $0x54] sm:$0xf0]  ;;  %v1644_v50 = vor.u32 %v2028_v41, %v1643_v40  ;;  %v1645_v51 = vld [vmem:[#allocation5 + $0x158] sm:$0xf0]  ;;  %v1990_v52 = vld [vmem:[#allocation5 + $0x2c] sm:$0xf] }
  0x45   :  { %636 = vmatpush.bf16.msrb.mxu2 %v1584_v54  ;;  %v1501_v53 = vld [vmem:[#allocation5 + $0x38] sm:$0xf0]  ;;  %v1627_v54 = vld [vmem:[#allocation5 + $0x128] sm:$0xf]  ;;  %v2024_v55 = vld [vmem:[#allocation5 + $0x134] sm:$0xf0]  ;;  %v1516_v56 = vor.u32 %v1996_v47, %v1515_v46  ;;  %v1648_v57 = vor.u32 %v2026_v48, %v1645_v51 }
  0x46   :  { %655 = vmatpush.bf16.msrb.mxu3 %v1712_v1  ;;  %v1504_v58 = vor.u32 %v1990_v52, %v1501_v53  ;;  %v1499_v59 = vld [vmem:[#allocation5 + $0x28] sm:$0xf]  ;;  %v1992_v60 = vld [vmem:[#allocation5 + $0x34] sm:$0xf0]  ;;  %v2022_v61 = vld [vmem:[#allocation5 + $0x12c] sm:$0xf]  ;;  %v1628_v62 = vor.u32 %v2024_v55, %v1627_v54 }
  0x47   :  { %599 = vmatpush.bf16.msrb.mxu0 %v1564_v12  ;;  %v1629_v63 = vld [vmem:[#allocation5 + $0x138] sm:$0xf0]  ;;  %v1986_v0 = vld [vmem:[#allocation5 + $0xc] sm:$0xf]  ;;  %v2020_v3 = vld [vmem:[#allocation5 + $0x114] sm:$0xf0]  ;;  %v1500_v4 = vor.u32 %v1992_v60, %v1499_v59 }
  0x48   :  { %618 = vmatpush.bf16.msrb.mxu1 %v1692_v6  ;;  %v1485_v1 = vld [vmem:[#allocation5 + $0x18] sm:$0xf0]  ;;  %v1632_v5 = vor.u32 %v2022_v61, %v1629_v63  ;;  %v1483_v7 = vld [vmem:[#allocation5 + $0x8] sm:$0xf]  ;;  %v1988_v8 = vld [vmem:[#allocation5 + $0x14] sm:$0xf0] }
  0x49   :  { %637 = vmatpush.bf16.msrb.mxu2 %v1568_v2  ;;  %v1611_v2 = vld [vmem:[#allocation5 + $0x108] sm:$0xf]  ;;  %v1488_v6 = vor.u32 %v1986_v0, %v1485_v1  ;;  %v2018_v10 = vld [vmem:[#allocation5 + $0x10c] sm:$0xf]  ;;  %v1613_v11 = vld [vmem:[#allocation5 + $0x118] sm:$0xf0]  ;;  %v1484_v12 = vor.u32 %v1988_v8, %v1483_v7 }
  0x4a   :  { %656 = vmatpush.bf16.msrb.mxu3 %v1696_v14  ;;  %v1612_v9 = vor.u32 %v2020_v3, %v1611_v2  ;;  %v1616_v13 = vor.u32 %v2018_v10, %v1613_v11 }
  0x4b   :  { %600 = vmatpush.bf16.msrb.mxu0 %v1548_v26 }
  0x4c   :  { %619 = vmatpush.bf16.msrb.mxu1 %v1676_v19 }
  0x4d   :  { %638 = vmatpush.bf16.msrb.mxu2 %v1552_v15 }
  0x4e   :  { %657 = vmatpush.bf16.msrb.mxu3 %v1680_v29  ;;  %534 = vmatmul.bf16.gmra.mxu0 %v2393_v34 }
  0x4f   :  { %553 = vmatmul.bf16.gmra.mxu1 %v2395_v39  ;;  %601 = vmatpush.bf16.msrb.mxu0 %v1532_v42 }
  0x50   :  { %620 = vmatpush.bf16.msrb.mxu1 %v1660_v35  ;;  %572 = vmatmul.bf16.gmra.mxu2 %v2393_v34 }
  0x51   :  { %639 = vmatpush.bf16.msrb.mxu2 %v1536_v30  ;;  %591 = vmatmul.bf16.gmra.mxu3 %v2395_v39 }
  0x52   :  { %658 = vmatpush.bf16.msrb.mxu3 %v1664_v43 }
  0x53   :  { %602 = vmatpush.bf16.msrb.mxu0 %v1516_v56 }
  0x54   :  { %621 = vmatpush.bf16.msrb.mxu1 %v1644_v50 }
  0x55   :  { %640 = vmatpush.bf16.msrb.mxu2 %v1520_v45 }
  0x56   :  { %659 = vmatpush.bf16.msrb.mxu3 %v1648_v57 }
  0x57   :  { %603 = vmatpush.bf16.msrb.mxu0 %v1500_v4 }
  0x58   :  { %622 = vmatpush.bf16.msrb.mxu1 %v1628_v62 }
  0x59   :  { %641 = vmatpush.bf16.msrb.mxu2 %v1504_v58 }
  0x5a   :  { %660 = vmatpush.bf16.msrb.mxu3 %v1632_v5 }
  0x5b   :  { %604 = vmatpush.bf16.msrb.mxu0 %v1484_v12 }
  0x5c   :  { %623 = vmatpush.bf16.msrb.mxu1 %v1612_v9 }
  0x5d   :  { %642 = vmatpush.bf16.msrb.mxu2 %v1488_v6 }
  0x5e   :  { %661 = vmatpush.bf16.msrb.mxu3 %v1616_v13  ;;  %605 = vmatmul.bf16.vlgmr.msrb.gmra.mxu0 %v2385_v44 }
  0x5f   :  { %624 = vmatmul.bf16.vlgmr.msrb.gmra.mxu1 %v2387_v49 }
  0x60   :  { %643 = vmatmul.bf16.vlgmr.msrb.gmra.mxu2 %v2385_v44 }
  0x61   :  { %662 = vmatmul.bf16.vlgmr.msrb.gmra.mxu3 %v2387_v49  ;;  %v191_v49 = vld [vmem:[#allocation7] sm:$0xf] }
  0x62   :  { %v2411_v26 = vperm.slane %v191_v49, 1  ;;  %v2415_v28 = vperm.slane %v191_v49, 0  ;;  %v2418_v30 = vperm.slane %v191_v49, 2  ;;  %v2427_v42 = vperm.slane %v191_v49, 3 }
  0x6e   :  { %610 = vmatmul.bf16.gmra.mxu0 %v2393_v34 }
  0x6f   :  { %629 = vmatmul.bf16.gmra.mxu1 %v2395_v39 }
  0x70   :  { %648 = vmatmul.bf16.gmra.mxu2 %v2393_v34 }
  0x71   :  { %667 = vmatmul.bf16.gmra.mxu3 %v2395_v39 }
  0xbb   :  { %v530_v14 = vpop.f32.mrf.mxu0 }
  0xbc   :  { %v549_v15 = vpop.f32.mrf.mxu1  ;;  %v531_v31 = vadd.f32 %v530_v14, %v2415_v28 }
  0xbe   :  { %v550_v38 = vadd.f32 %v549_v15, %v531_v31 }
  0xc0   :  { %v2430_v45 = vmax.f32 %v550_v38, 0.0 }
  0xc2   :  { %v709_v57 = vmul.f32 %v2430_v45, %v2430_v45 }
  0xc3   :  { %v568_v16 = vpop.f32.mrf.mxu2  ;;  %v532_v18 = vpop.f32.mrf.mxu0 }
  0xc4   :  { %v587_v17 = vpop.f32.mrf.mxu3  ;;  %v551_v19 = vpop.f32.mrf.mxu1  ;;  %v569_v29 = vadd.f32 %v568_v16, %v2411_v26  ;;  %v533_v43 = vadd.f32 %v532_v18, %v2415_v28 }
  0xc6   :  { %v588_v34 = vadd.f32 %v587_v17, %v569_v29  ;;  %v552_v55 = vadd.f32 %v551_v19, %v533_v43 }
  0xc8   :  { %v2425_v41 = vmax.f32 %v588_v34, 0.0  ;;  %v2450_v3 = vmax.f32 %v552_v55, 0.0 }
  0xca   :  { %v710_v51 = vmul.f32 %v2425_v41, %v2425_v41  ;;  %v689_v59 = vadd.f32 %v2425_v41, %v2430_v45  ;;  %v713_v17 = vmul.f32 %v2450_v3, %v2450_v3 }
  0xcb   :  { %v570_v20 = vpop.f32.mrf.mxu2  ;;  %v535_v22 = vpop.f32.mrf.mxu0 }
  0xcc   :  { %v589_v21 = vpop.f32.mrf.mxu3  ;;  %v554_v44 = vpop.f32.mrf.mxu1  ;;  %v571_v39 = vadd.f32 %v570_v20, %v2411_v26  ;;  %v725_v2 = vadd.f32 %v710_v51, %v709_v57  ;;  %v536_v4 = vadd.f32 %v535_v22, %v2415_v28 }
  0xce   :  { %v590_v47 = vadd.f32 %v589_v21, %v571_v39  ;;  %v555_v18 = vadd.f32 %v554_v44, %v536_v4 }
  0xd0   :  { %v2444_v61 = vmax.f32 %v590_v47, 0.0  ;;  %v2474_v34 = vmax.f32 %v555_v18, 0.0  ;;  %v1915_v18 = vld [vmem:[#allocation11 + $0x170] sm:$0xf] }
  0xd2   :  { %v714_v9 = vmul.f32 %v2444_v61, %v2444_v61  ;;  %v694_v21 = vadd.f32 %v2444_v61, %v2450_v3  ;;  %v717_v51 = vmul.f32 %v2474_v34, %v2474_v34 }
  0xd3   :  { %v573_v23 = vpop.f32.mrf.mxu2  ;;  %v2409_v25 = vpop.f32.mrf.mxu0 }
  0xd4   :  { %v592_v24 = vpop.f32.mrf.mxu3  ;;  %v2413_v27 = vpop.f32.mrf.mxu1  ;;  %v574_v63 = vadd.f32 %v573_v23, %v2411_v26  ;;  %v730_v49 = vadd.f32 %v714_v9, %v713_v17 }
  0xd6   :  { %v593_v12 = vadd.f32 %v592_v24, %v574_v63 }
  0xd8   :  { %v2468_v24 = vmax.f32 %v593_v12, 0.0 }
  0xdb   :  { %v575_v32 = vpop.f32.mrf.mxu2  ;;  %v606_v35 = vpop.f32.mrf.mxu0 }
  0xdc   :  { %v2421_v33 = vpop.f32.mrf.mxu3  ;;  %v625_v36 = vpop.f32.mrf.mxu1  ;;  %v607_v37 = vadd.f32 %v606_v35, %v2418_v30  ;;  %v576_v29 = vadd.f32 %v575_v32, %v2411_v26  ;;  %v538_v35 = vadd.f32 %v2409_v25, %v2415_v28  ;;  %v718_v26 = vmul.f32 %v2468_v24, %v2468_v24 }
  0xde   :  { %v626_v40 = vadd.f32 %v625_v36, %v607_v37  ;;  %v595_v32 = vadd.f32 %v2421_v33, %v576_v29  ;;  %v557_v28 = vadd.f32 %v2413_v27, %v538_v35  ;;  %v1979_v35 = vld [vmem:[#allocation11 + $0x1f0] sm:$0xf] }
  0xe0   :  { %v2432_v46 = vmax.f32 %v626_v40, 0.0 }
  0xe2   :  { %v711_v60 = vmul.f32 %v2432_v46, %v2432_v46  ;;  %v690_v1 = vadd.f32 %v689_v59, %v2432_v46 }
  0xe3   :  { %v644_v48 = vpop.f32.mrf.mxu2  ;;  %v608_v53 = vpop.f32.mrf.mxu0 }
  0xe4   :  { %v663_v50 = vpop.f32.mrf.mxu3  ;;  %v645_v52 = vadd.f32 %v644_v48, %v2427_v42  ;;  %v627_v54 = vpop.f32.mrf.mxu1  ;;  %v609_v56 = vadd.f32 %v608_v53, %v2418_v30  ;;  %v726_v8 = vadd.f32 %v725_v2, %v711_v60 }
  0xe6   :  { %v664_v58 = vadd.f32 %v663_v50, %v645_v52  ;;  %v628_v62 = vadd.f32 %v627_v54, %v609_v56  ;;  %v699_v54 = vadd.f32 %v2468_v24, %v2474_v34  ;;  %v2495_v56 = vmax.f32 %v595_v32, 0.0  ;;  %v2062_v32 = vld [vmem:[#allocation11 + $0x64] sm:$0xf0] }
  0xe8   :  { %v2447_v0 = vmax.f32 %v664_v58, 0.0  ;;  %v2453_v5 = vmax.f32 %v628_v62, 0.0  ;;  %v2500_v58 = vmax.f32 %v557_v28, 0.0  ;;  %v722_v2 = vmul.f32 %v2495_v56, %v2495_v56 }
  0xea   :  { %v691_v6 = vadd.f32 %v690_v1, %v2447_v0  ;;  %v712_v7 = vmul.f32 %v2447_v0, %v2447_v0  ;;  %v715_v22 = vmul.f32 %v2453_v5, %v2453_v5  ;;  %v695_v44 = vadd.f32 %v694_v21, %v2453_v5 }
  0xeb   :  { %v646_v10 = vpop.f32.mrf.mxu2  ;;  %v611_v14 = vpop.f32.mrf.mxu0 }
  0xec   :  { %v665_v11 = vpop.f32.mrf.mxu3  ;;  %v647_v13 = vadd.f32 %v646_v10, %v2427_v42  ;;  %692 = vadd.xlane.f32.xlu0 %v691_v6  ;;  %v630_v15 = vpop.f32.mrf.mxu1  ;;  %v727_v16 = vadd.f32 %v726_v8, %v712_v7  ;;  %v612_v19 = vadd.f32 %v611_v14, %v2418_v30  ;;  %v731_v39 = vadd.f32 %v730_v49, %v715_v22  ;;  %v2064_v22 = vld [vmem:[#allocation11 + $0x74] sm:$0xf0] }
  0xed   :  { %v721_v8 = vmul.f32 %v2500_v58, %v2500_v58  ;;  %v704_v10 = vadd.f32 %v2495_v56, %v2500_v58  ;;  %v2080_v49 = vld [vmem:[#allocation11 + $0xf4] sm:$0xf0] }
  0xee   :  { %v666_v20 = vadd.f32 %v665_v11, %v647_v13  ;;  %728 = vadd.xlane.f32.xlu1 %v727_v16  ;;  %v631_v23 = vadd.f32 %v630_v15, %v612_v19  ;;  %v2096_v19 = vld [vmem:[#allocation11 + $0x174] sm:$0xf0] }
  0xef   :  { %v740_v14 = vadd.f32 %v722_v2, %v721_v8  ;;  %v1916_v21 = vor.u32 %v2096_v19, %v1915_v18  ;;  %v2108_v2 = vld [vmem:[#allocation11 + $0x1d4] sm:$0xf0]  ;;  %v1763_v8 = vld [vmem:[#allocation11 + $0x40] sm:$0xf]  ;;  %v1883_v18 = vld [vmem:[#allocation11 + $0x130] sm:$0xf] }
  0xf0   :  { %v2471_v31 = vmax.f32 %v666_v20, 0.0  ;;  %v2478_v36 = vmax.f32 %v631_v23, 0.0  ;;  %v1787_v20 = vld [vmem:[#allocation11 + $0x70] sm:$0xf]  ;;  %v2088_v19 = vld [vmem:[#allocation11 + $0x134] sm:$0xf0] }
  0xf1   :  { %v1851_v23 = vld [vmem:[#allocation11 + $0xf0] sm:$0xf]  ;;  %v1788_v29 = vor.u32 %v2064_v22, %v1787_v20  ;;  %1329 = vmatpush.bf16.msra.mxu2 %v1916_v21  ;;  %v1884_v21 = vor.u32 %v2088_v19, %v1883_v18  ;;  %v2056_v22 = vld [vmem:[#allocation11 + $0x34] sm:$0xf0]  ;;  %v1731_v18 = vld [vmem:[#allocation11] sm:$0xf] }
  0xf2   :  { %v696_v37 = vadd.f32 %v695_v44, %v2471_v31  ;;  %v716_v38 = vmul.f32 %v2471_v31, %v2471_v31  ;;  %v719_v33 = vmul.f32 %v2478_v36, %v2478_v36  ;;  %v700_v27 = vadd.f32 %v699_v54, %v2478_v36  ;;  %v2092_v54 = vld [vmem:[#allocation11 + $0x154] sm:$0xf0]  ;;  %v1755_v20 = vld [vmem:[#allocation11 + $0x30] sm:$0xf]  ;;  %v2050_v19 = vld [vmem:[#allocation11 + $0x4] sm:$0xf0] }
  0xf3   :  { %v649_v40 = vpop.f32.mrf.mxu2  ;;  %v613_v48 = vpop.f32.mrf.mxu0  ;;  %v1852_v44 = vor.u32 %v2080_v49, %v1851_v23  ;;  %1291 = vmatpush.bf16.msra.mxu0 %v1788_v29  ;;  %v1819_v23 = vld [vmem:[#allocation11 + $0xb0] sm:$0xf]  ;;  %v2072_v49 = vld [vmem:[#allocation11 + $0xb4] sm:$0xf0]  ;;  %v1756_v29 = vor.u32 %v2056_v22, %v1755_v20  ;;  %v1732_v22 = vor.u32 %v2050_v19, %v1731_v18  ;;  %v2077_v19 = vld [vmem:[#allocation11 + $0xe4] sm:$0xf] }
  0xf4   :  { %v668_v43 = vpop.f32.mrf.mxu3  ;;  %v650_v47 = vadd.f32 %v649_v40, %v2427_v42  ;;  %697 = vadd.xlane.f32.xlu0 %v696_v37  ;;  %v732_v25 = vadd.f32 %v731_v39, %v716_v38  ;;  %v614_v50 = vadd.f32 %v613_v48, %v2418_v30  ;;  %v632_v53 = vpop.f32.mrf.mxu1  ;;  %v735_v30 = vadd.f32 %v718_v26, %v717_v51  ;;  %v2112_v37 = vld [vmem:[#allocation11 + $0x1f4] sm:$0xf0]  ;;  %v1907_v39 = vld [vmem:[#allocation11 + $0x160] sm:$0xf]  ;;  %v2094_v40 = vld [vmem:[#allocation11 + $0x164] sm:$0xf0] }
  0xf5   :  { %v1980_v38 = vor.u32 %v2112_v37, %v1979_v35  ;;  %1310 = vmatpush.bf16.msra.mxu1 %v1852_v44  ;;  %v1908_v26 = vor.u32 %v2094_v40, %v1907_v39  ;;  %v2078_v48 = vld [vmem:[#allocation11 + $0xe4] sm:$0xf0]  ;;  %v1820_v44 = vor.u32 %v2072_v49, %v1819_v23  ;;  %v1947_v35 = vld [vmem:[#allocation11 + $0x1b0] sm:$0xf]  ;;  %v2104_v37 = vld [vmem:[#allocation11 + $0x1b4] sm:$0xf0] }
  0xf6   :  { %v669_v52 = vadd.f32 %v668_v43, %v650_v47  ;;  %733 = vadd.xlane.f32.xlu1 %v732_v25  ;;  %v633_v55 = vadd.f32 %v632_v53, %v614_v50  ;;  %v736_v63 = vadd.f32 %v735_v30, %v719_v33  ;;  %v1779_v43 = vld [vmem:[#allocation11 + $0x60] sm:$0xf]  ;;  %v2110_v51 = vld [vmem:[#allocation11 + $0x1e4] sm:$0xf0]  ;;  %v1899_v53 = vld [vmem:[#allocation11 + $0x150] sm:$0xf] }
  0xf7   :  { %1348 = vmatpush.bf16.msra.mxu3 %v1980_v38  ;;  %v1843_v47 = vld [vmem:[#allocation11 + $0xe0] sm:$0xf]  ;;  %v1780_v25 = vor.u32 %v2062_v32, %v1779_v43  ;;  %1330 = vmatpush.bf16.msra.mxu2 %v1908_v26  ;;  %v1771_v33 = vld [vmem:[#allocation11 + $0x50] sm:$0xf]  ;;  %v1948_v38 = vor.u32 %v2104_v37, %v1947_v35  ;;  %v2086_v43 = vld [vmem:[#allocation11 + $0x124] sm:$0xf0] }
  0xf8   :  { %v2497_v57 = vmax.f32 %v669_v52, 0.0  ;;  %v2502_v59 = vmax.f32 %v633_v55, 0.0  ;;  %v1844_v28 = vor.u32 %v2078_v48, %v1843_v47  ;;  %v1971_v50 = vld [vmem:[#allocation11 + $0x1e0] sm:$0xf]  ;;  %v1900_v55 = vor.u32 %v2092_v54, %v1899_v53  ;;  %v1835_v30 = vld [vmem:[#allocation11 + $0xd0] sm:$0xf] }
  0xf9   :  { %v1972_v52 = vor.u32 %v2110_v51, %v1971_v50  ;;  %1292 = vmatpush.bf16.msra.mxu0 %v1780_v25  ;;  %v1875_v40 = vld [vmem:[#allocation11 + $0x120] sm:$0xf]  ;;  %v2054_v48 = vld [vmem:[#allocation11 + $0x24] sm:$0xf0] }
  0xfa   :  { %v701_v60 = vadd.f32 %v700_v27, %v2497_v57  ;;  %v720_v62 = vmul.f32 %v2497_v57, %v2497_v57  ;;  %v723_v11 = vmul.f32 %v2502_v59, %v2502_v59  ;;  %v705_v13 = vadd.f32 %v704_v10, %v2502_v59  ;;  %1311 = vmatpush.bf16.msra.mxu1 %v1844_v28  ;;  %v2060_v27 = vld [vmem:[#allocation11 + $0x54] sm:$0xf0]  ;;  %v2058_v10 = vld [vmem:[#allocation11 + $0x44] sm:$0xf0]  ;;  %v1747_v26 = vld [vmem:[#allocation11 + $0x20] sm:$0xf] }
  0xfb   :  { %v651_v1 = vpop.f32.mrf.mxu2  ;;  %1349 = vmatpush.bf16.msra.mxu3 %v1972_v52  ;;  %1331 = vmatpush.bf16.msra.mxu2 %v1900_v55  ;;  %v1876_v47 = vor.u32 %v2086_v43, %v1875_v40  ;;  %v1811_v25 = vld [vmem:[#allocation11 + $0xa0] sm:$0xf]  ;;  %v1748_v50 = vor.u32 %v2054_v48, %v1747_v26  ;;  %v2070_v51 = vld [vmem:[#allocation11 + $0xa4] sm:$0xf0]  ;;  %v2095_v26 = vld [vmem:[#allocation11 + $0x174] sm:$0xf] }
  0xfc   :  { %v652_v4 = vadd.f32 %v651_v1, %v2427_v42  ;;  %702 = vadd.xlane.f32.xlu2 %v701_v60  ;;  %v737_v6 = vadd.f32 %v736_v63, %v720_v62  ;;  %v670_v7 = vpop.f32.mrf.mxu3  ;;  %v741_v16 = vadd.f32 %v740_v14, %v723_v11  ;;  %v2076_v60 = vld [vmem:[#allocation11 + $0xd4] sm:$0xf0]  ;;  %v1772_v62 = vor.u32 %v2060_v27, %v1771_v33  ;;  %v1963_v1 = vld [vmem:[#allocation11 + $0x1d0] sm:$0xf]  ;;  %v1827_v11 = vld [vmem:[#allocation11 + $0xc0] sm:$0xf] }
  0xfd   :  { %v1836_v63 = vor.u32 %v2076_v60, %v1835_v30  ;;  %v1764_v14 = vor.u32 %v2058_v10, %v1763_v8  ;;  %v1939_v52 = vld [vmem:[#allocation11 + $0x1a0] sm:$0xf]  ;;  %v2102_v53 = vld [vmem:[#allocation11 + $0x1a4] sm:$0xf0]  ;;  %v1812_v55 = vor.u32 %v2070_v51, %v1811_v25  ;;  %v1867_v30 = vld [vmem:[#allocation11 + $0x110] sm:$0xf] }
  0xfe   :  { %v671_v9 = vadd.f32 %v670_v7, %v652_v4  ;;  %738 = vadd.xlane.f32.xlu0 %v737_v6  ;;  %v1964_v4 = vor.u32 %v2108_v2, %v1963_v1  ;;  %1293 = vmatpush.bf16.msra.mxu0 %v1772_v62  ;;  %v1891_v6 = vld [vmem:[#allocation11 + $0x140] sm:$0xf]  ;;  %v2090_v7 = vld [vmem:[#allocation11 + $0x144] sm:$0xf0]  ;;  %v1940_v27 = vor.u32 %v2102_v53, %v1939_v52  ;;  %v2084_v60 = vld [vmem:[#allocation11 + $0x114] sm:$0xf0] }
  0xff   :  { %1312 = vmatpush.bf16.msra.mxu1 %v1836_v63  ;;  %v1868_v62 = vor.u32 %v2084_v60, %v1867_v30  ;;  %v1739_v63 = vld [vmem:[#allocation11 + $0x10] sm:$0xf]  ;;  %v2052_v1 = vld [vmem:[#allocation11 + $0x14] sm:$0xf0]  ;;  %v1795_v23 = vld [vmem:[#allocation11 + $0x80] sm:$0xf] }
 0x100   :  { %v2516_v12 = vmax.f32 %v671_v9, 0.0  ;;  %1350 = vmatpush.bf16.msra.mxu3 %v1964_v4  ;;  %v1892_v9 = vor.u32 %v2090_v7, %v1891_v6  ;;  %v1803_v2 = vld [vmem:[#allocation11 + $0x90] sm:$0xf]  ;;  %v1740_v6 = vor.u32 %v2052_v1, %v1739_v63  ;;  %v2068_v7 = vld [vmem:[#allocation11 + $0x94] sm:$0xf0] }
 0x101   :  { %v1931_v8 = vld [vmem:[#allocation11 + $0x190] sm:$0xf]  ;;  %v1804_v10 = vor.u32 %v2068_v7, %v1803_v2  ;;  %v2066_v49 = vld [vmem:[#allocation11 + $0x84] sm:$0xf0]  ;;  %v2063_v48 = vld [vmem:[#allocation11 + $0x74] sm:$0xf] }
 0x102   :  { %v706_v42 = vadd.f32 %v705_v13, %v2516_v12  ;;  %v724_v15 = vmul.f32 %v2516_v12, %v2516_v12  ;;  %v2074_v13 = vld [vmem:[#allocation11 + $0xc4] sm:$0xf0]  ;;  %1332 = vmatpush.bf16.msra.mxu2 %v1892_v9  ;;  %1294 = vmatpush.bf16.msra.mxu0 %v1764_v14  ;;  %v2100_v9 = vld [vmem:[#allocation11 + $0x194] sm:$0xf0]  ;;  %v1796_v40 = vor.u32 %v2066_v49, %v1795_v23  ;;  %v2079_v51 = vld [vmem:[#allocation11 + $0xf4] sm:$0xf] }
 0x103   :  { %v1853_v52 = vld [vmem:[#allocation11 + $0xf8] sm:$0xf0]  ;;  %v1909_v7 = vld [vmem:[#allocation11 + $0x168] sm:$0xf0] }
 0x104   :  { %707 = vadd.xlane.f32.xlu2 %v706_v42  ;;  %v742_v17 = vadd.f32 %v741_v16, %v724_v15  ;;  %v1828_v42 = vor.u32 %v2074_v13, %v1827_v11  ;;  %v1955_v15 = vld [vmem:[#allocation11 + $0x1c0] sm:$0xf]  ;;  %v2106_v16 = vld [vmem:[#allocation11 + $0x1c4] sm:$0xf0]  ;;  %v1932_v11 = vor.u32 %v2100_v9, %v1931_v8 }
 0x106   :  { %743 = vadd.xlane.f32.xlu1 %v742_v17  ;;  %v1956_v17 = vor.u32 %v2106_v16, %v1955_v15  ;;  %1313 = vmatpush.bf16.msra.mxu1 %v1828_v42  ;;  %v1859_v42 = vld [vmem:[#allocation11 + $0x100] sm:$0xf]  ;;  %v2082_v15 = vld [vmem:[#allocation11 + $0x104] sm:$0xf0] }
 0x107   :  { %1333 = vmatpush.bf16.msra.mxu2 %v1884_v21  ;;  %1295 = vmatpush.bf16.msra.mxu0 %v1756_v29  ;;  %v1923_v29 = vld [vmem:[#allocation11 + $0x180] sm:$0xf] }
 0x108   :  { %1351 = vmatpush.bf16.msra.mxu3 %v1956_v17  ;;  %v1860_v17 = vor.u32 %v2082_v15, %v1859_v42 }
 0x10a   :  { %1314 = vmatpush.bf16.msra.mxu1 %v1820_v44  ;;  %v2098_v44 = vld [vmem:[#allocation11 + $0x184] sm:$0xf0] }
 0x10b   :  { %1334 = vmatpush.bf16.msra.mxu2 %v1876_v47  ;;  %1296 = vmatpush.bf16.msra.mxu0 %v1748_v50  ;;  %v1924_v43 = vor.u32 %v2098_v44, %v1923_v29  ;;  %v1917_v47 = vld [vmem:[#allocation11 + $0x178] sm:$0xf0]  ;;  %v2109_v29 = vld [vmem:[#allocation11 + $0x1e4] sm:$0xf]  ;;  %v1973_v44 = vld [vmem:[#allocation11 + $0x1e8] sm:$0xf0] }
 0x10c   :  { %1352 = vmatpush.bf16.msra.mxu3 %v1948_v38  ;;  %v2533_v38 = vld [vmem:[#allocation8] sm:$0xf]  ;;  %v1789_v50 = vld [vmem:[#allocation11 + $0x78] sm:$0xf0] }
 0x10d   :  { %v2538_v53 = vperm.slane %v2533_v38, 0  ;;  %v2544_v63 = vperm.slane %v2533_v38, 2 }
 0x10e   :  { %1315 = vmatpush.bf16.msra.mxu1 %v1812_v55  ;;  %v2111_v55 = vld [vmem:[#allocation11 + $0x1f4] sm:$0xf] }
 0x10f   :  { %1335 = vmatpush.bf16.msra.mxu2 %v1868_v62  ;;  %1297 = vmatpush.bf16.msra.mxu0 %v1740_v6  ;;  %v2541_v62 = vperm.slane %v2533_v38, 1  ;;  %v2093_v6 = vld [vmem:[#allocation11 + $0x164] sm:$0xf] }
 0x110   :  { %1353 = vmatpush.bf16.msra.mxu3 %v1940_v27  ;;  %v1981_v27 = vld [vmem:[#allocation11 + $0x1f8] sm:$0xf0] }
 0x111   :  { %v1984_v1 = vor.u32 %v2111_v55, %v1981_v27  ;;  %v2107_v55 = vld [vmem:[#allocation11 + $0x1d4] sm:$0xf]  ;;  %v1965_v27 = vld [vmem:[#allocation11 + $0x1d8] sm:$0xf0] }
 0x112   :  { %1316 = vmatpush.bf16.msra.mxu1 %v1804_v10 }
 0x113   :  { %1336 = vmatpush.bf16.msra.mxu2 %v1860_v17  ;;  %1298 = vmatpush.bf16.msra.mxu0 %v1732_v22 }
 0x114   :  { %1354 = vmatpush.bf16.msra.mxu3 %v1932_v11  ;;  %v1912_v11 = vor.u32 %v2093_v6, %v1909_v7  ;;  %v1968_v6 = vor.u32 %v2107_v55, %v1965_v27  ;;  %v2089_v7 = vld [vmem:[#allocation11 + $0x144] sm:$0xf] }
 0x116   :  { %1317 = vmatpush.bf16.msra.mxu1 %v1796_v40  ;;  %v1976_v40 = vor.u32 %v2109_v29, %v1973_v44  ;;  %v1829_v29 = vld [vmem:[#allocation11 + $0xc8] sm:$0xf0]  ;;  %v2105_v44 = vld [vmem:[#allocation11 + $0x1c4] sm:$0xf] }
 0x118   :  { %1355 = vmatpush.bf16.msra.mxu3 %v1924_v43  ;;  %v2091_v43 = vld [vmem:[#allocation11 + $0x154] sm:$0xf] }
 0x11c   :  { %1424 = vmatpush.bf16.msrb.mxu3 %v1984_v1 }
 0x120   :  { %1425 = vmatpush.bf16.msrb.mxu3 %v1976_v40  ;;  %v2592_v40 = vperm.slane %v2533_v38, 3 }
 0x124   :  { %1426 = vmatpush.bf16.msrb.mxu3 %v1968_v6 }
 0x15f   :  { %v693_v39 = vpop.xlane.xlu0 %692 }
 0x160   :  { %v2522_v32 = vmul.f32 0.001953125, %v693_v39  ;;  %v2535_v39 = vld [vmem:[#allocation10] sm:$0xf] }
 0x161   :  { %v729_v28 = vpop.xlane.xlu1 %728  ;;  %v2560_v18 = vperm.slane %v2535_v39, 1  ;;  %v2564_v22 = vperm.slane %v2535_v39, 2 }
 0x162   :  { %v749_v54 = vmul.f32 0.001953125, %v729_v28  ;;  %v753_v33 = vmul.f32 %v2522_v32, %v2522_v32  ;;  %v1920_v28 = vor.u32 %v2095_v26, %v1917_v47  ;;  %v1901_v26 = vld [vmem:[#allocation11 + $0x158] sm:$0xf0]  ;;  %v2059_v47 = vld [vmem:[#allocation11 + $0x54] sm:$0xf] }
 0x164   :  { %v757_v4 = vsub.f32 %v749_v54, %v753_v33  ;;  %v1792_v54 = vor.u32 %v2063_v48, %v1789_v50  ;;  %v1856_v33 = vor.u32 %v2079_v51, %v1853_v52  ;;  %1405 = vmatpush.bf16.msrb.mxu2 %v1920_v28  ;;  %v1904_v48 = vor.u32 %v2091_v43, %v1901_v26  ;;  %v2075_v28 = vld [vmem:[#allocation11 + $0xd4] sm:$0xf]  ;;  %v1837_v50 = vld [vmem:[#allocation11 + $0xd8] sm:$0xf0] }
 0x166   :  { %v761_v13 = vmax.f32 %v757_v4, 0.0  ;;  %v2549_v4 = vperm.slane %v2535_v39, 0  ;;  %1367 = vmatpush.bf16.msrb.mxu0 %v1792_v54  ;;  %1386 = vmatpush.bf16.msrb.mxu1 %v1856_v33  ;;  %v1840_v33 = vor.u32 %v2075_v28, %v1837_v50 }
 0x167   :  { %v698_v14 = vpop.xlane.xlu0 %697 }
 0x168   :  { %v2526_v16 = vmul.f32 0.001953125, %v698_v14  ;;  %v2528_v20 = vadd.f32 1e-05, %v761_v13  ;;  %v2061_v13 = vld [vmem:[#allocation11 + $0x64] sm:$0xf]  ;;  %1406 = vmatpush.bf16.msrb.mxu2 %v1912_v11 }
 0x169   :  { %v734_v21 = vpop.xlane.xlu1 %733  ;;  %v1781_v14 = vld [vmem:[#allocation11 + $0x68] sm:$0xf0]  ;;  %v2057_v11 = vld [vmem:[#allocation11 + $0x44] sm:$0xf] }
 0x16a   :  { %2124 = vrsqrt.f32 %v2528_v20  ;;  %v750_v35 = vmul.f32 0.001953125, %v734_v21  ;;  %v754_v37 = vmul.f32 %v2526_v16, %v2526_v16  ;;  %v1845_v21 = vld [vmem:[#allocation11 + $0xe8] sm:$0xf0]  ;;  %v1784_v23 = vor.u32 %v2061_v13, %v1781_v14 }
 0x16b   :  { %v1848_v49 = vor.u32 %v2077_v19, %v1845_v21  ;;  %vm791_vm1 = vweird.f32 %v2528_v20 }
 0x16c   :  { %v758_v25 = vsub.f32 %v750_v35, %v754_v37  ;;  %1368 = vmatpush.bf16.msrb.mxu0 %v1784_v23  ;;  %1407 = vmatpush.bf16.msrb.mxu2 %v1904_v48 }
 0x16d   :  { %1387 = vmatpush.bf16.msrb.mxu1 %v1848_v49  ;;  %v2073_v49 = vld [vmem:[#allocation11 + $0xc4] sm:$0xf] }
 0x16e   :  { %v762_v30 = vmax.f32 %v758_v25, 0.0  ;;  %v1773_v25 = vld [vmem:[#allocation11 + $0x58] sm:$0xf0]  ;;  %v1832_v43 = vor.u32 %v2073_v49, %v1829_v29 }
 0x16f   :  { %v703_v60 = vpop.xlane.xlu2 %702  ;;  %v1776_v54 = vor.u32 %v2059_v47, %v1773_v25  ;;  %v2597_v47 = vperm.slane %v2535_v39, 3 }
 0x170   :  { %v2546_v2 = vmul.f32 0.001953125, %v703_v60  ;;  %v2551_v8 = vpop.eup %2124  ;;  %v2553_v9 = vadd.f32 1e-05, %v762_v30  ;;  %v765_v30 = vsub.f32 %v2430_v45, %v2522_v32  ;;  %v766_v60 = vsub.f32 %v2425_v41, %v2522_v32 }
 0x171   :  { %v739_v10 = vpop.xlane.xlu0 %738  ;;  %v786_v42 = vmul.f32 %v2551_v8, %v2528_v20  ;;  %vm792_vm0 = vweird.f32 %v2551_v8  ;;  %v767_v41 = vsub.f32 %v2432_v46, %v2522_v32  ;;  %v768_v45 = vsub.f32 %v2447_v0, %v2522_v32  ;;  %1369 = vmatpush.bf16.msrb.mxu0 %v1776_v54  ;;  %1388 = vmatpush.bf16.msrb.mxu1 %v1840_v33  ;;  %v1957_v46 = vld [vmem:[#allocation11 + $0x1c8] sm:$0xf0]  ;;  %v1885_v33 = vld [vmem:[#allocation11 + $0x138] sm:$0xf0] }
 0x172   :  { %v755_v15 = vmul.f32 %v2546_v2, %v2546_v2  ;;  %v751_v17 = vmul.f32 0.001953125, %v739_v10  ;;  %2126 = vrsqrt.f32 %v2553_v9  ;;  %v1893_v10 = vld [vmem:[#allocation11 + $0x148] sm:$0xf0]  ;;  %vm793_vm2 = vmor %vm791_vm1, %vm792_vm0  ;;  %v1960_v48 = vor.u32 %v2105_v44, %v1957_v46 }
 0x173   :  { %v787_v35 = vmul.f32 %v2551_v8, %v786_v42  ;;  %vm801_vm4 = vweird.f32 %v2553_v9  ;;  %v1749_v46 = vld [vmem:[#allocation11 + $0x28] sm:$0xf0] }
 0x174   :  { %v759_v37 = vsub.f32 %v751_v17, %v755_v15  ;;  %v1896_v15 = vor.u32 %v2089_v7, %v1893_v10  ;;  %v1765_v17 = vld [vmem:[#allocation11 + $0x48] sm:$0xf0]  ;;  %1427 = vmatpush.bf16.msrb.mxu3 %v1960_v48  ;;  %v771_v7 = vsub.f32 %v2453_v5, %v2526_v16 }
 0x175   :  { %v788_v51 = vmul.f32 0.5, %v787_v35  ;;  %v1768_v23 = vor.u32 %v2057_v11, %v1765_v17  ;;  %1389 = vmatpush.bf16.msrb.mxu1 %v1832_v43  ;;  %v772_v17 = vsub.f32 %v2471_v31, %v2526_v16  ;;  %v1813_v48 = vld [vmem:[#allocation11 + $0xa8] sm:$0xf0] }
 0x176   :  { %v763_v52 = vmax.f32 %v759_v37, 0.0  ;;  %1408 = vmatpush.bf16.msrb.mxu2 %v1896_v15  ;;  %v1821_v15 = vld [vmem:[#allocation11 + $0xb8] sm:$0xf0] }
 0x177   :  { %v708_v1 = vpop.xlane.xlu2 %707  ;;  %v789_v13 = vsub.f32 1.5, %v788_v51  ;;  %1370 = vmatpush.bf16.msrb.mxu0 %v1768_v23  ;;  %v1949_v23 = vld [vmem:[#allocation11 + $0x1b8] sm:$0xf0] }
 0x178   :  { %v2572_v14 = vadd.f32 1e-05, %v763_v52  ;;  %v2574_v42 = vmul.f32 0.001953125, %v708_v1  ;;  %v2576_v19 = vpop.eup %2126  ;;  %v769_v52 = vsub.f32 %v2450_v3, %v2526_v16  ;;  %v1757_v1 = vld [vmem:[#allocation11 + $0x38] sm:$0xf0]  ;;  %v770_v3 = vsub.f32 %v2444_v61, %v2526_v16 }
 0x179   :  { %v744_v21 = vpop.xlane.xlu1 %743  ;;  %v790_v35 = vmul.f32 %v2551_v8, %v789_v13  ;;  %v796_v37 = vmul.f32 %v2576_v19, %v2553_v9  ;;  %vm802_vm3 = vweird.f32 %v2576_v19  ;;  %v2071_v13 = vld [vmem:[#allocation11 + $0xb4] sm:$0xf]  ;;  %v2085_v16 = vld [vmem:[#allocation11 + $0x124] sm:$0xf]  ;;  %v1877_v9 = vld [vmem:[#allocation11 + $0x128] sm:$0xf0] }
 0x17a   :  { %2128 = vrsqrt.f32 %v2572_v14  ;;  %v756_v0 = vmul.f32 %v2574_v42, %v2574_v42  ;;  %v752_v32 = vmul.f32 0.001953125, %v744_v21  ;;  %v2103_v21 = vld [vmem:[#allocation11 + $0x1b4] sm:$0xf]  ;;  %vm803_vm5 = vmor %vm801_vm4, %vm802_vm3  ;;  %v1824_v43 = vor.u32 %v2071_v13, %v1821_v15 }
 0x17b   :  { %v794_v20 = vsel %vm793_vm2, %v2551_v8, %v790_v35  ;;  %v797_v26 = vmul.f32 %v2576_v19, %v796_v37  ;;  %v2087_v8 = vld [vmem:[#allocation11 + $0x134] sm:$0xf]  ;;  %v2053_v37 = vld [vmem:[#allocation11 + $0x24] sm:$0xf]  ;;  %vm811_vm7 = vweird.f32 %v2572_v14 }
 0x17c   :  { %v760_v25 = vsub.f32 %v752_v32, %v756_v0  ;;  %v825_v28 = vmul.f32 %v794_v20, %v765_v30  ;;  %v826_v50 = vmul.f32 %v794_v20, %v766_v60  ;;  %v827_v51 = vmul.f32 %v794_v20, %v767_v41  ;;  %v2055_v60 = vld [vmem:[#allocation11 + $0x34] sm:$0xf]  ;;  %v2069_v0 = vld [vmem:[#allocation11 + $0xa4] sm:$0xf]  ;;  %1390 = vmatpush.bf16.msrb.mxu1 %v1824_v43 }
 0x17d   :  { %v798_v38 = vmul.f32 0.5, %v797_v26  ;;  %v828_v54 = vmul.f32 %v794_v20, %v768_v45  ;;  %v1888_v11 = vor.u32 %v2087_v8, %v1885_v33  ;;  %v1760_v35 = vor.u32 %v2055_v60, %v1757_v1  ;;  %v2083_v8 = vld [vmem:[#allocation11 + $0x114] sm:$0xf]  ;;  %v1869_v33 = vld [vmem:[#allocation11 + $0x118] sm:$0xf0] }
 0x17e   :  { %v764_v55 = vmax.f32 %v760_v25, 0.0  ;;  %v851_v39 = vmul.f32 %v2538_v53, %v825_v28  ;;  %v852_v27 = vmul.f32 %v2541_v62, %v826_v50  ;;  %v853_v30 = vmul.f32 %v2544_v63, %v827_v51  ;;  %v2101_v25 = vld [vmem:[#allocation11 + $0x1a4] sm:$0xf]  ;;  %v1941_v28 = vld [vmem:[#allocation11 + $0x1a8] sm:$0xf0] }
 0x17f   :  { %v799_v10 = vsub.f32 1.5, %v798_v38  ;;  %v854_v31 = vmul.f32 %v2592_v40, %v828_v54  ;;  %1409 = vmatpush.bf16.msrb.mxu2 %v1888_v11  ;;  %v1952_v20 = vor.u32 %v2103_v21, %v1949_v23  ;;  %v1880_v26 = vor.u32 %v2085_v16, %v1877_v9  ;;  %1371 = vmatpush.bf16.msrb.mxu0 %v1760_v35  ;;  %v2067_v15 = vld [vmem:[#allocation11 + $0x94] sm:$0xf]  ;;  %v2081_v43 = vld [vmem:[#allocation11 + $0x104] sm:$0xf] }
 0x180   :  { %v2605_v6 = vpop.eup %2128  ;;  %v2616_v45 = vadd.f32 1e-05, %v764_v55  ;;  %v877_v5 = vadd.f32 %v2549_v4, %v851_v39  ;;  %v878_v49 = vadd.f32 %v2560_v18, %v852_v27  ;;  %v879_v44 = vadd.f32 %v2564_v22, %v853_v30  ;;  %v2099_v35 = vld [vmem:[#allocation11 + $0x194] sm:$0xf] }
 0x181   :  { %v806_v41 = vmul.f32 %v2605_v6, %v2572_v14  ;;  %v800_v61 = vmul.f32 %v2576_v19, %v799_v10  ;;  %vm812_vm6 = vweird.f32 %v2605_v6  ;;  %1428 = vmatpush.bf16.msrb.mxu3 %v1952_v20  ;;  %v1752_v39 = vor.u32 %v2053_v37, %v1749_v46  ;;  %v1933_v37 = vld [vmem:[#allocation11 + $0x198] sm:$0xf0]  ;;  %v1861_v20 = vld [vmem:[#allocation11 + $0x108] sm:$0xf0] }
 0x182   :  { %2130 = vrsqrt.f32 %v2616_v45  ;;  %v880_v10 = vadd.f32 %v2597_v47, %v854_v31  ;;  %v1944_v11 = vor.u32 %v2101_v25, %v1941_v28  ;;  %v1872_v13 = vor.u32 %v2083_v8, %v1869_v33  ;;  %vm813_vm8 = vmor %vm811_vm7, %vm812_vm6  ;;  %v2049_v28 = vld [vmem:[#allocation11 + $0x4] sm:$0xf] }
 0x183   :  { %v807_v29 = vmul.f32 %v2605_v6, %v806_v41  ;;  %v804_v32 = vsel %vm803_vm5, %v2576_v19, %v800_v61  ;;  %v1816_v19 = vor.u32 %v2069_v0, %v1813_v48  ;;  %1410 = vmatpush.bf16.msrb.mxu2 %v1880_v26  ;;  %1372 = vmatpush.bf16.msrb.mxu0 %v1752_v39  ;;  %vm821_vm10 = vweird.f32 %v2616_v45 }
 0x184   :  { %v829_v51 = vmul.f32 %v804_v32, %v769_v52  ;;  %v830_v38 = vmul.f32 %v804_v32, %v770_v3  ;;  %v831_v54 = vmul.f32 %v804_v32, %v771_v7  ;;  %v832_v55 = vmul.f32 %v804_v32, %v772_v17  ;;  %v2051_v52 = vld [vmem:[#allocation11 + $0x14] sm:$0xf]  ;;  %v1741_v3 = vld [vmem:[#allocation11 + $0x18] sm:$0xf0] }
 0x185   :  { %v808_v50 = vmul.f32 0.5, %v807_v29  ;;  %v1805_v17 = vld [vmem:[#allocation11 + $0x98] sm:$0xf0]  ;;  %1391 = vmatpush.bf16.msrb.mxu1 %v1816_v19  ;;  %1429 = vmatpush.bf16.msrb.mxu3 %v1944_v11  ;;  %v1744_v29 = vor.u32 %v2051_v52, %v1741_v3  ;;  %v776_v8 = vsub.f32 %v2497_v57, %v2546_v2  ;;  %v1864_v33 = vor.u32 %v2081_v43, %v1861_v20 }
 0x186   :  { %v855_v30 = vmul.f32 %v2538_v53, %v829_v51  ;;  %v856_v60 = vmul.f32 %v2541_v62, %v830_v38  ;;  %v857_v1 = vmul.f32 %v2544_v63, %v831_v54  ;;  %v858_v7 = vmul.f32 %v2592_v40, %v832_v55  ;;  %v2065_v51 = vld [vmem:[#allocation11 + $0x84] sm:$0xf]  ;;  %v1797_v38 = vld [vmem:[#allocation11 + $0x88] sm:$0xf0] }
 0x187   :  { %v809_v27 = vsub.f32 1.5, %v808_v50  ;;  %1411 = vmatpush.bf16.msrb.mxu2 %v1872_v13  ;;  %v1808_v14 = vor.u32 %v2067_v15, %v1805_v17  ;;  %v1733_v50 = vld [vmem:[#allocation11 + $0x8] sm:$0xf0]  ;;  %v775_v54 = vsub.f32 %v2478_v36, %v2546_v2  ;;  %v2097_v55 = vld [vmem:[#allocation11 + $0x184] sm:$0xf]  ;;  %1373 = vmatpush.bf16.msrb.mxu0 %v1744_v29  ;;  %v777_v57 = vsub.f32 %v2500_v58, %v2574_v42 }
 0x188   :  { %v2634_v41 = vpop.eup %2130  ;;  %v881_v23 = vadd.f32 %v2549_v4, %v855_v30  ;;  %v882_v61 = vadd.f32 %v2560_v18, %v856_v60  ;;  %v883_v16 = vadd.f32 %v2564_v22, %v857_v1  ;;  %v884_v9 = vadd.f32 %v2597_v47, %v858_v7 }
 0x189   :  { %v810_v21 = vmul.f32 %v2605_v6, %v809_v27  ;;  %v816_v31 = vmul.f32 %v2634_v41, %v2616_v45  ;;  %vm822_vm9 = vweird.f32 %v2634_v41  ;;  %1392 = vmatpush.bf16.msrb.mxu1 %v1808_v14  ;;  %v1736_v19 = vor.u32 %v2049_v28, %v1733_v50 }
 0x18a   :  { %v2646_v46 = vpack.c.bf16 %v881_v23, %v877_v5  ;;  %v2648_v0 = vpack.c.bf16 %v882_v61, %v878_v49  ;;  %v2650_v32 = vpack.c.bf16 %v883_v16, %v879_v44  ;;  %v2654_v25 = vpack.c.bf16 %v884_v9, %v880_v10  ;;  %vm823_vm11 = vmor %vm821_vm10, %vm822_vm9 }
 0x18b   :  { %v814_v26 = vsel %vm813_vm8, %v2605_v6, %v810_v21  ;;  %v817_v48 = vmul.f32 %v2634_v41, %v816_v31  ;;  %v773_v5 = vsub.f32 %v2474_v34, %v2546_v2  ;;  %v774_v49 = vsub.f32 %v2468_v24, %v2546_v2  ;;  %v1925_v34 = vld [vmem:[#allocation11 + $0x188] sm:$0xf0]  ;;  %1412 = vmatpush.bf16.msrb.mxu2 %v1864_v33 }
 0x18c   :  { %1299 = vmatmul.bf16.vlgmr.msra.gmra.mxu0 %v2646_v46  ;;  %1318 = vmatmul.bf16.vlgmr.msra.gmra.mxu1 %v2648_v0  ;;  %v1936_v44 = vor.u32 %v2099_v35, %v1933_v37  ;;  %v835_v30 = vmul.f32 %v814_v26, %v775_v54  ;;  %v836_v60 = vmul.f32 %v814_v26, %v776_v8 }
 0x18d   :  { %v818_v6 = vmul.f32 0.5, %v817_v48  ;;  %1337 = vmatmul.bf16.vlgmr.msra.gmra.mxu2 %v2650_v32  ;;  %1356 = vmatmul.bf16.vlgmr.msra.gmra.mxu3 %v2654_v25  ;;  %v833_v24 = vmul.f32 %v814_v26, %v773_v5  ;;  %v834_v39 = vmul.f32 %v814_v26, %v774_v49  ;;  %v1800_v1 = vor.u32 %v2065_v51, %v1797_v38 }
 0x18e   :  { %1430 = vmatpush.bf16.msrb.mxu3 %v1936_v44  ;;  %v1928_v36 = vor.u32 %v2097_v55, %v1925_v34  ;;  %v778_v2 = vsub.f32 %v2495_v56, %v2574_v42  ;;  %v779_v7 = vsub.f32 %v2502_v59, %v2574_v42  ;;  %v780_v10 = vsub.f32 %v2516_v12, %v2574_v42 }
 0x18f   :  { %v819_v27 = vsub.f32 1.5, %v818_v6  ;;  %v859_v3 = vmul.f32 %v2538_v53, %v833_v24  ;;  %1374 = vmatpush.bf16.msrb.mxu0 %v1736_v19  ;;  %1393 = vmatpush.bf16.msrb.mxu1 %v1800_v1  ;;  %v860_v58 = vmul.f32 %v2541_v62, %v834_v39  ;;  %v861_v11 = vmul.f32 %v2544_v63, %v835_v30 }
 0x190   :  { %v862_v56 = vmul.f32 %v2592_v40, %v836_v60 }
 0x191   :  { %v820_v52 = vmul.f32 %v2634_v41, %v819_v27  ;;  %v886_v61 = vadd.f32 %v2560_v18, %v860_v58  ;;  %v887_v16 = vadd.f32 %v2564_v22, %v861_v11 }
 0x192   :  { %1431 = vmatpush.bf16.msrb.mxu3 %v1928_v36  ;;  %v888_v31 = vadd.f32 %v2597_v47, %v862_v56 }
 0x193   :  { %v824_v45 = vsel %vm823_vm11, %v2634_v41, %v820_v52  ;;  %v885_v41 = vadd.f32 %v2549_v4, %v859_v3 }
 0x194   :  { %v837_v13 = vmul.f32 %v824_v45, %v777_v57  ;;  %v838_v15 = vmul.f32 %v824_v45, %v778_v2  ;;  %v839_v17 = vmul.f32 %v824_v45, %v779_v7  ;;  %v840_v21 = vmul.f32 %v824_v45, %v780_v10 }
 0x196   :  { %v863_v59 = vmul.f32 %v2538_v53, %v837_v13  ;;  %v864_v23 = vmul.f32 %v2541_v62, %v838_v15  ;;  %v865_v12 = vmul.f32 %v2544_v63, %v839_v17  ;;  %v866_v42 = vmul.f32 %v2592_v40, %v840_v21 }
 0x198   :  { %v889_v9 = vadd.f32 %v2549_v4, %v863_v59  ;;  %v890_v29 = vadd.f32 %v2560_v18, %v864_v23  ;;  %v891_v53 = vadd.f32 %v2564_v22, %v865_v12  ;;  %v892_v62 = vadd.f32 %v2597_v47, %v866_v42  ;;  %v965_v4 = vld [vmem:[%s2717_s6] sm:$0x3]  ;;  %s2320_s6 = smov [#allocation13]  }
 0x199   :  { %v967_v18 = vperm.slane %v965_v4, 0  ;;  %v968_v30 = vperm.slane %v965_v4, 1  ;;  %s1455_s8 = sshll.u32 %s2320_s6, 4  ;;  %s1456_s8 = int_to_ptr.vmem [resolvable:$true] %s1455_s8 }
 0x19a   :  { %v897_v35 = vpack.c.bf16 %v889_v9, %v885_v41  ;;  %v898_v63 = vpack.c.bf16 %v890_v29, %v886_v61  ;;  %v899_v37 = vpack.c.bf16 %v891_v53, %v887_v16  ;;  %v900_v40 = vpack.c.bf16 %v892_v62, %v888_v31 }
 0x19c   :  { %1304 = vmatmul.bf16.gmra.mxu0 %v897_v35  ;;  %1323 = vmatmul.bf16.gmra.mxu1 %v898_v63 }
 0x19d   :  { %1342 = vmatmul.bf16.gmra.mxu2 %v899_v37  ;;  %1361 = vmatmul.bf16.gmra.mxu3 %v900_v40 }
 0x1ac   :  { %1375 = vmatmul.bf16.vlgmr.msrb.gmra.mxu0 %v2646_v46  ;;  %1394 = vmatmul.bf16.vlgmr.msrb.gmra.mxu1 %v2648_v0 }
 0x1ad   :  { %1413 = vmatmul.bf16.vlgmr.msrb.gmra.mxu2 %v2650_v32  ;;  %1432 = vmatmul.bf16.vlgmr.msrb.gmra.mxu3 %v2654_v25 }
 0x1bc   :  { %1380 = vmatmul.bf16.gmra.mxu0 %v897_v35  ;;  %1399 = vmatmul.bf16.gmra.mxu1 %v898_v63 }
 0x1bd   :  { %1418 = vmatmul.bf16.gmra.mxu2 %v899_v37  ;;  %1437 = vmatmul.bf16.gmra.mxu3 %v900_v40 }
 0x209   :  { %v1300_v22 = vpop.f32.mrf.mxu0  ;;  %v1319_v47 = vpop.f32.mrf.mxu1 }
 0x20a   :  { %v1301_v14 = vadd.f32 %v1300_v22, %v967_v18 }
 0x20c   :  { %v1320_v43 = vadd.f32 %v1319_v47, %v1301_v14 }
 0x210   :  { %v1338_v46 = vpop.f32.mrf.mxu2  ;;  %v1357_v20 = vpop.f32.mrf.mxu3 }
 0x211   :  { %v1339_v0 = vadd.f32 %v1338_v46, %v1320_v43  ;;  %v1302_v26 = vpop.f32.mrf.mxu0  ;;  %v1321_v32 = vpop.f32.mrf.mxu1 }
 0x212   :  { %v1303_v25 = vadd.f32 %v1302_v26, %v967_v18 }
 0x213   :  { %v1358_v48 = vadd.f32 %v1357_v20, %v1339_v0 }
 0x214   :  { %v1322_v28 = vadd.f32 %v1321_v32, %v1303_v25 }
 0x215   :  { %1443 = vst [vmem:[#allocation13] sm:$0xff] %v1358_v48 }
 0x218   :  { %v1340_v50 = vpop.f32.mrf.mxu2  ;;  %v1359_v5 = vpop.f32.mrf.mxu3 }
 0x219   :  { %v1341_v49 = vadd.f32 %v1340_v50, %v1322_v28  ;;  %v1305_v44 = vpop.f32.mrf.mxu0  ;;  %v1324_v51 = vpop.f32.mrf.mxu1 }
 0x21a   :  { %v1306_v6 = vadd.f32 %v1305_v44, %v967_v18 }
 0x21b   :  { %v1360_v38 = vadd.f32 %v1359_v5, %v1341_v49 }
 0x21c   :  { %v1325_v54 = vadd.f32 %v1324_v51, %v1306_v6 }
 0x21d   :  { %1445 = vst [vmem:[#allocation13 + $0x10] sm:$0xff] %v1360_v38 }
 0x220   :  { %v1343_v8 = vpop.f32.mrf.mxu2  ;;  %v1362_v33 = vpop.f32.mrf.mxu3 }
 0x221   :  { %v1344_v55 = vadd.f32 %v1343_v8, %v1325_v54  ;;  %v1307_v34 = vpop.f32.mrf.mxu0  ;;  %v1326_v24 = vpop.f32.mrf.mxu1 }
 0x222   :  { %v1308_v19 = vadd.f32 %v1307_v34, %v967_v18 }
 0x223   :  { %v1363_v39 = vadd.f32 %v1362_v33, %v1344_v55 }
 0x224   :  { %v1327_v27 = vadd.f32 %v1326_v24, %v1308_v19 }
 0x225   :  { %1447 = vst [vmem:[#allocation13 + $0x20] sm:$0xff] %v1363_v39 }
 0x228   :  { %v1345_v60 = vpop.f32.mrf.mxu2  ;;  %v1364_v1 = vpop.f32.mrf.mxu3 }
 0x229   :  { %v1346_v36 = vadd.f32 %v1345_v60, %v1327_v27  ;;  %v1376_v52 = vpop.f32.mrf.mxu0  ;;  %v1395_v57 = vpop.f32.mrf.mxu1 }
 0x22a   :  { %v1377_v3 = vadd.f32 %v1376_v52, %v968_v30 }
 0x22b   :  { %v1365_v2 = vadd.f32 %v1364_v1, %v1346_v36 }
 0x22c   :  { %v1396_v7 = vadd.f32 %v1395_v57, %v1377_v3 }
 0x22d   :  { %1449 = vst [vmem:[#allocation13 + $0x30] sm:$0xff] %v1365_v2 }
 0x230   :  { %v1414_v10 = vpop.f32.mrf.mxu2  ;;  %v1433_v45 = vpop.f32.mrf.mxu3 }
 0x231   :  { %v1415_v58 = vadd.f32 %v1414_v10, %v1396_v7  ;;  %v1378_v11 = vpop.f32.mrf.mxu0  ;;  %v1397_v56 = vpop.f32.mrf.mxu1 }
 0x232   :  { %v1379_v15 = vadd.f32 %v1378_v11, %v968_v30 }
 0x233   :  { %v1434_v13 = vadd.f32 %v1433_v45, %v1415_v58 }
 0x234   :  { %v1398_v17 = vadd.f32 %v1397_v56, %v1379_v15 }
 0x235   :  { %1444 = vst [vmem:[#allocation13 + $0x8] sm:$0xff] %v1434_v13 }
 0x238   :  { %v1416_v21 = vpop.f32.mrf.mxu2  ;;  %v1435_v59 = vpop.f32.mrf.mxu3 }
 0x239   :  { %v1417_v23 = vadd.f32 %v1416_v21, %v1398_v17  ;;  %v1381_v12 = vpop.f32.mrf.mxu0  ;;  %v1400_v61 = vpop.f32.mrf.mxu1 }
 0x23a   :  { %v1382_v41 = vadd.f32 %v1381_v12, %v968_v30 }
 0x23b   :  { %v1436_v42 = vadd.f32 %v1435_v59, %v1417_v23 }
 0x23c   :  { %v1401_v16 = vadd.f32 %v1400_v61, %v1382_v41 }
 0x23d   :  { %1446 = vst [vmem:[#allocation13 + $0x18] sm:$0xff] %v1436_v42 }
 0x240   :  { %v1419_v31 = vpop.f32.mrf.mxu2  ;;  %v1438_v9 = vpop.f32.mrf.mxu3 }
 0x241   :  { %v1420_v29 = vadd.f32 %v1419_v31, %v1401_v16  ;;  %v1383_v53 = vpop.f32.mrf.mxu0  ;;  %v1402_v63 = vpop.f32.mrf.mxu1 }
 0x242   :  { %v1384_v35 = vadd.f32 %v1383_v53, %v968_v30 }
 0x243   :  { %v1439_v62 = vadd.f32 %v1438_v9, %v1420_v29 }
 0x244   :  { %v1403_v37 = vadd.f32 %v1402_v63, %v1384_v35 }
 0x245   :  { %1448 = vst [vmem:[#allocation13 + $0x28] sm:$0xff] %v1439_v62 }
 0x248   :  { %v1421_v40 = vpop.f32.mrf.mxu2  ;;  %v1440_v18 = vpop.f32.mrf.mxu3 }
 0x249   :  { %v1422_v4 = vadd.f32 %v1421_v40, %v1403_v37 }
 0x24b   :  { %v1441_v22 = vadd.f32 %v1440_v18, %v1422_v4 }
 0x24d   :  { %1450 = vst [vmem:[#allocation13 + $0x38] sm:$0xff] %v1441_v22 }
 0x24e   :  { %1463 = dma.vmem_to_hbm [thread:$0]  %s1456_s8, 1024, %s1458_s13, [#allocation4], %s2311_s9, %s2311_s9, %s2312_s10  }
 0x24f   :  { %2308 = dma.done.wait [#allocation4], 1024  }
 0x250   :  { %2309 = vsyncadd [#allocation4], 4294966272 }
 0x251   :  { %1468 = vsyncpa [#allocation3], 1 }
 0x252   :  { %1469 = vsyncpa [#allocation6], 1 }
 0x253   :  { %1470 = vsyncpa [#allocation9], 1 }
 0x254   :  { %1471 = vsyncpa [#allocation12], 1 }
 0x255   :  { %1472 = vsyncpa [#allocation4], 1 }

// kernel: tpu_custom_call.1
= control target key start
LH: loop header
LB: loop body
LE: loop exit
PB: predicated region body
PF: predicated region fallthrough
CT: control target
= control target key end

     0   :  { %12 = vsyncpa [#allocation3], 0  ;;  %s2711_s0 = inlined_call_operand.hbm [shape: f32[32,256], index: 0, kind: input, shape index: {}]   ;;  %s2712_s1 = inlined_call_operand.hbm [shape: bf16[256,512], index: 1, kind: input, shape index: {}]   ;;  %s2713_s2 = inlined_call_operand.hbm [shape: f32[1,512], index: 2, kind: input, shape index: {}]   ;;  %s2714_s3 = inlined_call_operand.hbm [shape: f32[1,512], index: 3, kind: input, shape index: {}]   ;;  %s2715_s4 = inlined_call_operand.hbm [shape: f32[1,512], index: 4, kind: input, shape index: {}]   ;;  %s2716_s5 = inlined_call_operand.hbm [shape: bf16[512,256], index: 5, kind: input, shape index: {}]   ;;  %s2717_s6 = inlined_call_operand.vmem [shape: f32[1,256], index: 6, kind: input, shape index: {}]   ;;  %s2718_s7 = inlined_call_operand.hbm [shape: f32[32,256], index: 7, kind: output, shape index: {}]  }
   0x1   :  { %13 = vsyncpa [#allocation6], 0 }
   0x2   :  { %14 = vsyncpa [#allocation9], 0 }
   0x3   :  { %15 = vsyncpa [#allocation12], 0 }
   0x4   :  { %16 = vsyncpa [#allocation4], 0  ;;  %s34_s26 = sshll.u32 %s2712_s1, 4  ;;  %s2310_s27 = smov [#allocation5]   ;;  %s35_s26 = int_to_ptr.hbm [resolvable:$true] %s34_s26 }
   0x5   :  { %s36_s28 = sshll.u32 %s2310_s27, 4  ;;  %s59_s8 = sshll.u32 %s2714_s3, 4  ;;  %s37_s28 = int_to_ptr.vmem [resolvable:$true] %s36_s28  ;;  %s60_s8 = int_to_ptr.hbm [resolvable:$true] %s59_s8 }
   0x6   :  { %s2311_s9 = smov 256   ;;  %s2312_s10 = smov 16  }
   0x7   :  { %42 = dma.hbm_to_vmem [thread:$0]  %s35_s26, 8192, %s37_s28, [#allocation6], %s2311_s9, %s2311_s9, %s2312_s10  }
   0x8   :  { %s2313_s11 = smov [#allocation8]   ;;  %s21_s1 = sshll.u32 %s2711_s0, 4  ;;  %s22_s1 = int_to_ptr.hbm [resolvable:$true] %s21_s1 }
   0x9   :  { %s61_s12 = sshll.u32 %s2313_s11, 4  ;;  %s48_s3 = sshll.u32 %s2713_s2, 4  ;;  %s62_s12 = int_to_ptr.vmem [resolvable:$true] %s61_s12  ;;  %s49_s3 = int_to_ptr.hbm [resolvable:$true] %s48_s3 }
   0xa   :  { %64 = dma.hbm_to_vmem [thread:$0]  %s60_s8, 64, %s62_s12, [#allocation9]  }
   0xb   :  { %s2314_s17 = smov [#allocation2]   ;;  %s2315_s19 = smov [#allocation7]  }
   0xc   :  { %s23_s18 = sshll.u32 %s2314_s17, 4  ;;  %s50_s20 = sshll.u32 %s2315_s19, 4  ;;  %s24_s18 = int_to_ptr.vmem [resolvable:$true] %s23_s18  ;;  %s51_s20 = int_to_ptr.vmem [resolvable:$true] %s50_s20 }
   0xd   :  { %29 = dma.hbm_to_vmem [thread:$0]  %s22_s1, 1024, %s24_s18, [#allocation3], %s2311_s9, %s2311_s9, %s2312_s10  }
   0xe   :  { %s70_s0 = sshll.u32 %s2715_s4, 4  ;;  %s80_s2 = sshll.u32 %s2716_s5, 4  ;;  %s71_s0 = int_to_ptr.hbm [resolvable:$true] %s70_s0  ;;  %s81_s2 = int_to_ptr.hbm [resolvable:$true] %s80_s2 }
   0xf   :  { %53 = dma.hbm_to_vmem [thread:$0]  %s49_s3, 64, %s51_s20, [#allocation6]  }
  0x10   :  { %s2316_s25 = smov [#allocation10]   ;;  %s2317_s27 = smov [#allocation11]  }
  0x11   :  { %s72_s26 = sshll.u32 %s2316_s25, 4  ;;  %s82_s28 = sshll.u32 %s2317_s27, 4  ;;  %s73_s26 = int_to_ptr.vmem [resolvable:$true] %s72_s26  ;;  %s83_s28 = int_to_ptr.vmem [resolvable:$true] %s82_s28 }
  0x12   :  { %75 = dma.hbm_to_vmem [thread:$0]  %s71_s0, 64, %s73_s26, [#allocation9]  }
  0x13   :  { %s2318_s29 = smov 128   ;;  %s2319_s30 = smov 8  }
  0x14   :  { %88 = dma.hbm_to_vmem [thread:$0]  %s81_s2, 8192, %s83_s28, [#allocation12], %s2318_s29, %s2318_s29, %s2319_s30  }
  0x15   :  { %2300 = dma.done.wait [#allocation3], 1024  }
  0x16   :  { %2301 = vsyncadd [#allocation3], 4294966272 }
  0x17   :  { %2302 = dma.done.wait [#allocation6], 8256  }
  0x18   :  { %2303 = vsyncadd [#allocation6], 4294959040 }
  0x19   :  { %2304 = dma.done.wait [#allocation9], 128  }
  0x1a   :  { %2305 = vsyncadd [#allocation9], 4294967168 }
  0x1b   :  { %2306 = dma.done.wait [#allocation12], 8192  }
  0x1c   :  { %2307 = vsyncadd [#allocation12], 4294959104  ;;  %v1587_v0 = vld [vmem:[#allocation5 + $0xe0] sm:$0xf]  ;;  %v2015_v1 = vld [vmem:[#allocation5 + $0xec] sm:$0xf0] }
  0x1d   :  { %v1715_v2 = vld [vmem:[#allocation5 + $0x1e0] sm:$0xf]  ;;  %v1588_v3 = vor.u32 %v2015_v1, %v1587_v0  ;;  %v2047_v4 = vld [vmem:[#allocation5 + $0x1ec] sm:$0xf0]  ;;  %v2013_v5 = vld [vmem:[#allocation5 + $0xe4] sm:$0xf] }
  0x1e   :  { %v1589_v6 = vld [vmem:[#allocation5 + $0xf0] sm:$0xf0]  ;;  %v1716_v7 = vor.u32 %v2047_v4, %v1715_v2  ;;  %v2045_v9 = vld [vmem:[#allocation5 + $0x1e4] sm:$0xf]  ;;  %v1571_v11 = vld [vmem:[#allocation5 + $0xc0] sm:$0xf] }
  0x1f   :  { %v1592_v8 = vor.u32 %v2013_v5, %v1589_v6  ;;  %v1717_v10 = vld [vmem:[#allocation5 + $0x1f0] sm:$0xf0]  ;;  %521 = vmatpush.bf16.msra.mxu0 %v1588_v3  ;;  %v2011_v13 = vld [vmem:[#allocation5 + $0xcc] sm:$0xf0]  ;;  %v1699_v14 = vld [vmem:[#allocation5 + $0x1c0] sm:$0xf] }
  0x20   :  { %v1720_v12 = vor.u32 %v2045_v9, %v1717_v10  ;;  %v2043_v15 = vld [vmem:[#allocation5 + $0x1cc] sm:$0xf0]  ;;  %540 = vmatpush.bf16.msra.mxu1 %v1716_v7  ;;  %v1572_v16 = vor.u32 %v2011_v13, %v1571_v11  ;;  %v2009_v18 = vld [vmem:[#allocation5 + $0xc4] sm:$0xf]  ;;  %v1573_v19 = vld [vmem:[#allocation5 + $0xd0] sm:$0xf0] }
  0x21   :  { %559 = vmatpush.bf16.msra.mxu2 %v1592_v8  ;;  %v1700_v17 = vor.u32 %v2043_v15, %v1699_v14  ;;  %v2041_v20 = vld [vmem:[#allocation5 + $0x1c4] sm:$0xf]  ;;  %v1576_v21 = vor.u32 %v2009_v18, %v1573_v19  ;;  %v1701_v22 = vld [vmem:[#allocation5 + $0x1d0] sm:$0xf0]  ;;  %v1555_v23 = vld [vmem:[#allocation5 + $0xa0] sm:$0xf] }
  0x22   :  { %578 = vmatpush.bf16.msra.mxu3 %v1720_v12  ;;  %v2007_v24 = vld [vmem:[#allocation5 + $0xac] sm:$0xf0]  ;;  %v1704_v25 = vor.u32 %v2041_v20, %v1701_v22  ;;  %v1683_v26 = vld [vmem:[#allocation5 + $0x1a0] sm:$0xf]  ;;  %v2005_v28 = vld [vmem:[#allocation5 + $0xa4] sm:$0xf] }
  0x23   :  { %v2039_v27 = vld [vmem:[#allocation5 + $0x1ac] sm:$0xf0]  ;;  %522 = vmatpush.bf16.msra.mxu0 %v1572_v16  ;;  %v1556_v29 = vor.u32 %v2007_v24, %v1555_v23  ;;  %v1557_v30 = vld [vmem:[#allocation5 + $0xb0] sm:$0xf0]  ;;  %v2037_v31 = vld [vmem:[#allocation5 + $0x1a4] sm:$0xf] }
  0x24   :  { %v1685_v32 = vld [vmem:[#allocation5 + $0x1b0] sm:$0xf0]  ;;  %541 = vmatpush.bf16.msra.mxu1 %v1700_v17  ;;  %v1684_v33 = vor.u32 %v2039_v27, %v1683_v26  ;;  %v1560_v34 = vor.u32 %v2005_v28, %v1557_v30  ;;  %v1539_v35 = vld [vmem:[#allocation5 + $0x80] sm:$0xf]  ;;  %v2003_v36 = vld [vmem:[#allocation5 + $0x8c] sm:$0xf0] }
  0x25   :  { %560 = vmatpush.bf16.msra.mxu2 %v1576_v21  ;;  %v1667_v37 = vld [vmem:[#allocation5 + $0x180] sm:$0xf]  ;;  %v1688_v38 = vor.u32 %v2037_v31, %v1685_v32  ;;  %v2035_v39 = vld [vmem:[#allocation5 + $0x18c] sm:$0xf0]  ;;  %v2001_v40 = vld [vmem:[#allocation5 + $0x84] sm:$0xf]  ;;  %v1540_v44 = vor.u32 %v2003_v36, %v1539_v35 }
  0x26   :  { %579 = vmatpush.bf16.msra.mxu3 %v1704_v25  ;;  %v1541_v41 = vld [vmem:[#allocation5 + $0x90] sm:$0xf0]  ;;  %v2033_v42 = vld [vmem:[#allocation5 + $0x184] sm:$0xf]  ;;  %v1668_v45 = vor.u32 %v2035_v39, %v1667_v37  ;;  %v1523_v47 = vld [vmem:[#allocation5 + $0x60] sm:$0xf] }
  0x27   :  { %v1669_v43 = vld [vmem:[#allocation5 + $0x190] sm:$0xf0]  ;;  %523 = vmatpush.bf16.msra.mxu0 %v1556_v29  ;;  %v1544_v46 = vor.u32 %v2001_v40, %v1541_v41  ;;  %v1999_v48 = vld [vmem:[#allocation5 + $0x6c] sm:$0xf0]  ;;  %v1651_v49 = vld [vmem:[#allocation5 + $0x160] sm:$0xf] }
  0x28   :  { %542 = vmatpush.bf16.msra.mxu1 %v1684_v33  ;;  %v1672_v50 = vor.u32 %v2033_v42, %v1669_v43  ;;  %v2031_v51 = vld [vmem:[#allocation5 + $0x16c] sm:$0xf0]  ;;  %v1997_v52 = vld [vmem:[#allocation5 + $0x64] sm:$0xf]  ;;  %v1525_v53 = vld [vmem:[#allocation5 + $0x70] sm:$0xf0]  ;;  %v1524_v56 = vor.u32 %v1999_v48, %v1523_v47 }
  0x29   :  { %561 = vmatpush.bf16.msra.mxu2 %v1560_v34  ;;  %v2029_v54 = vld [vmem:[#allocation5 + $0x164] sm:$0xf]  ;;  %v1653_v55 = vld [vmem:[#allocation5 + $0x170] sm:$0xf0]  ;;  %v1652_v57 = vor.u32 %v2031_v51, %v1651_v49  ;;  %v1528_v58 = vor.u32 %v1997_v52, %v1525_v53  ;;  %v1507_v59 = vld [vmem:[#allocation5 + $0x40] sm:$0xf] }
  0x2a   :  { %580 = vmatpush.bf16.msra.mxu3 %v1688_v38  ;;  %v1995_v60 = vld [vmem:[#allocation5 + $0x4c] sm:$0xf0]  ;;  %v1635_v61 = vld [vmem:[#allocation5 + $0x140] sm:$0xf]  ;;  %v1656_v62 = vor.u32 %v2029_v54, %v1653_v55  ;;  %v1993_v0 = vld [vmem:[#allocation5 + $0x44] sm:$0xf] }
  0x2b   :  { %524 = vmatpush.bf16.msra.mxu0 %v1540_v44  ;;  %v2027_v63 = vld [vmem:[#allocation5 + $0x14c] sm:$0xf0]  ;;  %v1509_v1 = vld [vmem:[#allocation5 + $0x50] sm:$0xf0]  ;;  %v2025_v2 = vld [vmem:[#allocation5 + $0x144] sm:$0xf]  ;;  %v1508_v4 = vor.u32 %v1995_v60, %v1507_v59 }
  0x2c   :  { %543 = vmatpush.bf16.msra.mxu1 %v1668_v45  ;;  %v1637_v3 = vld [vmem:[#allocation5 + $0x150] sm:$0xf0]  ;;  %v1636_v5 = vor.u32 %v2027_v63, %v1635_v61  ;;  %v1512_v6 = vor.u32 %v1993_v0, %v1509_v1  ;;  %v1491_v7 = vld [vmem:[#allocation5 + $0x20] sm:$0xf]  ;;  %v1991_v8 = vld [vmem:[#allocation5 + $0x2c] sm:$0xf0] }
  0x2d   :  { %562 = vmatpush.bf16.msra.mxu2 %v1544_v46  ;;  %v1619_v9 = vld [vmem:[#allocation5 + $0x120] sm:$0xf]  ;;  %v1640_v10 = vor.u32 %v2025_v2, %v1637_v3  ;;  %v2023_v11 = vld [vmem:[#allocation5 + $0x12c] sm:$0xf0]  ;;  %v1989_v12 = vld [vmem:[#allocation5 + $0x24] sm:$0xf]  ;;  %v1492_v16 = vor.u32 %v1991_v8, %v1491_v7 }
  0x2e   :  { %581 = vmatpush.bf16.msra.mxu3 %v1672_v50  ;;  %v1493_v13 = vld [vmem:[#allocation5 + $0x30] sm:$0xf0]  ;;  %v2021_v14 = vld [vmem:[#allocation5 + $0x124] sm:$0xf]  ;;  %v1475_v17 = vld [vmem:[#allocation5] sm:$0xf]  ;;  %v1620_v19 = vor.u32 %v2023_v11, %v1619_v9 }
  0x2f   :  { %525 = vmatpush.bf16.msra.mxu0 %v1524_v56  ;;  %v1621_v15 = vld [vmem:[#allocation5 + $0x130] sm:$0xf0]  ;;  %v1987_v18 = vld [vmem:[#allocation5 + $0xc] sm:$0xf0]  ;;  %v1496_v20 = vor.u32 %v1989_v12, %v1493_v13  ;;  %v1603_v21 = vld [vmem:[#allocation5 + $0x100] sm:$0xf] }
  0x30   :  { %544 = vmatpush.bf16.msra.mxu1 %v1652_v57  ;;  %v2019_v22 = vld [vmem:[#allocation5 + $0x10c] sm:$0xf0]  ;;  %v1985_v23 = vld [vmem:[#allocation5 + $0x4] sm:$0xf]  ;;  %v1624_v24 = vor.u32 %v2021_v14, %v1621_v15  ;;  %v1477_v25 = vld [vmem:[#allocation5 + $0x10] sm:$0xf0]  ;;  %v1476_v31 = vor.u32 %v1987_v18, %v1475_v17 }
  0x31   :  { %563 = vmatpush.bf16.msra.mxu2 %v1528_v58  ;;  %v2017_v26 = vld [vmem:[#allocation5 + $0x104] sm:$0xf]  ;;  %v1605_v27 = vld [vmem:[#allocation5 + $0x110] sm:$0xf0]  ;;  %v2014_v29 = vld [vmem:[#allocation5 + $0xec] sm:$0xf]  ;;  %v1604_v35 = vor.u32 %v2019_v22, %v1603_v21  ;;  %v1480_v36 = vor.u32 %v1985_v23, %v1477_v25 }
  0x32   :  { %582 = vmatpush.bf16.msra.mxu3 %v1656_v62  ;;  %v115_v28 = vld [vmem:[#allocation2] sm:$0xff]  ;;  %v1597_v30 = vld [vmem:[#allocation5 + $0xf8] sm:$0xf0]  ;;  %v117_v32 = vld [vmem:[#allocation2 + $0x10] sm:$0xff]  ;;  %v1608_v39 = vor.u32 %v2017_v26, %v1605_v27  ;;  %s1457_s13 = sshll.u32 %s2718_s7, 4  ;;  %s1458_s13 = int_to_ptr.hbm [resolvable:$true] %s1457_s13 }
  0x33   :  { %526 = vmatpush.bf16.msra.mxu0 %v1508_v4  ;;  %v1723_v33 = vld [vmem:[#allocation5 + $0x1e8] sm:$0xf]  ;;  %v2048_v34 = vld [vmem:[#allocation5 + $0x1f4] sm:$0xf0]  ;;  %v1600_v40 = vor.u32 %v2014_v29, %v1597_v30  ;;  %v2046_v43 = vld [vmem:[#allocation5 + $0x1ec] sm:$0xf]  ;;  %v2385_v44 = vpack.c.bf16 %v117_v32, %v115_v28 }
  0x34   :  { %545 = vmatpush.bf16.msra.mxu1 %v1636_v5  ;;  %v116_v37 = vld [vmem:[#allocation2 + $0x8] sm:$0xff]  ;;  %v118_v38 = vld [vmem:[#allocation2 + $0x18] sm:$0xff]  ;;  %v1724_v45 = vor.u32 %v2048_v34, %v1723_v33  ;;  %v121_v23 = vld [vmem:[#allocation2 + $0x30] sm:$0xff] }
  0x35   :  { %564 = vmatpush.bf16.msra.mxu2 %v1512_v6  ;;  %v1595_v41 = vld [vmem:[#allocation5 + $0xe8] sm:$0xf]  ;;  %v2016_v42 = vld [vmem:[#allocation5 + $0xf4] sm:$0xf0]  ;;  %v1725_v46 = vld [vmem:[#allocation5 + $0x1f8] sm:$0xf0]  ;;  %v2387_v49 = vpack.c.bf16 %v118_v38, %v116_v37 }
  0x36   :  { %583 = vmatpush.bf16.msra.mxu3 %v1640_v10  ;;  %v2010_v47 = vld [vmem:[#allocation5 + $0xcc] sm:$0xf]  ;;  %v1581_v48 = vld [vmem:[#allocation5 + $0xd8] sm:$0xf0]  ;;  %v1707_v50 = vld [vmem:[#allocation5 + $0x1c8] sm:$0xf]  ;;  %v1596_v52 = vor.u32 %v2016_v42, %v1595_v41  ;;  %v1728_v53 = vor.u32 %v2046_v43, %v1725_v46 }
  0x37   :  { %527 = vmatpush.bf16.msra.mxu0 %v1492_v16  ;;  %v2044_v51 = vld [vmem:[#allocation5 + $0x1d4] sm:$0xf0]  ;;  %v1584_v54 = vor.u32 %v2010_v47, %v1581_v48  ;;  %v1579_v55 = vld [vmem:[#allocation5 + $0xc8] sm:$0xf]  ;;  %v2042_v57 = vld [vmem:[#allocation5 + $0x1cc] sm:$0xf] }
  0x38   :  { %546 = vmatpush.bf16.msra.mxu1 %v1620_v19  ;;  %v2012_v56 = vld [vmem:[#allocation5 + $0xd4] sm:$0xf0]  ;;  %v1708_v58 = vor.u32 %v2044_v51, %v1707_v50  ;;  %v1709_v59 = vld [vmem:[#allocation5 + $0x1d8] sm:$0xf0]  ;;  %v2006_v60 = vld [vmem:[#allocation5 + $0xac] sm:$0xf] }
  0x39   :  { %565 = vmatpush.bf16.msra.mxu2 %v1496_v20  ;;  %v1565_v61 = vld [vmem:[#allocation5 + $0xb8] sm:$0xf0]  ;;  %v1691_v62 = vld [vmem:[#allocation5 + $0x1a8] sm:$0xf]  ;;  %v2040_v63 = vld [vmem:[#allocation5 + $0x1b4] sm:$0xf0]  ;;  %v1580_v0 = vor.u32 %v2012_v56, %v1579_v55  ;;  %v1712_v1 = vor.u32 %v2042_v57, %v1709_v59 }
  0x3a   :  { %584 = vmatpush.bf16.msra.mxu3 %v1624_v24  ;;  %v1568_v2 = vor.u32 %v2006_v60, %v1565_v61  ;;  %v1563_v3 = vld [vmem:[#allocation5 + $0xa8] sm:$0xf]  ;;  %v2008_v4 = vld [vmem:[#allocation5 + $0xb4] sm:$0xf0]  ;;  %v2038_v5 = vld [vmem:[#allocation5 + $0x1ac] sm:$0xf]  ;;  %v1692_v6 = vor.u32 %v2040_v63, %v1691_v62 }
  0x3b   :  { %528 = vmatpush.bf16.msra.mxu0 %v1476_v31  ;;  %v1693_v7 = vld [vmem:[#allocation5 + $0x1b8] sm:$0xf0]  ;;  %v2002_v8 = vld [vmem:[#allocation5 + $0x8c] sm:$0xf]  ;;  %v1675_v10 = vld [vmem:[#allocation5 + $0x188] sm:$0xf]  ;;  %v1564_v12 = vor.u32 %v2008_v4, %v1563_v3 }
  0x3c   :  { %547 = vmatpush.bf16.msra.mxu1 %v1604_v35  ;;  %v1549_v9 = vld [vmem:[#allocation5 + $0x98] sm:$0xf0]  ;;  %v2036_v11 = vld [vmem:[#allocation5 + $0x194] sm:$0xf0]  ;;  %v1547_v13 = vld [vmem:[#allocation5 + $0x88] sm:$0xf]  ;;  %v1696_v14 = vor.u32 %v2038_v5, %v1693_v7 }
  0x3d   :  { %566 = vmatpush.bf16.msra.mxu2 %v1480_v36  ;;  %v1552_v15 = vor.u32 %v2002_v8, %v1549_v9  ;;  %v2004_v16 = vld [vmem:[#allocation5 + $0x94] sm:$0xf0]  ;;  %v2034_v17 = vld [vmem:[#allocation5 + $0x18c] sm:$0xf]  ;;  %v1677_v18 = vld [vmem:[#allocation5 + $0x198] sm:$0xf0]  ;;  %v1676_v19 = vor.u32 %v2036_v11, %v1675_v10 }
  0x3e   :  { %585 = vmatpush.bf16.msra.mxu3 %v1608_v39  ;;  %529 = vmatmul.bf16.vlgmr.msra.gmra.mxu0 %v2385_v44  ;;  %v119_v20 = vld [vmem:[#allocation2 + $0x20] sm:$0xff]  ;;  %v1998_v21 = vld [vmem:[#allocation5 + $0x6c] sm:$0xf]  ;;  %v1533_v22 = vld [vmem:[#allocation5 + $0x78] sm:$0xf0]  ;;  %v1548_v26 = vor.u32 %v2004_v16, %v1547_v13  ;;  %v1680_v29 = vor.u32 %v2034_v17, %v1677_v18 }
  0x3f   :  { %548 = vmatmul.bf16.vlgmr.msra.gmra.mxu1 %v2387_v49  ;;  %597 = vmatpush.bf16.msrb.mxu0 %v1596_v52  ;;  %v1659_v24 = vld [vmem:[#allocation5 + $0x168] sm:$0xf]  ;;  %v2032_v25 = vld [vmem:[#allocation5 + $0x174] sm:$0xf0]  ;;  %v1536_v30 = vor.u32 %v1998_v21, %v1533_v22  ;;  %v2030_v33 = vld [vmem:[#allocation5 + $0x16c] sm:$0xf]  ;;  %v2393_v34 = vpack.c.bf16 %v121_v23, %v119_v20 }
  0x40   :  { %616 = vmatpush.bf16.msrb.mxu1 %v1724_v45  ;;  %567 = vmatmul.bf16.vlgmr.msra.gmra.mxu2 %v2385_v44  ;;  %v120_v27 = vld [vmem:[#allocation2 + $0x28] sm:$0xff]  ;;  %v122_v28 = vld [vmem:[#allocation2 + $0x38] sm:$0xff]  ;;  %v1660_v35 = vor.u32 %v2032_v25, %v1659_v24 }
  0x41   :  { %635 = vmatpush.bf16.msrb.mxu2 %v1600_v40  ;;  %586 = vmatmul.bf16.vlgmr.msra.gmra.mxu3 %v2387_v49  ;;  %v1531_v31 = vld [vmem:[#allocation5 + $0x68] sm:$0xf]  ;;  %v2000_v32 = vld [vmem:[#allocation5 + $0x74] sm:$0xf0]  ;;  %v1661_v36 = vld [vmem:[#allocation5 + $0x178] sm:$0xf0]  ;;  %v2395_v39 = vpack.c.bf16 %v122_v28, %v120_v27 }
  0x42   :  { %654 = vmatpush.bf16.msrb.mxu3 %v1728_v53  ;;  %v1994_v37 = vld [vmem:[#allocation5 + $0x4c] sm:$0xf]  ;;  %v1517_v38 = vld [vmem:[#allocation5 + $0x58] sm:$0xf0]  ;;  %v1643_v40 = vld [vmem:[#allocation5 + $0x148] sm:$0xf]  ;;  %v1532_v42 = vor.u32 %v2000_v32, %v1531_v31  ;;  %v1664_v43 = vor.u32 %v2030_v33, %v1661_v36 }
  0x43   :  { %598 = vmatpush.bf16.msrb.mxu0 %v1580_v0  ;;  %v2028_v41 = vld [vmem:[#allocation5 + $0x154] sm:$0xf0]  ;;  %v1520_v45 = vor.u32 %v1994_v37, %v1517_v38  ;;  %v1515_v46 = vld [vmem:[#allocation5 + $0x48] sm:$0xf]  ;;  %v2026_v48 = vld [vmem:[#allocation5 + $0x14c] sm:$0xf] }
  0x44   :  { %617 = vmatpush.bf16.msrb.mxu1 %v1708_v58  ;;  %v1996_v47 = vld [vmem:[#allocation5 + $0x54] sm:$0xf0]  ;;  %v1644_v50 = vor.u32 %v2028_v41, %v1643_v40  ;;  %v1645_v51 = vld [vmem:[#allocation5 + $0x158] sm:$0xf0]  ;;  %v1990_v52 = vld [vmem:[#allocation5 + $0x2c] sm:$0xf] }
  0x45   :  { %636 = vmatpush.bf16.msrb.mxu2 %v1584_v54  ;;  %v1501_v53 = vld [vmem:[#allocation5 + $0x38] sm:$0xf0]  ;;  %v1627_v54 = vld [vmem:[#allocation5 + $0x128] sm:$0xf]  ;;  %v2024_v55 = vld [vmem:[#allocation5 + $0x134] sm:$0xf0]  ;;  %v1516_v56 = vor.u32 %v1996_v47, %v1515_v46  ;;  %v1648_v57 = vor.u32 %v2026_v48, %v1645_v51 }
  0x46   :  { %655 = vmatpush.bf16.msrb.mxu3 %v1712_v1  ;;  %v1504_v58 = vor.u32 %v1990_v52, %v1501_v53  ;;  %v1499_v59 = vld [vmem:[#allocation5 + $0x28] sm:$0xf]  ;;  %v1992_v60 = vld [vmem:[#allocation5 + $0x34] sm:$0xf0]  ;;  %v2022_v61 = vld [vmem:[#allocation5 + $0x12c] sm:$0xf]  ;;  %v1628_v62 = vor.u32 %v2024_v55, %v1627_v54 }
  0x47   :  { %599 = vmatpush.bf16.msrb.mxu0 %v1564_v12  ;;  %v1629_v63 = vld [vmem:[#allocation5 + $0x138] sm:$0xf0]  ;;  %v1986_v0 = vld [vmem:[#allocation5 + $0xc] sm:$0xf]  ;;  %v2020_v3 = vld [vmem:[#allocation5 + $0x114] sm:$0xf0]  ;;  %v1500_v4 = vor.u32 %v1992_v60, %v1499_v59 }
  0x48   :  { %618 = vmatpush.bf16.msrb.mxu1 %v1692_v6  ;;  %v1485_v1 = vld [vmem:[#allocation5 + $0x18] sm:$0xf0]  ;;  %v1632_v5 = vor.u32 %v2022_v61, %v1629_v63  ;;  %v1483_v7 = vld [vmem:[#allocation5 + $0x8] sm:$0xf]  ;;  %v1988_v8 = vld [vmem:[#allocation5 + $0x14] sm:$0xf0] }
  0x49   :  { %637 = vmatpush.bf16.msrb.mxu2 %v1568_v2  ;;  %v1611_v2 = vld [vmem:[#allocation5 + $0x108] sm:$0xf]  ;;  %v1488_v6 = vor.u32 %v1986_v0, %v1485_v1  ;;  %v2018_v10 = vld [vmem:[#allocation5 + $0x10c] sm:$0xf]  ;;  %v1613_v11 = vld [vmem:[#allocation5 + $0x118] sm:$0xf0]  ;;  %v1484_v12 = vor.u32 %v1988_v8, %v1483_v7 }
  0x4a   :  { %656 = vmatpush.bf16.msrb.mxu3 %v1696_v14  ;;  %v1612_v9 = vor.u32 %v2020_v3, %v1611_v2  ;;  %v1616_v13 = vor.u32 %v2018_v10, %v1613_v11 }
  0x4b   :  { %600 = vmatpush.bf16.msrb.mxu0 %v1548_v26 }
  0x4c   :  { %619 = vmatpush.bf16.msrb.mxu1 %v1676_v19 }
  0x4d   :  { %638 = vmatpush.bf16.msrb.mxu2 %v1552_v15 }
  0x4e   :  { %657 = vmatpush.bf16.msrb.mxu3 %v1680_v29  ;;  %534 = vmatmul.bf16.gmra.mxu0 %v2393_v34 }
  0x4f   :  { %553 = vmatmul.bf16.gmra.mxu1 %v2395_v39  ;;  %601 = vmatpush.bf16.msrb.mxu0 %v1532_v42 }
  0x50   :  { %620 = vmatpush.bf16.msrb.mxu1 %v1660_v35  ;;  %572 = vmatmul.bf16.gmra.mxu2 %v2393_v34 }
  0x51   :  { %639 = vmatpush.bf16.msrb.mxu2 %v1536_v30  ;;  %591 = vmatmul.bf16.gmra.mxu3 %v2395_v39 }
  0x52   :  { %658 = vmatpush.bf16.msrb.mxu3 %v1664_v43 }
  0x53   :  { %602 = vmatpush.bf16.msrb.mxu0 %v1516_v56 }
  0x54   :  { %621 = vmatpush.bf16.msrb.mxu1 %v1644_v50 }
  0x55   :  { %640 = vmatpush.bf16.msrb.mxu2 %v1520_v45 }
  0x56   :  { %659 = vmatpush.bf16.msrb.mxu3 %v1648_v57 }
  0x57   :  { %603 = vmatpush.bf16.msrb.mxu0 %v1500_v4 }
  0x58   :  { %622 = vmatpush.bf16.msrb.mxu1 %v1628_v62 }
  0x59   :  { %641 = vmatpush.bf16.msrb.mxu2 %v1504_v58 }
  0x5a   :  { %660 = vmatpush.bf16.msrb.mxu3 %v1632_v5 }
  0x5b   :  { %604 = vmatpush.bf16.msrb.mxu0 %v1484_v12 }
  0x5c   :  { %623 = vmatpush.bf16.msrb.mxu1 %v1612_v9 }
  0x5d   :  { %642 = vmatpush.bf16.msrb.mxu2 %v1488_v6 }
  0x5e   :  { %661 = vmatpush.bf16.msrb.mxu3 %v1616_v13  ;;  %605 = vmatmul.bf16.vlgmr.msrb.gmra.mxu0 %v2385_v44 }
  0x5f   :  { %624 = vmatmul.bf16.vlgmr.msrb.gmra.mxu1 %v2387_v49 }
  0x60   :  { %643 = vmatmul.bf16.vlgmr.msrb.gmra.mxu2 %v2385_v44 }
  0x61   :  { %662 = vmatmul.bf16.vlgmr.msrb.gmra.mxu3 %v2387_v49  ;;  %v191_v49 = vld [vmem:[#allocation7] sm:$0xf] }
  0x62   :  { %v2411_v26 = vperm.slane %v191_v49, 1  ;;  %v2415_v28 = vperm.slane %v191_v49, 0  ;;  %v2418_v30 = vperm.slane %v191_v49, 2  ;;  %v2427_v42 = vperm.slane %v191_v49, 3 }
  0x6e   :  { %610 = vmatmul.bf16.gmra.mxu0 %v2393_v34 }
  0x6f   :  { %629 = vmatmul.bf16.gmra.mxu1 %v2395_v39 }
  0x70   :  { %648 = vmatmul.bf16.gmra.mxu2 %v2393_v34 }
  0x71   :  { %667 = vmatmul.bf16.gmra.mxu3 %v2395_v39 }
  0xbb   :  { %v530_v14 = vpop.f32.mrf.mxu0 }
  0xbc   :  { %v549_v15 = vpop.f32.mrf.mxu1  ;;  %v531_v31 = vadd.f32 %v530_v14, %v2415_v28 }
  0xbe   :  { %v550_v38 = vadd.f32 %v549_v15, %v531_v31 }
  0xc0   :  { %v2430_v45 = vmax.f32 %v550_v38, 0.0 }
  0xc2   :  { %v709_v57 = vmul.f32 %v2430_v45, %v2430_v45 }
  0xc3   :  { %v568_v16 = vpop.f32.mrf.mxu2  ;;  %v532_v18 = vpop.f32.mrf.mxu0 }
  0xc4   :  { %v587_v17 = vpop.f32.mrf.mxu3  ;;  %v551_v19 = vpop.f32.mrf.mxu1  ;;  %v569_v29 = vadd.f32 %v568_v16, %v2411_v26  ;;  %v533_v43 = vadd.f32 %v532_v18, %v2415_v28 }
  0xc6   :  { %v588_v34 = vadd.f32 %v587_v17, %v569_v29  ;;  %v552_v55 = vadd.f32 %v551_v19, %v533_v43 }
  0xc8   :  { %v2425_v41 = vmax.f32 %v588_v34, 0.0  ;;  %v2450_v3 = vmax.f32 %v552_v55, 0.0 }
  0xca   :  { %v710_v51 = vmul.f32 %v2425_v41, %v2425_v41  ;;  %v689_v59 = vadd.f32 %v2425_v41, %v2430_v45  ;;  %v713_v17 = vmul.f32 %v2450_v3, %v2450_v3 }
  0xcb   :  { %v570_v20 = vpop.f32.mrf.mxu2  ;;  %v535_v22 = vpop.f32.mrf.mxu0 }
  0xcc   :  { %v589_v21 = vpop.f32.mrf.mxu3  ;;  %v554_v44 = vpop.f32.mrf.mxu1  ;;  %v571_v39 = vadd.f32 %v570_v20, %v2411_v26  ;;  %v725_v2 = vadd.f32 %v710_v51, %v709_v57  ;;  %v536_v4 = vadd.f32 %v535_v22, %v2415_v28 }
  0xce   :  { %v590_v47 = vadd.f32 %v589_v21, %v571_v39  ;;  %v555_v18 = vadd.f32 %v554_v44, %v536_v4 }
  0xd0   :  { %v2444_v61 = vmax.f32 %v590_v47, 0.0  ;;  %v2474_v34 = vmax.f32 %v555_v18, 0.0  ;;  %v1915_v18 = vld [vmem:[#allocation11 + $0x170] sm:$0xf] }
  0xd2   :  { %v714_v9 = vmul.f32 %v2444_v61, %v2444_v61  ;;  %v694_v21 = vadd.f32 %v2444_v61, %v2450_v3  ;;  %v717_v51 = vmul.f32 %v2474_v34, %v2474_v34 }
  0xd3   :  { %v573_v23 = vpop.f32.mrf.mxu2  ;;  %v2409_v25 = vpop.f32.mrf.mxu0 }
  0xd4   :  { %v592_v24 = vpop.f32.mrf.mxu3  ;;  %v2413_v27 = vpop.f32.mrf.mxu1  ;;  %v574_v63 = vadd.f32 %v573_v23, %v2411_v26  ;;  %v730_v49 = vadd.f32 %v714_v9, %v713_v17 }
  0xd6   :  { %v593_v12 = vadd.f32 %v592_v24, %v574_v63 }
  0xd8   :  { %v2468_v24 = vmax.f32 %v593_v12, 0.0 }
  0xdb   :  { %v575_v32 = vpop.f32.mrf.mxu2  ;;  %v606_v35 = vpop.f32.mrf.mxu0 }
  0xdc   :  { %v2421_v33 = vpop.f32.mrf.mxu3  ;;  %v625_v36 = vpop.f32.mrf.mxu1  ;;  %v607_v37 = vadd.f32 %v606_v35, %v2418_v30  ;;  %v576_v29 = vadd.f32 %v575_v32, %v2411_v26  ;;  %v538_v35 = vadd.f32 %v2409_v25, %v2415_v28  ;;  %v718_v26 = vmul.f32 %v2468_v24, %v2468_v24 }
  0xde   :  { %v626_v40 = vadd.f32 %v625_v36, %v607_v37  ;;  %v595_v32 = vadd.f32 %v2421_v33, %v576_v29  ;;  %v557_v28 = vadd.f32 %v2413_v27, %v538_v35  ;;  %v1979_v35 = vld [vmem:[#allocation11 + $0x1f0] sm:$0xf] }
  0xe0   :  { %v2432_v46 = vmax.f32 %v626_v40, 0.0 }
  0xe2   :  { %v711_v60 = vmul.f32 %v2432_v46, %v2432_v46  ;;  %v690_v1 = vadd.f32 %v689_v59, %v2432_v46 }
  0xe3   :  { %v644_v48 = vpop.f32.mrf.mxu2  ;;  %v608_v53 = vpop.f32.mrf.mxu0 }
  0xe4   :  { %v663_v50 = vpop.f32.mrf.mxu3  ;;  %v645_v52 = vadd.f32 %v644_v48, %v2427_v42  ;;  %v627_v54 = vpop.f32.mrf.mxu1  ;;  %v609_v56 = vadd.f32 %v608_v53, %v2418_v30  ;;  %v726_v8 = vadd.f32 %v725_v2, %v711_v60 }
  0xe6   :  { %v664_v58 = vadd.f32 %v663_v50, %v645_v52  ;;  %v628_v62 = vadd.f32 %v627_v54, %v609_v56  ;;  %v699_v54 = vadd.f32 %v2468_v24, %v2474_v34  ;;  %v2495_v56 = vmax.f32 %v595_v32, 0.0  ;;  %v2062_v32 = vld [vmem:[#allocation11 + $0x64] sm:$0xf0] }
  0xe8   :  { %v2447_v0 = vmax.f32 %v664_v58, 0.0  ;;  %v2453_v5 = vmax.f32 %v628_v62, 0.0  ;;  %v2500_v58 = vmax.f32 %v557_v28, 0.0  ;;  %v722_v2 = vmul.f32 %v2495_v56, %v2495_v56 }
  0xea   :  { %v691_v6 = vadd.f32 %v690_v1, %v2447_v0  ;;  %v712_v7 = vmul.f32 %v2447_v0, %v2447_v0  ;;  %v715_v22 = vmul.f32 %v2453_v5, %v2453_v5  ;;  %v695_v44 = vadd.f32 %v694_v21, %v2453_v5 }
  0xeb   :  { %v646_v10 = vpop.f32.mrf.mxu2  ;;  %v611_v14 = vpop.f32.mrf.mxu0 }
  0xec   :  { %v665_v11 = vpop.f32.mrf.mxu3  ;;  %v647_v13 = vadd.f32 %v646_v10, %v2427_v42  ;;  %692 = vadd.xlane.f32.xlu0 %v691_v6  ;;  %v630_v15 = vpop.f32.mrf.mxu1  ;;  %v727_v16 = vadd.f32 %v726_v8, %v712_v7  ;;  %v612_v19 = vadd.f32 %v611_v14, %v2418_v30  ;;  %v731_v39 = vadd.f32 %v730_v49, %v715_v22  ;;  %v2064_v22 = vld [vmem:[#allocation11 + $0x74] sm:$0xf0] }
  0xed   :  { %v721_v8 = vmul.f32 %v2500_v58, %v2500_v58  ;;  %v704_v10 = vadd.f32 %v2495_v56, %v2500_v58  ;;  %v2080_v49 = vld [vmem:[#allocation11 + $0xf4] sm:$0xf0] }
  0xee   :  { %v666_v20 = vadd.f32 %v665_v11, %v647_v13  ;;  %728 = vadd.xlane.f32.xlu1 %v727_v16  ;;  %v631_v23 = vadd.f32 %v630_v15, %v612_v19  ;;  %v2096_v19 = vld [vmem:[#allocation11 + $0x174] sm:$0xf0] }
  0xef   :  { %v740_v14 = vadd.f32 %v722_v2, %v721_v8  ;;  %v1916_v21 = vor.u32 %v2096_v19, %v1915_v18  ;;  %v2108_v2 = vld [vmem:[#allocation11 + $0x1d4] sm:$0xf0]  ;;  %v1763_v8 = vld [vmem:[#allocation11 + $0x40] sm:$0xf]  ;;  %v1883_v18 = vld [vmem:[#allocation11 + $0x130] sm:$0xf] }
  0xf0   :  { %v2471_v31 = vmax.f32 %v666_v20, 0.0  ;;  %v2478_v36 = vmax.f32 %v631_v23, 0.0  ;;  %v1787_v20 = vld [vmem:[#allocation11 + $0x70] sm:$0xf]  ;;  %v2088_v19 = vld [vmem:[#allocation11 + $0x134] sm:$0xf0] }
  0xf1   :  { %v1851_v23 = vld [vmem:[#allocation11 + $0xf0] sm:$0xf]  ;;  %v1788_v29 = vor.u32 %v2064_v22, %v1787_v20  ;;  %1329 = vmatpush.bf16.msra.mxu2 %v1916_v21  ;;  %v1884_v21 = vor.u32 %v2088_v19, %v1883_v18  ;;  %v2056_v22 = vld [vmem:[#allocation11 + $0x34] sm:$0xf0]  ;;  %v1731_v18 = vld [vmem:[#allocation11] sm:$0xf] }
  0xf2   :  { %v696_v37 = vadd.f32 %v695_v44, %v2471_v31  ;;  %v716_v38 = vmul.f32 %v2471_v31, %v2471_v31  ;;  %v719_v33 = vmul.f32 %v2478_v36, %v2478_v36  ;;  %v700_v27 = vadd.f32 %v699_v54, %v2478_v36  ;;  %v2092_v54 = vld [vmem:[#allocation11 + $0x154] sm:$0xf0]  ;;  %v1755_v20 = vld [vmem:[#allocation11 + $0x30] sm:$0xf]  ;;  %v2050_v19 = vld [vmem:[#allocation11 + $0x4] sm:$0xf0] }
  0xf3   :  { %v649_v40 = vpop.f32.mrf.mxu2  ;;  %v613_v48 = vpop.f32.mrf.mxu0  ;;  %v1852_v44 = vor.u32 %v2080_v49, %v1851_v23  ;;  %1291 = vmatpush.bf16.msra.mxu0 %v1788_v29  ;;  %v1819_v23 = vld [vmem:[#allocation11 + $0xb0] sm:$0xf]  ;;  %v2072_v49 = vld [vmem:[#allocation11 + $0xb4] sm:$0xf0]  ;;  %v1756_v29 = vor.u32 %v2056_v22, %v1755_v20  ;;  %v1732_v22 = vor.u32 %v2050_v19, %v1731_v18  ;;  %v2077_v19 = vld [vmem:[#allocation11 + $0xe4] sm:$0xf] }
  0xf4   :  { %v668_v43 = vpop.f32.mrf.mxu3  ;;  %v650_v47 = vadd.f32 %v649_v40, %v2427_v42  ;;  %697 = vadd.xlane.f32.xlu0 %v696_v37  ;;  %v732_v25 = vadd.f32 %v731_v39, %v716_v38  ;;  %v614_v50 = vadd.f32 %v613_v48, %v2418_v30  ;;  %v632_v53 = vpop.f32.mrf.mxu1  ;;  %v735_v30 = vadd.f32 %v718_v26, %v717_v51  ;;  %v2112_v37 = vld [vmem:[#allocation11 + $0x1f4] sm:$0xf0]  ;;  %v1907_v39 = vld [vmem:[#allocation11 + $0x160] sm:$0xf]  ;;  %v2094_v40 = vld [vmem:[#allocation11 + $0x164] sm:$0xf0] }
  0xf5   :  { %v1980_v38 = vor.u32 %v2112_v37, %v1979_v35  ;;  %1310 = vmatpush.bf16.msra.mxu1 %v1852_v44  ;;  %v1908_v26 = vor.u32 %v2094_v40, %v1907_v39  ;;  %v2078_v48 = vld [vmem:[#allocation11 + $0xe4] sm:$0xf0]  ;;  %v1820_v44 = vor.u32 %v2072_v49, %v1819_v23  ;;  %v1947_v35 = vld [vmem:[#allocation11 + $0x1b0] sm:$0xf]  ;;  %v2104_v37 = vld [vmem:[#allocation11 + $0x1b4] sm:$0xf0] }
  0xf6   :  { %v669_v52 = vadd.f32 %v668_v43, %v650_v47  ;;  %733 = vadd.xlane.f32.xlu1 %v732_v25  ;;  %v633_v55 = vadd.f32 %v632_v53, %v614_v50  ;;  %v736_v63 = vadd.f32 %v735_v30, %v719_v33  ;;  %v1779_v43 = vld [vmem:[#allocation11 + $0x60] sm:$0xf]  ;;  %v2110_v51 = vld [vmem:[#allocation11 + $0x1e4] sm:$0xf0]  ;;  %v1899_v53 = vld [vmem:[#allocation11 + $0x150] sm:$0xf] }
  0xf7   :  { %1348 = vmatpush.bf16.msra.mxu3 %v1980_v38  ;;  %v1843_v47 = vld [vmem:[#allocation11 + $0xe0] sm:$0xf]  ;;  %v1780_v25 = vor.u32 %v2062_v32, %v1779_v43  ;;  %1330 = vmatpush.bf16.msra.mxu2 %v1908_v26  ;;  %v1771_v33 = vld [vmem:[#allocation11 + $0x50] sm:$0xf]  ;;  %v1948_v38 = vor.u32 %v2104_v37, %v1947_v35  ;;  %v2086_v43 = vld [vmem:[#allocation11 + $0x124] sm:$0xf0] }
  0xf8   :  { %v2497_v57 = vmax.f32 %v669_v52, 0.0  ;;  %v2502_v59 = vmax.f32 %v633_v55, 0.0  ;;  %v1844_v28 = vor.u32 %v2078_v48, %v1843_v47  ;;  %v1971_v50 = vld [vmem:[#allocation11 + $0x1e0] sm:$0xf]  ;;  %v1900_v55 = vor.u32 %v2092_v54, %v1899_v53  ;;  %v1835_v30 = vld [vmem:[#allocation11 + $0xd0] sm:$0xf] }
  0xf9   :  { %v1972_v52 = vor.u32 %v2110_v51, %v1971_v50  ;;  %1292 = vmatpush.bf16.msra.mxu0 %v1780_v25  ;;  %v1875_v40 = vld [vmem:[#allocation11 + $0x120] sm:$0xf]  ;;  %v2054_v48 = vld [vmem:[#allocation11 + $0x24] sm:$0xf0] }
  0xfa   :  { %v701_v60 = vadd.f32 %v700_v27, %v2497_v57  ;;  %v720_v62 = vmul.f32 %v2497_v57, %v2497_v57  ;;  %v723_v11 = vmul.f32 %v2502_v59, %v2502_v59  ;;  %v705_v13 = vadd.f32 %v704_v10, %v2502_v59  ;;  %1311 = vmatpush.bf16.msra.mxu1 %v1844_v28  ;;  %v2060_v27 = vld [vmem:[#allocation11 + $0x54] sm:$0xf0]  ;;  %v2058_v10 = vld [vmem:[#allocation11 + $0x44] sm:$0xf0]  ;;  %v1747_v26 = vld [vmem:[#allocation11 + $0x20] sm:$0xf] }
  0xfb   :  { %v651_v1 = vpop.f32.mrf.mxu2  ;;  %1349 = vmatpush.bf16.msra.mxu3 %v1972_v52  ;;  %1331 = vmatpush.bf16.msra.mxu2 %v1900_v55  ;;  %v1876_v47 = vor.u32 %v2086_v43, %v1875_v40  ;;  %v1811_v25 = vld [vmem:[#allocation11 + $0xa0] sm:$0xf]  ;;  %v1748_v50 = vor.u32 %v2054_v48, %v1747_v26  ;;  %v2070_v51 = vld [vmem:[#allocation11 + $0xa4] sm:$0xf0]  ;;  %v2095_v26 = vld [vmem:[#allocation11 + $0x174] sm:$0xf] }
  0xfc   :  { %v652_v4 = vadd.f32 %v651_v1, %v2427_v42  ;;  %702 = vadd.xlane.f32.xlu2 %v701_v60  ;;  %v737_v6 = vadd.f32 %v736_v63, %v720_v62  ;;  %v670_v7 = vpop.f32.mrf.mxu3  ;;  %v741_v16 = vadd.f32 %v740_v14, %v723_v11  ;;  %v2076_v60 = vld [vmem:[#allocation11 + $0xd4] sm:$0xf0]  ;;  %v1772_v62 = vor.u32 %v2060_v27, %v1771_v33  ;;  %v1963_v1 = vld [vmem:[#allocation11 + $0x1d0] sm:$0xf]  ;;  %v1827_v11 = vld [vmem:[#allocation11 + $0xc0] sm:$0xf] }
  0xfd   :  { %v1836_v63 = vor.u32 %v2076_v60, %v1835_v30  ;;  %v1764_v14 = vor.u32 %v2058_v10, %v1763_v8  ;;  %v1939_v52 = vld [vmem:[#allocation11 + $0x1a0] sm:$0xf]  ;;  %v2102_v53 = vld [vmem:[#allocation11 + $0x1a4] sm:$0xf0]  ;;  %v1812_v55 = vor.u32 %v2070_v51, %v1811_v25  ;;  %v1867_v30 = vld [vmem:[#allocation11 + $0x110] sm:$0xf] }
  0xfe   :  { %v671_v9 = vadd.f32 %v670_v7, %v652_v4  ;;  %738 = vadd.xlane.f32.xlu0 %v737_v6  ;;  %v1964_v4 = vor.u32 %v2108_v2, %v1963_v1  ;;  %1293 = vmatpush.bf16.msra.mxu0 %v1772_v62  ;;  %v1891_v6 = vld [vmem:[#allocation11 + $0x140] sm:$0xf]  ;;  %v2090_v7 = vld [vmem:[#allocation11 + $0x144] sm:$0xf0]  ;;  %v1940_v27 = vor.u32 %v2102_v53, %v1939_v52  ;;  %v2084_v60 = vld [vmem:[#allocation11 + $0x114] sm:$0xf0] }
  0xff   :  { %1312 = vmatpush.bf16.msra.mxu1 %v1836_v63  ;;  %v1868_v62 = vor.u32 %v2084_v60, %v1867_v30  ;;  %v1739_v63 = vld [vmem:[#allocation11 + $0x10] sm:$0xf]  ;;  %v2052_v1 = vld [vmem:[#allocation11 + $0x14] sm:$0xf0]  ;;  %v1795_v23 = vld [vmem:[#allocation11 + $0x80] sm:$0xf] }
 0x100   :  { %v2516_v12 = vmax.f32 %v671_v9, 0.0  ;;  %1350 = vmatpush.bf16.msra.mxu3 %v1964_v4  ;;  %v1892_v9 = vor.u32 %v2090_v7, %v1891_v6  ;;  %v1803_v2 = vld [vmem:[#allocation11 + $0x90] sm:$0xf]  ;;  %v1740_v6 = vor.u32 %v2052_v1, %v1739_v63  ;;  %v2068_v7 = vld [vmem:[#allocation11 + $0x94] sm:$0xf0] }
 0x101   :  { %v1931_v8 = vld [vmem:[#allocation11 + $0x190] sm:$0xf]  ;;  %v1804_v10 = vor.u32 %v2068_v7, %v1803_v2  ;;  %v2066_v49 = vld [vmem:[#allocation11 + $0x84] sm:$0xf0]  ;;  %v2063_v48 = vld [vmem:[#allocation11 + $0x74] sm:$0xf] }
 0x102   :  { %v706_v42 = vadd.f32 %v705_v13, %v2516_v12  ;;  %v724_v15 = vmul.f32 %v2516_v12, %v2516_v12  ;;  %v2074_v13 = vld [vmem:[#allocation11 + $0xc4] sm:$0xf0]  ;;  %1332 = vmatpush.bf16.msra.mxu2 %v1892_v9  ;;  %1294 = vmatpush.bf16.msra.mxu0 %v1764_v14  ;;  %v2100_v9 = vld [vmem:[#allocation11 + $0x194] sm:$0xf0]  ;;  %v1796_v40 = vor.u32 %v2066_v49, %v1795_v23  ;;  %v2079_v51 = vld [vmem:[#allocation11 + $0xf4] sm:$0xf] }
 0x103   :  { %v1853_v52 = vld [vmem:[#allocation11 + $0xf8] sm:$0xf0]  ;;  %v1909_v7 = vld [vmem:[#allocation11 + $0x168] sm:$0xf0] }
 0x104   :  { %707 = vadd.xlane.f32.xlu2 %v706_v42  ;;  %v742_v17 = vadd.f32 %v741_v16, %v724_v15  ;;  %v1828_v42 = vor.u32 %v2074_v13, %v1827_v11  ;;  %v1955_v15 = vld [vmem:[#allocation11 + $0x1c0] sm:$0xf]  ;;  %v2106_v16 = vld [vmem:[#allocation11 + $0x1c4] sm:$0xf0]  ;;  %v1932_v11 = vor.u32 %v2100_v9, %v1931_v8 }
 0x106   :  { %743 = vadd.xlane.f32.xlu1 %v742_v17  ;;  %v1956_v17 = vor.u32 %v2106_v16, %v1955_v15  ;;  %1313 = vmatpush.bf16.msra.mxu1 %v1828_v42  ;;  %v1859_v42 = vld [vmem:[#allocation11 + $0x100] sm:$0xf]  ;;  %v2082_v15 = vld [vmem:[#allocation11 + $0x104] sm:$0xf0] }
 0x107   :  { %1333 = vmatpush.bf16.msra.mxu2 %v1884_v21  ;;  %1295 = vmatpush.bf16.msra.mxu0 %v1756_v29  ;;  %v1923_v29 = vld [vmem:[#allocation11 + $0x180] sm:$0xf] }
 0x108   :  { %1351 = vmatpush.bf16.msra.mxu3 %v1956_v17  ;;  %v1860_v17 = vor.u32 %v2082_v15, %v1859_v42 }
 0x10a   :  { %1314 = vmatpush.bf16.msra.mxu1 %v1820_v44  ;;  %v2098_v44 = vld [vmem:[#allocation11 + $0x184] sm:$0xf0] }
 0x10b   :  { %1334 = vmatpush.bf16.msra.mxu2 %v1876_v47  ;;  %1296 = vmatpush.bf16.msra.mxu0 %v1748_v50  ;;  %v1924_v43 = vor.u32 %v2098_v44, %v1923_v29  ;;  %v1917_v47 = vld [vmem:[#allocation11 + $0x178] sm:$0xf0]  ;;  %v2109_v29 = vld [vmem:[#allocation11 + $0x1e4] sm:$0xf]  ;;  %v1973_v44 = vld [vmem:[#allocation11 + $0x1e8] sm:$0xf0] }
 0x10c   :  { %1352 = vmatpush.bf16.msra.mxu3 %v1948_v38  ;;  %v2533_v38 = vld [vmem:[#allocation8] sm:$0xf]  ;;  %v1789_v50 = vld [vmem:[#allocation11 + $0x78] sm:$0xf0] }
 0x10d   :  { %v2538_v53 = vperm.slane %v2533_v38, 0  ;;  %v2544_v63 = vperm.slane %v2533_v38, 2 }
 0x10e   :  { %1315 = vmatpush.bf16.msra.mxu1 %v1812_v55  ;;  %v2111_v55 = vld [vmem:[#allocation11 + $0x1f4] sm:$0xf] }
 0x10f   :  { %1335 = vmatpush.bf16.msra.mxu2 %v1868_v62  ;;  %1297 = vmatpush.bf16.msra.mxu0 %v1740_v6  ;;  %v2541_v62 = vperm.slane %v2533_v38, 1  ;;  %v2093_v6 = vld [vmem:[#allocation11 + $0x164] sm:$0xf] }
 0x110   :  { %1353 = vmatpush.bf16.msra.mxu3 %v1940_v27  ;;  %v1981_v27 = vld [vmem:[#allocation11 + $0x1f8] sm:$0xf0] }
 0x111   :  { %v1984_v1 = vor.u32 %v2111_v55, %v1981_v27  ;;  %v2107_v55 = vld [vmem:[#allocation11 + $0x1d4] sm:$0xf]  ;;  %v1965_v27 = vld [vmem:[#allocation11 + $0x1d8] sm:$0xf0] }
 0x112   :  { %1316 = vmatpush.bf16.msra.mxu1 %v1804_v10 }
 0x113   :  { %1336 = vmatpush.bf16.msra.mxu2 %v1860_v17  ;;  %1298 = vmatpush.bf16.msra.mxu0 %v1732_v22 }
 0x114   :  { %1354 = vmatpush.bf16.msra.mxu3 %v1932_v11  ;;  %v1912_v11 = vor.u32 %v2093_v6, %v1909_v7  ;;  %v1968_v6 = vor.u32 %v2107_v55, %v1965_v27  ;;  %v2089_v7 = vld [vmem:[#allocation11 + $0x144] sm:$0xf] }
 0x116   :  { %1317 = vmatpush.bf16.msra.mxu1 %v1796_v40  ;;  %v1976_v40 = vor.u32 %v2109_v29, %v1973_v44  ;;  %v1829_v29 = vld [vmem:[#allocation11 + $0xc8] sm:$0xf0]  ;;  %v2105_v44 = vld [vmem:[#allocation11 + $0x1c4] sm:$0xf] }
 0x118   :  { %1355 = vmatpush.bf16.msra.mxu3 %v1924_v43  ;;  %v2091_v43 = vld [vmem:[#allocation11 + $0x154] sm:$0xf] }
 0x11c   :  { %1424 = vmatpush.bf16.msrb.mxu3 %v1984_v1 }
 0x120   :  { %1425 = vmatpush.bf16.msrb.mxu3 %v1976_v40  ;;  %v2592_v40 = vperm.slane %v2533_v38, 3 }
 0x124   :  { %1426 = vmatpush.bf16.msrb.mxu3 %v1968_v6 }
 0x15f   :  { %v693_v39 = vpop.xlane.xlu0 %692 }
 0x160   :  { %v2522_v32 = vmul.f32 0.001953125, %v693_v39  ;;  %v2535_v39 = vld [vmem:[#allocation10] sm:$0xf] }
 0x161   :  { %v729_v28 = vpop.xlane.xlu1 %728  ;;  %v2560_v18 = vperm.slane %v2535_v39, 1  ;;  %v2564_v22 = vperm.slane %v2535_v39, 2 }
 0x162   :  { %v749_v54 = vmul.f32 0.001953125, %v729_v28  ;;  %v753_v33 = vmul.f32 %v2522_v32, %v2522_v32  ;;  %v1920_v28 = vor.u32 %v2095_v26, %v1917_v47  ;;  %v1901_v26 = vld [vmem:[#allocation11 + $0x158] sm:$0xf0]  ;;  %v2059_v47 = vld [vmem:[#allocation11 + $0x54] sm:$0xf] }
 0x164   :  { %v757_v4 = vsub.f32 %v749_v54, %v753_v33  ;;  %v1792_v54 = vor.u32 %v2063_v48, %v1789_v50  ;;  %v1856_v33 = vor.u32 %v2079_v51, %v1853_v52  ;;  %1405 = vmatpush.bf16.msrb.mxu2 %v1920_v28  ;;  %v1904_v48 = vor.u32 %v2091_v43, %v1901_v26  ;;  %v2075_v28 = vld [vmem:[#allocation11 + $0xd4] sm:$0xf]  ;;  %v1837_v50 = vld [vmem:[#allocation11 + $0xd8] sm:$0xf0] }
 0x166   :  { %v761_v13 = vmax.f32 %v757_v4, 0.0  ;;  %v2549_v4 = vperm.slane %v2535_v39, 0  ;;  %1367 = vmatpush.bf16.msrb.mxu0 %v1792_v54  ;;  %1386 = vmatpush.bf16.msrb.mxu1 %v1856_v33  ;;  %v1840_v33 = vor.u32 %v2075_v28, %v1837_v50 }
 0x167   :  { %v698_v14 = vpop.xlane.xlu0 %697 }
 0x168   :  { %v2526_v16 = vmul.f32 0.001953125, %v698_v14  ;;  %v2528_v20 = vadd.f32 1e-05, %v761_v13  ;;  %v2061_v13 = vld [vmem:[#allocation11 + $0x64] sm:$0xf]  ;;  %1406 = vmatpush.bf16.msrb.mxu2 %v1912_v11 }
 0x169   :  { %v734_v21 = vpop.xlane.xlu1 %733  ;;  %v1781_v14 = vld [vmem:[#allocation11 + $0x68] sm:$0xf0]  ;;  %v2057_v11 = vld [vmem:[#allocation11 + $0x44] sm:$0xf] }
 0x16a   :  { %2124 = vrsqrt.f32 %v2528_v20  ;;  %v750_v35 = vmul.f32 0.001953125, %v734_v21  ;;  %v754_v37 = vmul.f32 %v2526_v16, %v2526_v16  ;;  %v1845_v21 = vld [vmem:[#allocation11 + $0xe8] sm:$0xf0]  ;;  %v1784_v23 = vor.u32 %v2061_v13, %v1781_v14 }
 0x16b   :  { %v1848_v49 = vor.u32 %v2077_v19, %v1845_v21  ;;  %vm791_vm1 = vweird.f32 %v2528_v20 }
 0x16c   :  { %v758_v25 = vsub.f32 %v750_v35, %v754_v37  ;;  %1368 = vmatpush.bf16.msrb.mxu0 %v1784_v23  ;;  %1407 = vmatpush.bf16.msrb.mxu2 %v1904_v48 }
 0x16d   :  { %1387 = vmatpush.bf16.msrb.mxu1 %v1848_v49  ;;  %v2073_v49 = vld [vmem:[#allocation11 + $0xc4] sm:$0xf] }
 0x16e   :  { %v762_v30 = vmax.f32 %v758_v25, 0.0  ;;  %v1773_v25 = vld [vmem:[#allocation11 + $0x58] sm:$0xf0]  ;;  %v1832_v43 = vor.u32 %v2073_v49, %v1829_v29 }
 0x16f   :  { %v703_v60 = vpop.xlane.xlu2 %702  ;;  %v1776_v54 = vor.u32 %v2059_v47, %v1773_v25  ;;  %v2597_v47 = vperm.slane %v2535_v39, 3 }
 0x170   :  { %v2546_v2 = vmul.f32 0.001953125, %v703_v60  ;;  %v2551_v8 = vpop.eup %2124  ;;  %v2553_v9 = vadd.f32 1e-05, %v762_v30  ;;  %v765_v30 = vsub.f32 %v2430_v45, %v2522_v32  ;;  %v766_v60 = vsub.f32 %v2425_v41, %v2522_v32 }
 0x171   :  { %v739_v10 = vpop.xlane.xlu0 %738  ;;  %v786_v42 = vmul.f32 %v2551_v8, %v2528_v20  ;;  %vm792_vm0 = vweird.f32 %v2551_v8  ;;  %v767_v41 = vsub.f32 %v2432_v46, %v2522_v32  ;;  %v768_v45 = vsub.f32 %v2447_v0, %v2522_v32  ;;  %1369 = vmatpush.bf16.msrb.mxu0 %v1776_v54  ;;  %1388 = vmatpush.bf16.msrb.mxu1 %v1840_v33  ;;  %v1957_v46 = vld [vmem:[#allocation11 + $0x1c8] sm:$0xf0]  ;;  %v1885_v33 = vld [vmem:[#allocation11 + $0x138] sm:$0xf0] }
 0x172   :  { %v755_v15 = vmul.f32 %v2546_v2, %v2546_v2  ;;  %v751_v17 = vmul.f32 0.001953125, %v739_v10  ;;  %2126 = vrsqrt.f32 %v2553_v9  ;;  %v1893_v10 = vld [vmem:[#allocation11 + $0x148] sm:$0xf0]  ;;  %vm793_vm2 = vmor %vm791_vm1, %vm792_vm0  ;;  %v1960_v48 = vor.u32 %v2105_v44, %v1957_v46 }
 0x173   :  { %v787_v35 = vmul.f32 %v2551_v8, %v786_v42  ;;  %vm801_vm4 = vweird.f32 %v2553_v9  ;;  %v1749_v46 = vld [vmem:[#allocation11 + $0x28] sm:$0xf0] }
 0x174   :  { %v759_v37 = vsub.f32 %v751_v17, %v755_v15  ;;  %v1896_v15 = vor.u32 %v2089_v7, %v1893_v10  ;;  %v1765_v17 = vld [vmem:[#allocation11 + $0x48] sm:$0xf0]  ;;  %1427 = vmatpush.bf16.msrb.mxu3 %v1960_v48  ;;  %v771_v7 = vsub.f32 %v2453_v5, %v2526_v16 }
 0x175   :  { %v788_v51 = vmul.f32 0.5, %v787_v35  ;;  %v1768_v23 = vor.u32 %v2057_v11, %v1765_v17  ;;  %1389 = vmatpush.bf16.msrb.mxu1 %v1832_v43  ;;  %v772_v17 = vsub.f32 %v2471_v31, %v2526_v16  ;;  %v1813_v48 = vld [vmem:[#allocation11 + $0xa8] sm:$0xf0] }
 0x176   :  { %v763_v52 = vmax.f32 %v759_v37, 0.0  ;;  %1408 = vmatpush.bf16.msrb.mxu2 %v1896_v15  ;;  %v1821_v15 = vld [vmem:[#allocation11 + $0xb8] sm:$0xf0] }
 0x177   :  { %v708_v1 = vpop.xlane.xlu2 %707  ;;  %v789_v13 = vsub.f32 1.5, %v788_v51  ;;  %1370 = vmatpush.bf16.msrb.mxu0 %v1768_v23  ;;  %v1949_v23 = vld [vmem:[#allocation11 + $0x1b8] sm:$0xf0] }
 0x178   :  { %v2572_v14 = vadd.f32 1e-05, %v763_v52  ;;  %v2574_v42 = vmul.f32 0.001953125, %v708_v1  ;;  %v2576_v19 = vpop.eup %2126  ;;  %v769_v52 = vsub.f32 %v2450_v3, %v2526_v16  ;;  %v1757_v1 = vld [vmem:[#allocation11 + $0x38] sm:$0xf0]  ;;  %v770_v3 = vsub.f32 %v2444_v61, %v2526_v16 }
 0x179   :  { %v744_v21 = vpop.xlane.xlu1 %743  ;;  %v790_v35 = vmul.f32 %v2551_v8, %v789_v13  ;;  %v796_v37 = vmul.f32 %v2576_v19, %v2553_v9  ;;  %vm802_vm3 = vweird.f32 %v2576_v19  ;;  %v2071_v13 = vld [vmem:[#allocation11 + $0xb4] sm:$0xf]  ;;  %v2085_v16 = vld [vmem:[#allocation11 + $0x124] sm:$0xf]  ;;  %v1877_v9 = vld [vmem:[#allocation11 + $0x128] sm:$0xf0] }
 0x17a   :  { %2128 = vrsqrt.f32 %v2572_v14  ;;  %v756_v0 = vmul.f32 %v2574_v42, %v2574_v42  ;;  %v752_v32 = vmul.f32 0.001953125, %v744_v21  ;;  %v2103_v21 = vld [vmem:[#allocation11 + $0x1b4] sm:$0xf]  ;;  %vm803_vm5 = vmor %vm801_vm4, %vm802_vm3  ;;  %v1824_v43 = vor.u32 %v2071_v13, %v1821_v15 }
 0x17b   :  { %v794_v20 = vsel %vm793_vm2, %v2551_v8, %v790_v35  ;;  %v797_v26 = vmul.f32 %v2576_v19, %v796_v37  ;;  %v2087_v8 = vld [vmem:[#allocation11 + $0x134] sm:$0xf]  ;;  %v2053_v37 = vld [vmem:[#allocation11 + $0x24] sm:$0xf]  ;;  %vm811_vm7 = vweird.f32 %v2572_v14 }
 0x17c   :  { %v760_v25 = vsub.f32 %v752_v32, %v756_v0  ;;  %v825_v28 = vmul.f32 %v794_v20, %v765_v30  ;;  %v826_v50 = vmul.f32 %v794_v20, %v766_v60  ;;  %v827_v51 = vmul.f32 %v794_v20, %v767_v41  ;;  %v2055_v60 = vld [vmem:[#allocation11 + $0x34] sm:$0xf]  ;;  %v2069_v0 = vld [vmem:[#allocation11 + $0xa4] sm:$0xf]  ;;  %1390 = vmatpush.bf16.msrb.mxu1 %v1824_v43 }
 0x17d   :  { %v798_v38 = vmul.f32 0.5, %v797_v26  ;;  %v828_v54 = vmul.f32 %v794_v20, %v768_v45  ;;  %v1888_v11 = vor.u32 %v2087_v8, %v1885_v33  ;;  %v1760_v35 = vor.u32 %v2055_v60, %v1757_v1  ;;  %v2083_v8 = vld [vmem:[#allocation11 + $0x114] sm:$0xf]  ;;  %v1869_v33 = vld [vmem:[#allocation11 + $0x118] sm:$0xf0] }
 0x17e   :  { %v764_v55 = vmax.f32 %v760_v25, 0.0  ;;  %v851_v39 = vmul.f32 %v2538_v53, %v825_v28  ;;  %v852_v27 = vmul.f32 %v2541_v62, %v826_v50  ;;  %v853_v30 = vmul.f32 %v2544_v63, %v827_v51  ;;  %v2101_v25 = vld [vmem:[#allocation11 + $0x1a4] sm:$0xf]  ;;  %v1941_v28 = vld [vmem:[#allocation11 + $0x1a8] sm:$0xf0] }
 0x17f   :  { %v799_v10 = vsub.f32 1.5, %v798_v38  ;;  %v854_v31 = vmul.f32 %v2592_v40, %v828_v54  ;;  %1409 = vmatpush.bf16.msrb.mxu2 %v1888_v11  ;;  %v1952_v20 = vor.u32 %v2103_v21, %v1949_v23  ;;  %v1880_v26 = vor.u32 %v2085_v16, %v1877_v9  ;;  %1371 = vmatpush.bf16.msrb.mxu0 %v1760_v35  ;;  %v2067_v15 = vld [vmem:[#allocation11 + $0x94] sm:$0xf]  ;;  %v2081_v43 = vld [vmem:[#allocation11 + $0x104] sm:$0xf] }
 0x180   :  { %v2605_v6 = vpop.eup %2128  ;;  %v2616_v45 = vadd.f32 1e-05, %v764_v55  ;;  %v877_v5 = vadd.f32 %v2549_v4, %v851_v39  ;;  %v878_v49 = vadd.f32 %v2560_v18, %v852_v27  ;;  %v879_v44 = vadd.f32 %v2564_v22, %v853_v30  ;;  %v2099_v35 = vld [vmem:[#allocation11 + $0x194] sm:$0xf] }
 0x181   :  { %v806_v41 = vmul.f32 %v2605_v6, %v2572_v14  ;;  %v800_v61 = vmul.f32 %v2576_v19, %v799_v10  ;;  %vm812_vm6 = vweird.f32 %v2605_v6  ;;  %1428 = vmatpush.bf16.msrb.mxu3 %v1952_v20  ;;  %v1752_v39 = vor.u32 %v2053_v37, %v1749_v46  ;;  %v1933_v37 = vld [vmem:[#allocation11 + $0x198] sm:$0xf0]  ;;  %v1861_v20 = vld [vmem:[#allocation11 + $0x108] sm:$0xf0] }
 0x182   :  { %2130 = vrsqrt.f32 %v2616_v45  ;;  %v880_v10 = vadd.f32 %v2597_v47, %v854_v31  ;;  %v1944_v11 = vor.u32 %v2101_v25, %v1941_v28  ;;  %v1872_v13 = vor.u32 %v2083_v8, %v1869_v33  ;;  %vm813_vm8 = vmor %vm811_vm7, %vm812_vm6  ;;  %v2049_v28 = vld [vmem:[#allocation11 + $0x4] sm:$0xf] }
 0x183   :  { %v807_v29 = vmul.f32 %v2605_v6, %v806_v41  ;;  %v804_v32 = vsel %vm803_vm5, %v2576_v19, %v800_v61  ;;  %v1816_v19 = vor.u32 %v2069_v0, %v1813_v48  ;;  %1410 = vmatpush.bf16.msrb.mxu2 %v1880_v26  ;;  %1372 = vmatpush.bf16.msrb.mxu0 %v1752_v39  ;;  %vm821_vm10 = vweird.f32 %v2616_v45 }
 0x184   :  { %v829_v51 = vmul.f32 %v804_v32, %v769_v52  ;;  %v830_v38 = vmul.f32 %v804_v32, %v770_v3  ;;  %v831_v54 = vmul.f32 %v804_v32, %v771_v7  ;;  %v832_v55 = vmul.f32 %v804_v32, %v772_v17  ;;  %v2051_v52 = vld [vmem:[#allocation11 + $0x14] sm:$0xf]  ;;  %v1741_v3 = vld [vmem:[#allocation11 + $0x18] sm:$0xf0] }
 0x185   :  { %v808_v50 = vmul.f32 0.5, %v807_v29  ;;  %v1805_v17 = vld [vmem:[#allocation11 + $0x98] sm:$0xf0]  ;;  %1391 = vmatpush.bf16.msrb.mxu1 %v1816_v19  ;;  %1429 = vmatpush.bf16.msrb.mxu3 %v1944_v11  ;;  %v1744_v29 = vor.u32 %v2051_v52, %v1741_v3  ;;  %v776_v8 = vsub.f32 %v2497_v57, %v2546_v2  ;;  %v1864_v33 = vor.u32 %v2081_v43, %v1861_v20 }
 0x186   :  { %v855_v30 = vmul.f32 %v2538_v53, %v829_v51  ;;  %v856_v60 = vmul.f32 %v2541_v62, %v830_v38  ;;  %v857_v1 = vmul.f32 %v2544_v63, %v831_v54  ;;  %v858_v7 = vmul.f32 %v2592_v40, %v832_v55  ;;  %v2065_v51 = vld [vmem:[#allocation11 + $0x84] sm:$0xf]  ;;  %v1797_v38 = vld [vmem:[#allocation11 + $0x88] sm:$0xf0] }
 0x187   :  { %v809_v27 = vsub.f32 1.5, %v808_v50  ;;  %1411 = vmatpush.bf16.msrb.mxu2 %v1872_v13  ;;  %v1808_v14 = vor.u32 %v2067_v15, %v1805_v17  ;;  %v1733_v50 = vld [vmem:[#allocation11 + $0x8] sm:$0xf0]  ;;  %v775_v54 = vsub.f32 %v2478_v36, %v2546_v2  ;;  %v2097_v55 = vld [vmem:[#allocation11 + $0x184] sm:$0xf]  ;;  %1373 = vmatpush.bf16.msrb.mxu0 %v1744_v29  ;;  %v777_v57 = vsub.f32 %v2500_v58, %v2574_v42 }
 0x188   :  { %v2634_v41 = vpop.eup %2130  ;;  %v881_v23 = vadd.f32 %v2549_v4, %v855_v30  ;;  %v882_v61 = vadd.f32 %v2560_v18, %v856_v60  ;;  %v883_v16 = vadd.f32 %v2564_v22, %v857_v1  ;;  %v884_v9 = vadd.f32 %v2597_v47, %v858_v7 }
 0x189   :  { %v810_v21 = vmul.f32 %v2605_v6, %v809_v27  ;;  %v816_v31 = vmul.f32 %v2634_v41, %v2616_v45  ;;  %vm822_vm9 = vweird.f32 %v2634_v41  ;;  %1392 = vmatpush.bf16.msrb.mxu1 %v1808_v14  ;;  %v1736_v19 = vor.u32 %v2049_v28, %v1733_v50 }
 0x18a   :  { %v2646_v46 = vpack.c.bf16 %v881_v23, %v877_v5  ;;  %v2648_v0 = vpack.c.bf16 %v882_v61, %v878_v49  ;;  %v2650_v32 = vpack.c.bf16 %v883_v16, %v879_v44  ;;  %v2654_v25 = vpack.c.bf16 %v884_v9, %v880_v10  ;;  %vm823_vm11 = vmor %vm821_vm10, %vm822_vm9 }
 0x18b   :  { %v814_v26 = vsel %vm813_vm8, %v2605_v6, %v810_v21  ;;  %v817_v48 = vmul.f32 %v2634_v41, %v816_v31  ;;  %v773_v5 = vsub.f32 %v2474_v34, %v2546_v2  ;;  %v774_v49 = vsub.f32 %v2468_v24, %v2546_v2  ;;  %v1925_v34 = vld [vmem:[#allocation11 + $0x188] sm:$0xf0]  ;;  %1412 = vmatpush.bf16.msrb.mxu2 %v1864_v33 }
 0x18c   :  { %1299 = vmatmul.bf16.vlgmr.msra.gmra.mxu0 %v2646_v46  ;;  %1318 = vmatmul.bf16.vlgmr.msra.gmra.mxu1 %v2648_v0  ;;  %v1936_v44 = vor.u32 %v2099_v35, %v1933_v37  ;;  %v835_v30 = vmul.f32 %v814_v26, %v775_v54  ;;  %v836_v60 = vmul.f32 %v814_v26, %v776_v8 }
 0x18d   :  { %v818_v6 = vmul.f32 0.5, %v817_v48  ;;  %1337 = vmatmul.bf16.vlgmr.msra.gmra.mxu2 %v2650_v32  ;;  %1356 = vmatmul.bf16.vlgmr.msra.gmra.mxu3 %v2654_v25  ;;  %v833_v24 = vmul.f32 %v814_v26, %v773_v5  ;;  %v834_v39 = vmul.f32 %v814_v26, %v774_v49  ;;  %v1800_v1 = vor.u32 %v2065_v51, %v1797_v38 }
 0x18e   :  { %1430 = vmatpush.bf16.msrb.mxu3 %v1936_v44  ;;  %v1928_v36 = vor.u32 %v2097_v55, %v1925_v34  ;;  %v778_v2 = vsub.f32 %v2495_v56, %v2574_v42  ;;  %v779_v7 = vsub.f32 %v2502_v59, %v2574_v42  ;;  %v780_v10 = vsub.f32 %v2516_v12, %v2574_v42 }
 0x18f   :  { %v819_v27 = vsub.f32 1.5, %v818_v6  ;;  %v859_v3 = vmul.f32 %v2538_v53, %v833_v24  ;;  %1374 = vmatpush.bf16.msrb.mxu0 %v1736_v19  ;;  %1393 = vmatpush.bf16.msrb.mxu1 %v1800_v1  ;;  %v860_v58 = vmul.f32 %v2541_v62, %v834_v39  ;;  %v861_v11 = vmul.f32 %v2544_v63, %v835_v30 }
 0x190   :  { %v862_v56 = vmul.f32 %v2592_v40, %v836_v60 }
 0x191   :  { %v820_v52 = vmul.f32 %v2634_v41, %v819_v27  ;;  %v886_v61 = vadd.f32 %v2560_v18, %v860_v58  ;;  %v887_v16 = vadd.f32 %v2564_v22, %v861_v11 }
 0x192   :  { %1431 = vmatpush.bf16.msrb.mxu3 %v1928_v36  ;;  %v888_v31 = vadd.f32 %v2597_v47, %v862_v56 }
 0x193   :  { %v824_v45 = vsel %vm823_vm11, %v2634_v41, %v820_v52  ;;  %v885_v41 = vadd.f32 %v2549_v4, %v859_v3 }
 0x194   :  { %v837_v13 = vmul.f32 %v824_v45, %v777_v57  ;;  %v838_v15 = vmul.f32 %v824_v45, %v778_v2  ;;  %v839_v17 = vmul.f32 %v824_v45, %v779_v7  ;;  %v840_v21 = vmul.f32 %v824_v45, %v780_v10 }
 0x196   :  { %v863_v59 = vmul.f32 %v2538_v53, %v837_v13  ;;  %v864_v23 = vmul.f32 %v2541_v62, %v838_v15  ;;  %v865_v12 = vmul.f32 %v2544_v63, %v839_v17  ;;  %v866_v42 = vmul.f32 %v2592_v40, %v840_v21 }
 0x198   :  { %v889_v9 = vadd.f32 %v2549_v4, %v863_v59  ;;  %v890_v29 = vadd.f32 %v2560_v18, %v864_v23  ;;  %v891_v53 = vadd.f32 %v2564_v22, %v865_v12  ;;  %v892_v62 = vadd.f32 %v2597_v47, %v866_v42  ;;  %v965_v4 = vld [vmem:[%s2717_s6] sm:$0x3]  ;;  %s2320_s6 = smov [#allocation13]  }
 0x199   :  { %v967_v18 = vperm.slane %v965_v4, 0  ;;  %v968_v30 = vperm.slane %v965_v4, 1  ;;  %s1455_s8 = sshll.u32 %s2320_s6, 4  ;;  %s1456_s8 = int_to_ptr.vmem [resolvable:$true] %s1455_s8 }
 0x19a   :  { %v897_v35 = vpack.c.bf16 %v889_v9, %v885_v41  ;;  %v898_v63 = vpack.c.bf16 %v890_v29, %v886_v61  ;;  %v899_v37 = vpack.c.bf16 %v891_v53, %v887_v16  ;;  %v900_v40 = vpack.c.bf16 %v892_v62, %v888_v31 }
 0x19c   :  { %1304 = vmatmul.bf16.gmra.mxu0 %v897_v35  ;;  %1323 = vmatmul.bf16.gmra.mxu1 %v898_v63 }
 0x19d   :  { %1342 = vmatmul.bf16.gmra.mxu2 %v899_v37  ;;  %1361 = vmatmul.bf16.gmra.mxu3 %v900_v40 }
 0x1ac   :  { %1375 = vmatmul.bf16.vlgmr.msrb.gmra.mxu0 %v2646_v46  ;;  %1394 = vmatmul.bf16.vlgmr.msrb.gmra.mxu1 %v2648_v0 }
 0x1ad   :  { %1413 = vmatmul.bf16.vlgmr.msrb.gmra.mxu2 %v2650_v32  ;;  %1432 = vmatmul.bf16.vlgmr.msrb.gmra.mxu3 %v2654_v25 }
 0x1bc   :  { %1380 = vmatmul.bf16.gmra.mxu0 %v897_v35  ;;  %1399 = vmatmul.bf16.gmra.mxu1 %v898_v63 }
 0x1bd   :  { %1418 = vmatmul.bf16.gmra.mxu2 %v899_v37  ;;  %1437 = vmatmul.bf16.gmra.mxu3 %v900_v40 }
 0x209   :  { %v1300_v22 = vpop.f32.mrf.mxu0  ;;  %v1319_v47 = vpop.f32.mrf.mxu1 }
 0x20a   :  { %v1301_v14 = vadd.f32 %v1300_v22, %v967_v18 }
 0x20c   :  { %v1320_v43 = vadd.f32 %v1319_v47, %v1301_v14 }
 0x210   :  { %v1338_v46 = vpop.f32.mrf.mxu2  ;;  %v1357_v20 = vpop.f32.mrf.mxu3 }
 0x211   :  { %v1339_v0 = vadd.f32 %v1338_v46, %v1320_v43  ;;  %v1302_v26 = vpop.f32.mrf.mxu0  ;;  %v1321_v32 = vpop.f32.mrf.mxu1 }
 0x212   :  { %v1303_v25 = vadd.f32 %v1302_v26, %v967_v18 }
 0x213   :  { %v1358_v48 = vadd.f32 %v1357_v20, %v1339_v0 }
 0x214   :  { %v1322_v28 = vadd.f32 %v1321_v32, %v1303_v25 }
 0x215   :  { %1443 = vst [vmem:[#allocation13] sm:$0xff] %v1358_v48 }
 0x218   :  { %v1340_v50 = vpop.f32.mrf.mxu2  ;;  %v1359_v5 = vpop.f32.mrf.mxu3 }
 0x219   :  { %v1341_v49 = vadd.f32 %v1340_v50, %v1322_v28  ;;  %v1305_v44 = vpop.f32.mrf.mxu0  ;;  %v1324_v51 = vpop.f32.mrf.mxu1 }
 0x21a   :  { %v1306_v6 = vadd.f32 %v1305_v44, %v967_v18 }
 0x21b   :  { %v1360_v38 = vadd.f32 %v1359_v5, %v1341_v49 }
 0x21c   :  { %v1325_v54 = vadd.f32 %v1324_v51, %v1306_v6 }
 0x21d   :  { %1445 = vst [vmem:[#allocation13 + $0x10] sm:$0xff] %v1360_v38 }
 0x220   :  { %v1343_v8 = vpop.f32.mrf.mxu2  ;;  %v1362_v33 = vpop.f32.mrf.mxu3 }
 0x221   :  { %v1344_v55 = vadd.f32 %v1343_v8, %v1325_v54  ;;  %v1307_v34 = vpop.f32.mrf.mxu0  ;;  %v1326_v24 = vpop.f32.mrf.mxu1 }
 0x222   :  { %v1308_v19 = vadd.f32 %v1307_v34, %v967_v18 }
 0x223   :  { %v1363_v39 = vadd.f32 %v1362_v33, %v1344_v55 }
 0x224   :  { %v1327_v27 = vadd.f32 %v1326_v24, %v1308_v19 }
 0x225   :  { %1447 = vst [vmem:[#allocation13 + $0x20] sm:$0xff] %v1363_v39 }
 0x228   :  { %v1345_v60 = vpop.f32.mrf.mxu2  ;;  %v1364_v1 = vpop.f32.mrf.mxu3 }
 0x229   :  { %v1346_v36 = vadd.f32 %v1345_v60, %v1327_v27  ;;  %v1376_v52 = vpop.f32.mrf.mxu0  ;;  %v1395_v57 = vpop.f32.mrf.mxu1 }
 0x22a   :  { %v1377_v3 = vadd.f32 %v1376_v52, %v968_v30 }
 0x22b   :  { %v1365_v2 = vadd.f32 %v1364_v1, %v1346_v36 }
 0x22c   :  { %v1396_v7 = vadd.f32 %v1395_v57, %v1377_v3 }
 0x22d   :  { %1449 = vst [vmem:[#allocation13 + $0x30] sm:$0xff] %v1365_v2 }
 0x230   :  { %v1414_v10 = vpop.f32.mrf.mxu2  ;;  %v1433_v45 = vpop.f32.mrf.mxu3 }
 0x231   :  { %v1415_v58 = vadd.f32 %v1414_v10, %v1396_v7  ;;  %v1378_v11 = vpop.f32.mrf.mxu0  ;;  %v1397_v56 = vpop.f32.mrf.mxu1 }
 0x232   :  { %v1379_v15 = vadd.f32 %v1378_v11, %v968_v30 }
 0x233   :  { %v1434_v13 = vadd.f32 %v1433_v45, %v1415_v58 }
 0x234   :  { %v1398_v17 = vadd.f32 %v1397_v56, %v1379_v15 }
 0x235   :  { %1444 = vst [vmem:[#allocation13 + $0x8] sm:$0xff] %v1434_v13 }
 0x238   :  { %v1416_v21 = vpop.f32.mrf.mxu2  ;;  %v1435_v59 = vpop.f32.mrf.mxu3 }
 0x239   :  { %v1417_v23 = vadd.f32 %v1416_v21, %v1398_v17  ;;  %v1381_v12 = vpop.f32.mrf.mxu0  ;;  %v1400_v61 = vpop.f32.mrf.mxu1 }
 0x23a   :  { %v1382_v41 = vadd.f32 %v1381_v12, %v968_v30 }
 0x23b   :  { %v1436_v42 = vadd.f32 %v1435_v59, %v1417_v23 }
 0x23c   :  { %v1401_v16 = vadd.f32 %v1400_v61, %v1382_v41 }
 0x23d   :  { %1446 = vst [vmem:[#allocation13 + $0x18] sm:$0xff] %v1436_v42 }
 0x240   :  { %v1419_v31 = vpop.f32.mrf.mxu2  ;;  %v1438_v9 = vpop.f32.mrf.mxu3 }
 0x241   :  { %v1420_v29 = vadd.f32 %v1419_v31, %v1401_v16  ;;  %v1383_v53 = vpop.f32.mrf.mxu0  ;;  %v1402_v63 = vpop.f32.mrf.mxu1 }
 0x242   :  { %v1384_v35 = vadd.f32 %v1383_v53, %v968_v30 }
 0x243   :  { %v1439_v62 = vadd.f32 %v1438_v9, %v1420_v29 }
 0x244   :  { %v1403_v37 = vadd.f32 %v1402_v63, %v1384_v35 }
 0x245   :  { %1448 = vst [vmem:[#allocation13 + $0x28] sm:$0xff] %v1439_v62 }
 0x248   :  { %v1421_v40 = vpop.f32.mrf.mxu2  ;;  %v1440_v18 = vpop.f32.mrf.mxu3 }
 0x249   :  { %v1422_v4 = vadd.f32 %v1421_v40, %v1403_v37 }
 0x24b   :  { %v1441_v22 = vadd.f32 %v1440_v18, %v1422_v4 }
 0x24d   :  { %1450 = vst [vmem:[#allocation13 + $0x38] sm:$0xff] %v1441_v22 }
 0x24e   :  { %1463 = dma.vmem_to_hbm [thread:$0]  %s1456_s8, 1024, %s1458_s13, [#allocation4], %s2311_s9, %s2311_s9, %s2312_s10  }
 0x24f   :  { %2308 = dma.done.wait [#allocation4], 1024  }
 0x250   :  { %2309 = vsyncadd [#allocation4], 4294966272 }
 0x251   :  { %1468 = vsyncpa [#allocation3], 1 }
 0x252   :  { %1469 = vsyncpa [#allocation6], 1 }
 0x253   :  { %1470 = vsyncpa [#allocation9], 1 }
 0x254   :  { %1471 = vsyncpa [#allocation12], 1 }
 0x255   :  { %1472 = vsyncpa [#allocation4], 1 }

</bundles_post_ra>
